<compile_context>
chip_gen: v7x
topology: tpu7x:2x2x1
jax: 0.10.0
libtpu: 0.0.40
codegen_flags: <defaults>
</compile_context>

<pallas_src>
import jax
import jax.numpy as jnp
from jax.experimental import pallas as pl
from jax.experimental.pallas import tpu as pltpu


# Double-buffered VMEM budget for (input tile + output tile). Safe on all of
# v5e (16 MiB scoped default), v6e (32 MiB default / 128 MiB), v7x (64 MiB).
_VMEM_BUDGET_BYTES = 12 * 1024 * 1024
_VMEM_LIMIT_BYTES = 32 * 1024 * 1024
# Below this element count the pallas_call launch overhead dominates.
_PALLAS_MIN_ELEMS = 1 << 15


def _double_tanh_dup_kernel(x_ref, o_ref):
    # x_ref: (TB, F) f32 block, o_ref: (TB, 2F) f32 block.
    f = x_ref.shape[-1]
    t = jnp.tanh(jnp.tanh(x_ref[...]))  # tanh applied twice, computed once
    # Two full-width slab stores (no in-vreg concatenate / relayout).
    o_ref[:, :f] = t
    o_ref[:, f:] = t


def _double_tanh_dup_pallas(x_flat):
    b, f = x_flat.shape
    itemsize = x_flat.dtype.itemsize

    # Double-buffered bytes per row: 2 * (F + 2F) * itemsize.
    bytes_per_row = 2 * 3 * f * itemsize
    tb_fit = max(8, (_VMEM_BUDGET_BYTES // bytes_per_row) // 8 * 8)
    tb = b if b <= tb_fit else tb_fit
    grid = (pl.cdiv(b, tb),)

    out = pl.pallas_call(
        _double_tanh_dup_kernel,
        out_shape=jax.ShapeDtypeStruct((b, 2 * f), x_flat.dtype),
        grid=grid,
        in_specs=[pl.BlockSpec((tb, f), lambda i: (i, 0))],
        out_specs=pl.BlockSpec((tb, 2 * f), lambda i: (i, 0)),
        compiler_params=pltpu.CompilerParams(
            dimension_semantics=("parallel",),
            vmem_limit_bytes=_VMEM_LIMIT_BYTES,
        ),
        cost_estimate=pl.CostEstimate(
            flops=0,
            transcendentals=2 * b * f,
            bytes_accessed=3 * b * f * itemsize,
        ),
    )(x_flat)
    return out


def model_forward(x):
    """JAX/Pallas equivalent of the PyTorch Model.forward.

    x: (B, ...) float32 -> out: (B, 2 * prod(rest)) float32
    """
    b = x.shape[0]
    x_flat = x.reshape(b, -1)  # glue: view(x.shape[0], -1)
    f = x_flat.shape[-1]

    if b * f < _PALLAS_MIN_ELEMS:
        # Tiny inputs: XLA-fused elementwise path beats kernel launch overhead.
        t = jnp.tanh(jnp.tanh(x_flat))
        return jnp.concatenate([t, t], axis=-1)

    return _double_tanh_dup_pallas(x_flat)


def _reference(x):
    flat = x.reshape(x.shape[0], -1)
    y1 = jnp.tanh(flat)
    y2 = jnp.tanh(flat)
    return jnp.tanh(jnp.concatenate((y1, y2), axis=-1))


if __name__ == "__main__":
    key = jax.random.PRNGKey(0)
    k1, k2 = jax.random.split(key)

    # 1) Spec-sized input (torch.randn(6, 3, 4)) -> tiny-input fallback path.
    x_small = jax.random.normal(k1, (6, 3, 4), dtype=jnp.float32)
    out_small = jax.block_until_ready(model_forward(x_small))
    ref_small = _reference(x_small)
    assert out_small.shape == ref_small.shape == (6, 24)
    assert jnp.allclose(out_small, ref_small, atol=1e-5, rtol=1e-5)

    # 2) Larger input exercising the tiled Pallas kernel
    #    (flat F = 16*96 = 1536, multiple of 128 -> unmasked slab stores;
    #     row grid has a partial tail block to exercise masked writeback).
    x_big = jax.random.normal(k2, (512, 16, 96), dtype=jnp.float32)
    out_big = jax.block_until_ready(model_forward(x_big))
    ref_big = _reference(x_big)
    assert out_big.shape == ref_big.shape == (512, 2 * 16 * 96)
    assert jnp.allclose(out_big, ref_big, atol=1e-5, rtol=1e-5)

    print("KERNEL_OK")
</pallas_src>

<mosaic_0001>
module attributes {stable_mosaic.version = 11 : i64} {
  func.func @_double_tanh_dup_kernel(%arg0: i32, %arg1: memref<336x1536xf32, #tpu.memory_space<vmem>>, %arg2: memref<336x3072xf32, #tpu.memory_space<vmem>>) attributes {dimension_semantics = [#tpu.dimension_semantics<parallel>], iteration_bounds = array<i64: 2>, scalar_prefetch = 0 : i64, scratch_operands = 0 : i64, tpu.core_type = #tpu.core_type<tc>, window_params = [{transform_indices = @transform_0, window_bounds = array<i64: 336, 1536>}, {transform_indices = @transform_1, window_bounds = array<i64: 336, 3072>}]} {
    %c0 = arith.constant 0 : index
    %c0_0 = arith.constant 0 : index
    %0 = vector.load %arg1[%c0, %c0_0] : memref<336x1536xf32, #tpu.memory_space<vmem>>, vector<336x1536xf32>
    %1 = math.tanh %0 : vector<336x1536xf32>
    %2 = math.tanh %1 : vector<336x1536xf32>
    %c0_1 = arith.constant 0 : index
    %c0_2 = arith.constant 0 : index
    %3 = vector.load %arg2[%c0_1, %c0_2] : memref<336x3072xf32, #tpu.memory_space<vmem>>, vector<336x1536xf32>
    tpu.vector_store %arg2[%c0_1, %c0_2], %2 {strides = array<i32>} : memref<336x3072xf32, #tpu.memory_space<vmem>>, vector<336x1536xf32>,
    %c0_3 = arith.constant 0 : index
    %c1536 = arith.constant 1536 : index
    %4 = vector.load %arg2[%c0_3, %c1536] : memref<336x3072xf32, #tpu.memory_space<vmem>>, vector<336x1536xf32>
    tpu.vector_store %arg2[%c0_3, %c1536], %2 {strides = array<i32>} : memref<336x3072xf32, #tpu.memory_space<vmem>>, vector<336x1536xf32>,
    return
  }
  func.func @transform_0(%arg0: i32) -> (i32, i32) {
    %c0_i32 = arith.constant 0 : i32
    %c0_i32_0 = arith.constant 0 : i32
    return %arg0, %c0_i32 : i32, i32
  }
  func.func @transform_1(%arg0: i32) -> (i32, i32) {
    %c0_i32 = arith.constant 0 : i32
    %c0_i32_0 = arith.constant 0 : i32
    return %arg0, %c0_i32 : i32, i32
  }
}

</mosaic_0001>

<bundles_post_ra>
// kernel: tpu_custom_call.1
= control target key start
LH: loop header
LB: loop body
LE: loop exit
PB: predicated region body
PF: predicated region fallthrough
CT: control target
= control target key end

     0   :  { %6 = vsyncpa [#allocation3], 0  ;;  %s6652_s0 = inlined_call_operand.hbm [shape: f32[512,1536], index: 0, kind: input, shape index: {}]   ;;  %s6653_s1 = inlined_call_operand.hbm [shape: f32[512,3072], index: 1, kind: output, shape index: {}]  }
   0x1   :  { %8 = vsyncpa [#allocation3 + $0x1], 0 }
   0x2   :  { %9 = vsyncpa [#allocation4], 0 }
   0x3   :  { %11 = vsyncpa [#allocation4 + $0x1], 0  ;;  %s4964_s6 = smov 0   ;;  %s4966_s7 = smov 0  }
   0x4   :  { %s4968_s8 = smov 0   ;;  %s4970_s9 = smov 0  }
   0x5 LB: > { %s4985_s10 = sadd.s32 4294967295, %s4946_s9   ;;  %s2770_s11 = sadd.s32 4294967294, %s4946_s9   ;;  %s4946_s9 = sphi %s4970_s9, %s6663_s9   ;;  %s4942_s8 = sphi %s4968_s8, %s6662_s8   ;;  %s4938_s7 = sphi %s4966_s7, %s6661_s7   ;;  %s4934_s6 = sphi %s4964_s6, %s6660_s6  }
   0x6   : > { %s4989_s12 = sadd.s32 1, %s4946_s9   ;;  %s24_s13 = sadd.s32 1, %s4942_s8 }
   0x7   : > { %s21_s14 = ssub.s32 %s4946_s9, %s4989_s12  ;;  %p31_p0 = scmp.ne.s32.totalorder %s4942_s8, %s4938_s7 }
   0x8   : > { %p22_p1 = scmp.eq.s32.totalorder %s21_s14, 0  ;;  %p32_p2 = scmp.eq.s32.totalorder %s4946_s9, 0 }
   0x9   : > { %p37_p3 = scmp.ne.s32.totalorder %s4938_s7, %s4934_s6  ;;  %p38_p4 = scmp.eq.s32.totalorder %s4985_s10, 0 }
   0xa   : > { %s5001_s15 = scalar_select %p22_p1, %s4942_s8, %s24_s13  }
   0xb   : > { %p33_p5 = por %p32_p2, %p31_p0  ;;  %p5003_p6 = por %p38_p4, %p37_p3 }
   0xc   : > { %p61_p7 = scmp.eq.s32.totalorder %s4985_s10, 1  ;;  %p67_p8 = scmp.eq.s32.totalorder %s2770_s11, 1 }
   0xd   : > { %p6654_p11 = scmp.ge.s32.totalorder %s4946_s9, 2 }
   0xe   : > { %p5008_p9 = por %p61_p7, %p31_p0  ;;  %p5012_p10 = por %p67_p8, %p37_p3 }
   0xf   : > { %83 = sbr.rel (%p6654_p11) target bundleno = 58 (0x3a), region = 16 }
  0x10   : > { %s6657_s18 = scalar_select %p5012_p10, 1, 0 }
  0x16   : > { %86 = sbr.rel (!%p33_p5) target bundleno = 58 (0x3a), region = 20  ;;  %s87_s19 = sand.u32 (%p33_p5), 1, %s4942_s8  }
  0x17   : > { %s92_s20 = smul.u32 (%p33_p5), 42, %s4946_s9  ;;  %s5024_s25 = scalar_lea.sflag (%p33_p5), [#allocation3], %s87_s19 }
  0x18   : > { %s2786_s21 = smul.u32 (%p33_p5), 4032, %s87_s19 }
  0x19   : > { %s93_s22 = ssub.s32 (%p33_p5), 64, %s92_s20 }
  0x1a   : > { %p94_p12 = scmp.lt.s32.totalorder (%p33_p5), %s93_s22, 42  ;;  %s91_s26 = scalar_lea.vmem (%p33_p5), [#allocation2], %s2786_s21 }
  0x1d   : > { %s6665_s22 = smov (!%p94_p12, %s93_s22), 42 }
  0x1e   : > { %s5021_s23 = smul.u32 1536, %s6665_s22 }
  0x20   : > { %s99_s24 = ssub.s32 64512, %s5021_s23 }
  0x21   : > { %100 = vsyncadd %s5024_s25, %s99_s24  ;;  %p2775_p13 = scmp.ne.s32.totalorder %s5021_s23, 0  ;;  %s2797_s27 = smul.u32 64512, %s4946_s9 }
  0x22   : > { %s106_s28 = sshll.u32 %s91_s26, 4  ;;  %s4856_s11 = scalar_lea.hbm %s6652_s0, 98304  ;;  %s5034_s28 = int_to_ptr.vmem [resolvable:$true] %s106_s28 }
  0x23   : > { %s5032_s2 = scalar_lea.hbm %s6652_s0, %s2797_s27 }
  0x24   : > { %s4852_s3 = scalar_lea.hbm %s5032_s2, %s5021_s23  ;;  %p4857_p3 = scmp.lt.u32.totalorder %s5032_s2, %s6652_s0 }
  0x25   : > { %p4853_p0 = scmp.ne.s32.totalorder %s5032_s2, %s4852_s3  ;;  %p4858_p4 = scmp.lt.u32.totalorder %s4856_s11, %s4852_s3 }
  0x26   : > { %p4860_p7 = scmp.lt.u32.totalorder %s4852_s3, %s5032_s2 }
  0x27   : > { %p4854_p1 = pnand %p4853_p0, %p2775_p13  ;;  %p4859_p5 = por %p4858_p4, %p4857_p3 }
  0x29   : > { %p4855_p2 = pneg %p4854_p1  ;;  %p4861_p8 = por %p4860_p7, %p4859_p5 }
  0x2b   : > { %p4862_p12 = pnand %p4861_p8, %p4855_p2 }
  0x2d   : > { %4865 = shalt.err (!%p4862_p12)
}
  0x2e   : > { %s4866_s19 = scalar_lea.vmem %s5034_s28, %s5021_s23  ;;  %s4948_s20 = smov [#allocation2]  }
  0x2f   : > { %p4867_p0 = scmp.ne.s32.totalorder %s5034_s28, %s4866_s19  ;;  %s4870_s21 = sshll.u32 %s4948_s20, 4  ;;  %s4871_s21 = int_to_ptr.vmem [resolvable:$false] %s4870_s21 }
  0x30   : > { %s4872_s22 = scalar_lea.vmem %s4871_s21, 129024  ;;  %p4873_p10 = scmp.lt.s32.totalorder %s5034_s28, %s4871_s21 }
  0x31   : > { %p4868_p1 = pnand %p4867_p0, %p2775_p13  ;;  %p4874_p3 = scmp.lt.s32.totalorder %s4872_s22, %s4866_s19 }
  0x33   : > { %p4869_p11 = pneg %p4868_p1  ;;  %p4875_p4 = por %p4874_p3, %p4873_p10 }
  0x35   : > { %p4876_p5 = pnand %p4875_p4, %p4869_p11 }
  0x37   : > { %4879 = shalt.err (!%p4876_p5)
}
  0x38   : > { %s4949_s24 = smov 1536   ;;  %s4950_s26 = smov 96  }
  0x39   : > { %112 = dma.hbm_to_vmem [thread:$0]  (%p2775_p13), %s5032_s2, %s5021_s23, %s5034_s28, %s5024_s25, %s4949_s24, %s4949_s24, %s4950_s26  }
  0x3a PF: > { %p2778_p2 = scmp.ge.s32.totalorder %s4946_s9, 1  ;;  %p114_p7 = scmp.lt.s32.totalorder %s4946_s9, 3 }
  0x3c   : > { %p115_p8 = pnand %p2778_p2, %p114_p7 }
  0x3d   : > { %s5064_s27 = sand.u32 (!%p115_p8), 1, %s4938_s7  }
  0x3e   : > { %118 = sbr.rel (%p115_p8) target bundleno = 1121 (0x461), region = 24  ;;  %s121_s30 = scalar_lea.sflag (!%p115_p8), [#allocation3], %s5064_s27 }
  0x3f   : > { %s2788_s29 = smul.u32 (!%p115_p8), 4032, %s5064_s27 }
  0x41   : > { %s5068_s3 = scalar_lea.vmem (!%p115_p8), [#allocation2], %s2788_s29 }
  0x45   : > { %4925 = dma.done.wait (%p5003_p6), %s121_s30, 64512  }
  0x46   : > { %4927 = vsyncadd (%p5003_p6), %s121_s30, 4294902784  ;;  %v155_v0 = vld [vmem:[%s5068_s3] sm:$0xff]  ;;  %v156_v1 = vld [vmem:[%s5068_s3 + $0x8] sm:$0xff]  ;;  %s2789_s16 = smul.u32 8064, %s5064_s27  ;;  %s2676_s25 = scalar_lea.sflag [#allocation4], %s5064_s27 }
  0x47   : > { %v157_v2 = vld [vmem:[%s5068_s3 + $0x10] sm:$0xff]  ;;  %2836 = vtanh.f32 %v155_v0  ;;  %v158_v3 = vld [vmem:[%s5068_s3 + $0x18] sm:$0xff]  ;;  %v159_v4 = vld [vmem:[%s5068_s3 + $0x20] sm:$0xff]  ;;  %s2683_s28 = smul.u32 (%p5008_p9), 42, %s4985_s10 }
  0x48   : > { %2838 = vtanh.f32 %v156_v1  ;;  %v160_v5 = vld [vmem:[%s5068_s3 + $0x28] sm:$0xff]  ;;  %v161_v6 = vld [vmem:[%s5068_s3 + $0x30] sm:$0xff]  ;;  %v162_v7 = vld [vmem:[%s5068_s3 + $0x38] sm:$0xff]  ;;  %s5089_s23 = scalar_lea.vmem [#allocation5], %s2789_s16 }
  0x49   : > { %2840 = vtanh.f32 %v157_v2  ;;  %v163_v8 = vld [vmem:[%s5068_s3 + $0x40] sm:$0xff]  ;;  %v164_v9 = vld [vmem:[%s5068_s3 + $0x48] sm:$0xff]  ;;  %v165_v10 = vld [vmem:[%s5068_s3 + $0x50] sm:$0xff]  ;;  %s2684_s2 = ssub.s32 (%p5008_p9), 64, %s2683_s28 }
  0x4a   : > { %2842 = vtanh.f32 %v158_v3  ;;  %v166_v21 = vld [vmem:[%s5068_s3 + $0x58] sm:$0xff]  ;;  %v167_v23 = vld [vmem:[%s5068_s3 + $0x60] sm:$0xff]  ;;  %v168_v25 = vld [vmem:[%s5068_s3 + $0x68] sm:$0xff]  ;;  %p2685_p6 = scmp.lt.s32.totalorder (%p5008_p9), %s2684_s2, 42 }
  0x4b   : > { %2844 = vtanh.f32 %v159_v4  ;;  %v169_v27 = vld [vmem:[%s5068_s3 + $0x70] sm:$0xff]  ;;  %v170_v29 = vld [vmem:[%s5068_s3 + $0x78] sm:$0xff]  ;;  %v171_v31 = vld [vmem:[%s5068_s3 + $0x80] sm:$0xff] }
  0x4c   : > { %2846 = vtanh.f32 %v160_v5  ;;  %v172_v33 = vld [vmem:[%s5068_s3 + $0x88] sm:$0xff]  ;;  %v173_v35 = vld [vmem:[%s5068_s3 + $0x90] sm:$0xff]  ;;  %v174_v37 = vld [vmem:[%s5068_s3 + $0x98] sm:$0xff] }
  0x4d   : > { %2848 = vtanh.f32 %v161_v6  ;;  %v175_v39 = vld [vmem:[%s5068_s3 + $0xa0] sm:$0xff]  ;;  %v176_v41 = vld [vmem:[%s5068_s3 + $0xa8] sm:$0xff]  ;;  %v177_v54 = vld [vmem:[%s5068_s3 + $0xb0] sm:$0xff] }
  0x4e   : > { %2850 = vtanh.f32 %v162_v7  ;;  %v178_v56 = vld [vmem:[%s5068_s3 + $0xb8] sm:$0xff]  ;;  %v179_v58 = vld [vmem:[%s5068_s3 + $0xc0] sm:$0xff]  ;;  %v180_v60 = vld [vmem:[%s5068_s3 + $0xc8] sm:$0xff] }
  0x4f   : > { %2852 = vtanh.f32 %v163_v8  ;;  %v181_v62 = vld [vmem:[%s5068_s3 + $0xd0] sm:$0xff]  ;;  %v182_v0 = vld [vmem:[%s5068_s3 + $0xd8] sm:$0xff]  ;;  %v183_v2 = vld [vmem:[%s5068_s3 + $0xe0] sm:$0xff] }
  0x50   : > { %2854 = vtanh.f32 %v164_v9  ;;  %v184_v4 = vld [vmem:[%s5068_s3 + $0xe8] sm:$0xff]  ;;  %v185_v6 = vld [vmem:[%s5068_s3 + $0xf0] sm:$0xff]  ;;  %v186_v8 = vld [vmem:[%s5068_s3 + $0xf8] sm:$0xff] }
  0x51   : > { %v2837_v11 = vpop.eup %2836  ;;  %2856 = vtanh.f32 %v165_v10  ;;  %v187_v10 = vld [vmem:[%s5068_s3 + $0x100] sm:$0xff] }
  0x52   : > { %v2839_v12 = vpop.eup %2838  ;;  %2858 = vtanh.f32 %v2837_v11 }
  0x53   : > { %v2841_v13 = vpop.eup %2840  ;;  %2860 = vtanh.f32 %v2839_v12 }
  0x54   : > { %v2843_v14 = vpop.eup %2842  ;;  %2862 = vtanh.f32 %v2841_v13 }
  0x55   : > { %v2845_v15 = vpop.eup %2844  ;;  %2864 = vtanh.f32 %v2843_v14 }
  0x56   : > { %v2847_v16 = vpop.eup %2846  ;;  %2866 = vtanh.f32 %v2845_v15 }
  0x57   : > { %v2849_v17 = vpop.eup %2848  ;;  %2868 = vtanh.f32 %v2847_v16 }
  0x58   : > { %v2851_v18 = vpop.eup %2850  ;;  %2870 = vtanh.f32 %v2849_v17 }
  0x59   : > { %v2853_v19 = vpop.eup %2852  ;;  %2872 = vtanh.f32 %v2851_v18 }
  0x5a   : > { %v2855_v20 = vpop.eup %2854  ;;  %2874 = vtanh.f32 %v2853_v19 }
  0x5b   : > { %v2857_v22 = vpop.eup %2856  ;;  %2876 = vtanh.f32 %v2855_v20 }
  0x5c   : > { %v2859_v24 = vpop.eup %2858  ;;  %2878 = vtanh.f32 %v2857_v22 }
  0x5d   : > { %v2861_v26 = vpop.eup %2860  ;;  %1667 = vst [vmem:[%s5089_s23] sm:$0xff] %v2859_v24  ;;  %2171 = vst [vmem:[%s5089_s23 + $0x60] sm:$0xff] %v2859_v24  ;;  %2880 = vtanh.f32 %v166_v21 }
  0x5e   : > { %v2863_v28 = vpop.eup %2862  ;;  %1668 = vst [vmem:[%s5089_s23 + $0x8] sm:$0xff] %v2861_v26  ;;  %2172 = vst [vmem:[%s5089_s23 + $0x68] sm:$0xff] %v2861_v26  ;;  %2882 = vtanh.f32 %v167_v23  ;;  %v188_v23 = vld [vmem:[%s5068_s3 + $0x108] sm:$0xff] }
  0x5f   : > { %v2865_v30 = vpop.eup %2864  ;;  %1669 = vst [vmem:[%s5089_s23 + $0x10] sm:$0xff] %v2863_v28  ;;  %2173 = vst [vmem:[%s5089_s23 + $0x70] sm:$0xff] %v2863_v28  ;;  %2884 = vtanh.f32 %v168_v25  ;;  %v189_v25 = vld [vmem:[%s5068_s3 + $0x110] sm:$0xff] }
  0x60   : > { %v2867_v32 = vpop.eup %2866  ;;  %1670 = vst [vmem:[%s5089_s23 + $0x18] sm:$0xff] %v2865_v30  ;;  %2174 = vst [vmem:[%s5089_s23 + $0x78] sm:$0xff] %v2865_v30  ;;  %2886 = vtanh.f32 %v169_v27  ;;  %v190_v27 = vld [vmem:[%s5068_s3 + $0x118] sm:$0xff] }
  0x61   : > { %v2869_v34 = vpop.eup %2868  ;;  %1671 = vst [vmem:[%s5089_s23 + $0x20] sm:$0xff] %v2867_v32  ;;  %2175 = vst [vmem:[%s5089_s23 + $0x80] sm:$0xff] %v2867_v32  ;;  %2888 = vtanh.f32 %v170_v29  ;;  %v191_v29 = vld [vmem:[%s5068_s3 + $0x120] sm:$0xff] }
  0x62   : > { %v2871_v36 = vpop.eup %2870  ;;  %1672 = vst [vmem:[%s5089_s23 + $0x28] sm:$0xff] %v2869_v34  ;;  %2176 = vst [vmem:[%s5089_s23 + $0x88] sm:$0xff] %v2869_v34  ;;  %2890 = vtanh.f32 %v171_v31  ;;  %v192_v31 = vld [vmem:[%s5068_s3 + $0x128] sm:$0xff] }
  0x63   : > { %v2873_v38 = vpop.eup %2872  ;;  %1673 = vst [vmem:[%s5089_s23 + $0x30] sm:$0xff] %v2871_v36  ;;  %2177 = vst [vmem:[%s5089_s23 + $0x90] sm:$0xff] %v2871_v36  ;;  %2892 = vtanh.f32 %v172_v33  ;;  %v193_v33 = vld [vmem:[%s5068_s3 + $0x130] sm:$0xff] }
  0x64   : > { %v2875_v40 = vpop.eup %2874  ;;  %1674 = vst [vmem:[%s5089_s23 + $0x38] sm:$0xff] %v2873_v38  ;;  %2178 = vst [vmem:[%s5089_s23 + $0x98] sm:$0xff] %v2873_v38  ;;  %2894 = vtanh.f32 %v173_v35  ;;  %v194_v35 = vld [vmem:[%s5068_s3 + $0x138] sm:$0xff] }
  0x65   : > { %v2877_v42 = vpop.eup %2876  ;;  %1675 = vst [vmem:[%s5089_s23 + $0x40] sm:$0xff] %v2875_v40  ;;  %2179 = vst [vmem:[%s5089_s23 + $0xa0] sm:$0xff] %v2875_v40  ;;  %2896 = vtanh.f32 %v174_v37  ;;  %v195_v37 = vld [vmem:[%s5068_s3 + $0x140] sm:$0xff] }
  0x66   : > { %v2879_v43 = vpop.eup %2878  ;;  %1676 = vst [vmem:[%s5089_s23 + $0x48] sm:$0xff] %v2877_v42  ;;  %2180 = vst [vmem:[%s5089_s23 + $0xa8] sm:$0xff] %v2877_v42  ;;  %2898 = vtanh.f32 %v175_v39  ;;  %v196_v39 = vld [vmem:[%s5068_s3 + $0x148] sm:$0xff] }
  0x67   : > { %v2881_v44 = vpop.eup %2880  ;;  %1677 = vst [vmem:[%s5089_s23 + $0x50] sm:$0xff] %v2879_v43  ;;  %2181 = vst [vmem:[%s5089_s23 + $0xb0] sm:$0xff] %v2879_v43  ;;  %2900 = vtanh.f32 %v176_v41  ;;  %v197_v41 = vld [vmem:[%s5068_s3 + $0x150] sm:$0xff]  ;;  %v198_v43 = vld [vmem:[%s5068_s3 + $0x158] sm:$0xff] }
  0x68   : > { %v2883_v45 = vpop.eup %2882  ;;  %2902 = vtanh.f32 %v2881_v44 }
  0x69   : > { %v2885_v46 = vpop.eup %2884  ;;  %2904 = vtanh.f32 %v2883_v45 }
  0x6a   : > { %v2887_v47 = vpop.eup %2886  ;;  %2906 = vtanh.f32 %v2885_v46 }
  0x6b   : > { %v2889_v48 = vpop.eup %2888  ;;  %2908 = vtanh.f32 %v2887_v47 }
  0x6c   : > { %v2891_v49 = vpop.eup %2890  ;;  %2910 = vtanh.f32 %v2889_v48 }
  0x6d   : > { %v2893_v50 = vpop.eup %2892  ;;  %2912 = vtanh.f32 %v2891_v49 }
  0x6e   : > { %v2895_v51 = vpop.eup %2894  ;;  %2914 = vtanh.f32 %v2893_v50 }
  0x6f   : > { %v2897_v52 = vpop.eup %2896  ;;  %2916 = vtanh.f32 %v2895_v51 }
  0x70   : > { %v2899_v53 = vpop.eup %2898  ;;  %2918 = vtanh.f32 %v2897_v52 }
  0x71   : > { %v2901_v55 = vpop.eup %2900  ;;  %2920 = vtanh.f32 %v2899_v53 }
  0x72   : > { %v2903_v57 = vpop.eup %2902  ;;  %2922 = vtanh.f32 %v2901_v55 }
  0x73   : > { %v2905_v59 = vpop.eup %2904  ;;  %1678 = vst [vmem:[%s5089_s23 + $0x58] sm:$0xff] %v2903_v57  ;;  %2182 = vst [vmem:[%s5089_s23 + $0xb8] sm:$0xff] %v2903_v57  ;;  %2924 = vtanh.f32 %v177_v54 }
  0x74   : > { %v2907_v61 = vpop.eup %2906  ;;  %1679 = vst [vmem:[%s5089_s23 + $0xc0] sm:$0xff] %v2905_v59  ;;  %2183 = vst [vmem:[%s5089_s23 + $0x120] sm:$0xff] %v2905_v59  ;;  %2926 = vtanh.f32 %v178_v56  ;;  %v199_v56 = vld [vmem:[%s5068_s3 + $0x160] sm:$0xff] }
  0x75   : > { %v2909_v63 = vpop.eup %2908  ;;  %1680 = vst [vmem:[%s5089_s23 + $0xc8] sm:$0xff] %v2907_v61  ;;  %2184 = vst [vmem:[%s5089_s23 + $0x128] sm:$0xff] %v2907_v61  ;;  %2928 = vtanh.f32 %v179_v58  ;;  %v200_v58 = vld [vmem:[%s5068_s3 + $0x168] sm:$0xff] }
  0x76   : > { %v2911_v1 = vpop.eup %2910  ;;  %1681 = vst [vmem:[%s5089_s23 + $0xd0] sm:$0xff] %v2909_v63  ;;  %2185 = vst [vmem:[%s5089_s23 + $0x130] sm:$0xff] %v2909_v63  ;;  %2930 = vtanh.f32 %v180_v60  ;;  %v201_v60 = vld [vmem:[%s5068_s3 + $0x170] sm:$0xff] }
  0x77   : > { %v2913_v3 = vpop.eup %2912  ;;  %1682 = vst [vmem:[%s5089_s23 + $0xd8] sm:$0xff] %v2911_v1  ;;  %2186 = vst [vmem:[%s5089_s23 + $0x138] sm:$0xff] %v2911_v1  ;;  %2932 = vtanh.f32 %v181_v62  ;;  %v202_v62 = vld [vmem:[%s5068_s3 + $0x178] sm:$0xff] }
  0x78   : > { %v2915_v5 = vpop.eup %2914  ;;  %1683 = vst [vmem:[%s5089_s23 + $0xe0] sm:$0xff] %v2913_v3  ;;  %2187 = vst [vmem:[%s5089_s23 + $0x140] sm:$0xff] %v2913_v3  ;;  %2934 = vtanh.f32 %v182_v0  ;;  %v203_v0 = vld [vmem:[%s5068_s3 + $0x180] sm:$0xff] }
  0x79   : > { %v2917_v7 = vpop.eup %2916  ;;  %1684 = vst [vmem:[%s5089_s23 + $0xe8] sm:$0xff] %v2915_v5  ;;  %2188 = vst [vmem:[%s5089_s23 + $0x148] sm:$0xff] %v2915_v5  ;;  %2936 = vtanh.f32 %v183_v2  ;;  %v204_v2 = vld [vmem:[%s5068_s3 + $0x188] sm:$0xff] }
  0x7a   : > { %v2919_v9 = vpop.eup %2918  ;;  %1685 = vst [vmem:[%s5089_s23 + $0xf0] sm:$0xff] %v2917_v7  ;;  %2189 = vst [vmem:[%s5089_s23 + $0x150] sm:$0xff] %v2917_v7  ;;  %2938 = vtanh.f32 %v184_v4  ;;  %v205_v4 = vld [vmem:[%s5068_s3 + $0x190] sm:$0xff] }
  0x7b   : > { %v2921_v11 = vpop.eup %2920  ;;  %1686 = vst [vmem:[%s5089_s23 + $0xf8] sm:$0xff] %v2919_v9  ;;  %2190 = vst [vmem:[%s5089_s23 + $0x158] sm:$0xff] %v2919_v9  ;;  %2940 = vtanh.f32 %v185_v6  ;;  %v206_v6 = vld [vmem:[%s5068_s3 + $0x198] sm:$0xff] }
  0x7c   : > { %v2923_v12 = vpop.eup %2922  ;;  %1687 = vst [vmem:[%s5089_s23 + $0x100] sm:$0xff] %v2921_v11  ;;  %2191 = vst [vmem:[%s5089_s23 + $0x160] sm:$0xff] %v2921_v11  ;;  %2942 = vtanh.f32 %v186_v8  ;;  %v207_v8 = vld [vmem:[%s5068_s3 + $0x1a0] sm:$0xff] }
  0x7d   : > { %v2925_v13 = vpop.eup %2924  ;;  %1688 = vst [vmem:[%s5089_s23 + $0x108] sm:$0xff] %v2923_v12  ;;  %2192 = vst [vmem:[%s5089_s23 + $0x168] sm:$0xff] %v2923_v12  ;;  %2944 = vtanh.f32 %v187_v10  ;;  %v208_v10 = vld [vmem:[%s5068_s3 + $0x1a8] sm:$0xff]  ;;  %v209_v12 = vld [vmem:[%s5068_s3 + $0x1b0] sm:$0xff] }
  0x7e   : > { %v2927_v14 = vpop.eup %2926  ;;  %2946 = vtanh.f32 %v2925_v13 }
  0x7f   : > { %v2929_v15 = vpop.eup %2928  ;;  %2948 = vtanh.f32 %v2927_v14 }
  0x80   : > { %v2931_v16 = vpop.eup %2930  ;;  %2950 = vtanh.f32 %v2929_v15 }
  0x81   : > { %v2933_v17 = vpop.eup %2932  ;;  %2952 = vtanh.f32 %v2931_v16 }
  0x82   : > { %v2935_v18 = vpop.eup %2934  ;;  %2954 = vtanh.f32 %v2933_v17 }
  0x83   : > { %v2937_v19 = vpop.eup %2936  ;;  %2956 = vtanh.f32 %v2935_v18 }
  0x84   : > { %v2939_v20 = vpop.eup %2938  ;;  %2958 = vtanh.f32 %v2937_v19 }
  0x85   : > { %v2941_v21 = vpop.eup %2940  ;;  %2960 = vtanh.f32 %v2939_v20 }
  0x86   : > { %v2943_v22 = vpop.eup %2942  ;;  %2962 = vtanh.f32 %v2941_v21 }
  0x87   : > { %v2945_v24 = vpop.eup %2944  ;;  %2964 = vtanh.f32 %v2943_v22 }
  0x88   : > { %v2947_v26 = vpop.eup %2946  ;;  %2966 = vtanh.f32 %v2945_v24 }
  0x89   : > { %v2949_v28 = vpop.eup %2948  ;;  %1689 = vst [vmem:[%s5089_s23 + $0x110] sm:$0xff] %v2947_v26  ;;  %2193 = vst [vmem:[%s5089_s23 + $0x170] sm:$0xff] %v2947_v26  ;;  %2968 = vtanh.f32 %v188_v23 }
  0x8a   : > { %v2951_v30 = vpop.eup %2950  ;;  %1690 = vst [vmem:[%s5089_s23 + $0x118] sm:$0xff] %v2949_v28  ;;  %2194 = vst [vmem:[%s5089_s23 + $0x178] sm:$0xff] %v2949_v28  ;;  %2970 = vtanh.f32 %v189_v25  ;;  %v210_v25 = vld [vmem:[%s5068_s3 + $0x1b8] sm:$0xff] }
  0x8b   : > { %v2953_v32 = vpop.eup %2952  ;;  %1691 = vst [vmem:[%s5089_s23 + $0x180] sm:$0xff] %v2951_v30  ;;  %2195 = vst [vmem:[%s5089_s23 + $0x1e0] sm:$0xff] %v2951_v30  ;;  %2972 = vtanh.f32 %v190_v27  ;;  %v211_v27 = vld [vmem:[%s5068_s3 + $0x1c0] sm:$0xff] }
  0x8c   : > { %v2955_v34 = vpop.eup %2954  ;;  %1692 = vst [vmem:[%s5089_s23 + $0x188] sm:$0xff] %v2953_v32  ;;  %2196 = vst [vmem:[%s5089_s23 + $0x1e8] sm:$0xff] %v2953_v32  ;;  %2974 = vtanh.f32 %v191_v29  ;;  %v212_v29 = vld [vmem:[%s5068_s3 + $0x1c8] sm:$0xff] }
  0x8d   : > { %v2957_v36 = vpop.eup %2956  ;;  %1693 = vst [vmem:[%s5089_s23 + $0x190] sm:$0xff] %v2955_v34  ;;  %2197 = vst [vmem:[%s5089_s23 + $0x1f0] sm:$0xff] %v2955_v34  ;;  %2976 = vtanh.f32 %v192_v31  ;;  %v213_v31 = vld [vmem:[%s5068_s3 + $0x1d0] sm:$0xff] }
  0x8e   : > { %v2959_v38 = vpop.eup %2958  ;;  %1694 = vst [vmem:[%s5089_s23 + $0x198] sm:$0xff] %v2957_v36  ;;  %2198 = vst [vmem:[%s5089_s23 + $0x1f8] sm:$0xff] %v2957_v36  ;;  %2978 = vtanh.f32 %v193_v33  ;;  %v214_v33 = vld [vmem:[%s5068_s3 + $0x1d8] sm:$0xff] }
  0x8f   : > { %v2961_v40 = vpop.eup %2960  ;;  %1695 = vst [vmem:[%s5089_s23 + $0x1a0] sm:$0xff] %v2959_v38  ;;  %2199 = vst [vmem:[%s5089_s23 + $0x200] sm:$0xff] %v2959_v38  ;;  %2980 = vtanh.f32 %v194_v35  ;;  %v215_v35 = vld [vmem:[%s5068_s3 + $0x1e0] sm:$0xff] }
  0x90   : > { %v2963_v42 = vpop.eup %2962  ;;  %1696 = vst [vmem:[%s5089_s23 + $0x1a8] sm:$0xff] %v2961_v40  ;;  %2200 = vst [vmem:[%s5089_s23 + $0x208] sm:$0xff] %v2961_v40  ;;  %2982 = vtanh.f32 %v195_v37  ;;  %v216_v37 = vld [vmem:[%s5068_s3 + $0x1e8] sm:$0xff] }
  0x91   : > { %v2965_v44 = vpop.eup %2964  ;;  %1697 = vst [vmem:[%s5089_s23 + $0x1b0] sm:$0xff] %v2963_v42  ;;  %2201 = vst [vmem:[%s5089_s23 + $0x210] sm:$0xff] %v2963_v42  ;;  %2984 = vtanh.f32 %v196_v39  ;;  %v217_v39 = vld [vmem:[%s5068_s3 + $0x1f0] sm:$0xff] }
  0x92   : > { %v2967_v45 = vpop.eup %2966  ;;  %1698 = vst [vmem:[%s5089_s23 + $0x1b8] sm:$0xff] %v2965_v44  ;;  %2202 = vst [vmem:[%s5089_s23 + $0x218] sm:$0xff] %v2965_v44  ;;  %2986 = vtanh.f32 %v197_v41  ;;  %v218_v41 = vld [vmem:[%s5068_s3 + $0x1f8] sm:$0xff] }
  0x93   : > { %v2969_v46 = vpop.eup %2968  ;;  %1699 = vst [vmem:[%s5089_s23 + $0x1c0] sm:$0xff] %v2967_v45  ;;  %2203 = vst [vmem:[%s5089_s23 + $0x220] sm:$0xff] %v2967_v45  ;;  %2988 = vtanh.f32 %v198_v43  ;;  %v219_v43 = vld [vmem:[%s5068_s3 + $0x200] sm:$0xff]  ;;  %v220_v45 = vld [vmem:[%s5068_s3 + $0x208] sm:$0xff] }
  0x94   : > { %v2971_v47 = vpop.eup %2970  ;;  %2990 = vtanh.f32 %v2969_v46 }
  0x95   : > { %v2973_v48 = vpop.eup %2972  ;;  %2992 = vtanh.f32 %v2971_v47 }
  0x96   : > { %v2975_v49 = vpop.eup %2974  ;;  %2994 = vtanh.f32 %v2973_v48 }
  0x97   : > { %v2977_v50 = vpop.eup %2976  ;;  %2996 = vtanh.f32 %v2975_v49 }
  0x98   : > { %v2979_v51 = vpop.eup %2978  ;;  %2998 = vtanh.f32 %v2977_v50 }
  0x99   : > { %v2981_v52 = vpop.eup %2980  ;;  %3000 = vtanh.f32 %v2979_v51 }
  0x9a   : > { %v2983_v53 = vpop.eup %2982  ;;  %3002 = vtanh.f32 %v2981_v52 }
  0x9b   : > { %v2985_v54 = vpop.eup %2984  ;;  %3004 = vtanh.f32 %v2983_v53 }
  0x9c   : > { %v2987_v55 = vpop.eup %2986  ;;  %3006 = vtanh.f32 %v2985_v54 }
  0x9d   : > { %v2989_v57 = vpop.eup %2988  ;;  %3008 = vtanh.f32 %v2987_v55 }
  0x9e   : > { %v2991_v59 = vpop.eup %2990  ;;  %3010 = vtanh.f32 %v2989_v57 }
  0x9f   : > { %v2993_v61 = vpop.eup %2992  ;;  %1700 = vst [vmem:[%s5089_s23 + $0x1c8] sm:$0xff] %v2991_v59  ;;  %2204 = vst [vmem:[%s5089_s23 + $0x228] sm:$0xff] %v2991_v59  ;;  %3012 = vtanh.f32 %v199_v56 }
  0xa0   : > { %v2995_v63 = vpop.eup %2994  ;;  %1701 = vst [vmem:[%s5089_s23 + $0x1d0] sm:$0xff] %v2993_v61  ;;  %2205 = vst [vmem:[%s5089_s23 + $0x230] sm:$0xff] %v2993_v61  ;;  %3014 = vtanh.f32 %v200_v58  ;;  %v221_v58 = vld [vmem:[%s5068_s3 + $0x210] sm:$0xff] }
  0xa1   : > { %v2997_v1 = vpop.eup %2996  ;;  %1702 = vst [vmem:[%s5089_s23 + $0x1d8] sm:$0xff] %v2995_v63  ;;  %2206 = vst [vmem:[%s5089_s23 + $0x238] sm:$0xff] %v2995_v63  ;;  %3016 = vtanh.f32 %v201_v60  ;;  %v222_v60 = vld [vmem:[%s5068_s3 + $0x218] sm:$0xff] }
  0xa2   : > { %v2999_v3 = vpop.eup %2998  ;;  %1703 = vst [vmem:[%s5089_s23 + $0x240] sm:$0xff] %v2997_v1  ;;  %2207 = vst [vmem:[%s5089_s23 + $0x2a0] sm:$0xff] %v2997_v1  ;;  %3018 = vtanh.f32 %v202_v62  ;;  %v223_v62 = vld [vmem:[%s5068_s3 + $0x220] sm:$0xff] }
  0xa3   : > { %v3001_v5 = vpop.eup %3000  ;;  %1704 = vst [vmem:[%s5089_s23 + $0x248] sm:$0xff] %v2999_v3  ;;  %2208 = vst [vmem:[%s5089_s23 + $0x2a8] sm:$0xff] %v2999_v3  ;;  %3020 = vtanh.f32 %v203_v0  ;;  %v224_v0 = vld [vmem:[%s5068_s3 + $0x228] sm:$0xff] }
  0xa4   : > { %v3003_v7 = vpop.eup %3002  ;;  %1705 = vst [vmem:[%s5089_s23 + $0x250] sm:$0xff] %v3001_v5  ;;  %2209 = vst [vmem:[%s5089_s23 + $0x2b0] sm:$0xff] %v3001_v5  ;;  %3022 = vtanh.f32 %v204_v2  ;;  %v225_v2 = vld [vmem:[%s5068_s3 + $0x230] sm:$0xff] }
  0xa5   : > { %v3005_v9 = vpop.eup %3004  ;;  %1706 = vst [vmem:[%s5089_s23 + $0x258] sm:$0xff] %v3003_v7  ;;  %2210 = vst [vmem:[%s5089_s23 + $0x2b8] sm:$0xff] %v3003_v7  ;;  %3024 = vtanh.f32 %v205_v4  ;;  %v226_v4 = vld [vmem:[%s5068_s3 + $0x238] sm:$0xff] }
  0xa6   : > { %v3007_v11 = vpop.eup %3006  ;;  %1707 = vst [vmem:[%s5089_s23 + $0x260] sm:$0xff] %v3005_v9  ;;  %2211 = vst [vmem:[%s5089_s23 + $0x2c0] sm:$0xff] %v3005_v9  ;;  %3026 = vtanh.f32 %v206_v6  ;;  %v227_v6 = vld [vmem:[%s5068_s3 + $0x240] sm:$0xff] }
  0xa7   : > { %v3009_v13 = vpop.eup %3008  ;;  %1708 = vst [vmem:[%s5089_s23 + $0x268] sm:$0xff] %v3007_v11  ;;  %2212 = vst [vmem:[%s5089_s23 + $0x2c8] sm:$0xff] %v3007_v11  ;;  %3028 = vtanh.f32 %v207_v8  ;;  %v228_v8 = vld [vmem:[%s5068_s3 + $0x248] sm:$0xff] }
  0xa8   : > { %v3011_v14 = vpop.eup %3010  ;;  %1709 = vst [vmem:[%s5089_s23 + $0x270] sm:$0xff] %v3009_v13  ;;  %2213 = vst [vmem:[%s5089_s23 + $0x2d0] sm:$0xff] %v3009_v13  ;;  %3030 = vtanh.f32 %v208_v10  ;;  %v229_v10 = vld [vmem:[%s5068_s3 + $0x250] sm:$0xff] }
  0xa9   : > { %v3013_v15 = vpop.eup %3012  ;;  %1710 = vst [vmem:[%s5089_s23 + $0x278] sm:$0xff] %v3011_v14  ;;  %2214 = vst [vmem:[%s5089_s23 + $0x2d8] sm:$0xff] %v3011_v14  ;;  %3032 = vtanh.f32 %v209_v12  ;;  %v230_v12 = vld [vmem:[%s5068_s3 + $0x258] sm:$0xff]  ;;  %v231_v14 = vld [vmem:[%s5068_s3 + $0x260] sm:$0xff] }
  0xaa   : > { %v3015_v16 = vpop.eup %3014  ;;  %3034 = vtanh.f32 %v3013_v15 }
  0xab   : > { %v3017_v17 = vpop.eup %3016  ;;  %3036 = vtanh.f32 %v3015_v16 }
  0xac   : > { %v3019_v18 = vpop.eup %3018  ;;  %3038 = vtanh.f32 %v3017_v17 }
  0xad   : > { %v3021_v19 = vpop.eup %3020  ;;  %3040 = vtanh.f32 %v3019_v18 }
  0xae   : > { %v3023_v20 = vpop.eup %3022  ;;  %3042 = vtanh.f32 %v3021_v19 }
  0xaf   : > { %v3025_v21 = vpop.eup %3024  ;;  %3044 = vtanh.f32 %v3023_v20 }
  0xb0   : > { %v3027_v22 = vpop.eup %3026  ;;  %3046 = vtanh.f32 %v3025_v21 }
  0xb1   : > { %v3029_v23 = vpop.eup %3028  ;;  %3048 = vtanh.f32 %v3027_v22 }
  0xb2   : > { %v3031_v24 = vpop.eup %3030  ;;  %3050 = vtanh.f32 %v3029_v23 }
  0xb3   : > { %v3033_v26 = vpop.eup %3032  ;;  %3052 = vtanh.f32 %v3031_v24 }
  0xb4   : > { %v3035_v28 = vpop.eup %3034  ;;  %3054 = vtanh.f32 %v3033_v26 }
  0xb5   : > { %v3037_v30 = vpop.eup %3036  ;;  %1711 = vst [vmem:[%s5089_s23 + $0x280] sm:$0xff] %v3035_v28  ;;  %2215 = vst [vmem:[%s5089_s23 + $0x2e0] sm:$0xff] %v3035_v28  ;;  %3056 = vtanh.f32 %v210_v25 }
  0xb6   : > { %v3039_v32 = vpop.eup %3038  ;;  %1712 = vst [vmem:[%s5089_s23 + $0x288] sm:$0xff] %v3037_v30  ;;  %2216 = vst [vmem:[%s5089_s23 + $0x2e8] sm:$0xff] %v3037_v30  ;;  %3058 = vtanh.f32 %v211_v27  ;;  %v232_v27 = vld [vmem:[%s5068_s3 + $0x268] sm:$0xff] }
  0xb7   : > { %v3041_v34 = vpop.eup %3040  ;;  %1713 = vst [vmem:[%s5089_s23 + $0x290] sm:$0xff] %v3039_v32  ;;  %2217 = vst [vmem:[%s5089_s23 + $0x2f0] sm:$0xff] %v3039_v32  ;;  %3060 = vtanh.f32 %v212_v29  ;;  %v233_v29 = vld [vmem:[%s5068_s3 + $0x270] sm:$0xff] }
  0xb8   : > { %v3043_v36 = vpop.eup %3042  ;;  %1714 = vst [vmem:[%s5089_s23 + $0x298] sm:$0xff] %v3041_v34  ;;  %2218 = vst [vmem:[%s5089_s23 + $0x2f8] sm:$0xff] %v3041_v34  ;;  %3062 = vtanh.f32 %v213_v31  ;;  %v234_v31 = vld [vmem:[%s5068_s3 + $0x278] sm:$0xff] }
  0xb9   : > { %v3045_v38 = vpop.eup %3044  ;;  %1715 = vst [vmem:[%s5089_s23 + $0x300] sm:$0xff] %v3043_v36  ;;  %2219 = vst [vmem:[%s5089_s23 + $0x360] sm:$0xff] %v3043_v36  ;;  %3064 = vtanh.f32 %v214_v33  ;;  %v235_v33 = vld [vmem:[%s5068_s3 + $0x280] sm:$0xff] }
  0xba   : > { %v3047_v40 = vpop.eup %3046  ;;  %1716 = vst [vmem:[%s5089_s23 + $0x308] sm:$0xff] %v3045_v38  ;;  %2220 = vst [vmem:[%s5089_s23 + $0x368] sm:$0xff] %v3045_v38  ;;  %3066 = vtanh.f32 %v215_v35  ;;  %v236_v35 = vld [vmem:[%s5068_s3 + $0x288] sm:$0xff] }
  0xbb   : > { %v3049_v42 = vpop.eup %3048  ;;  %1717 = vst [vmem:[%s5089_s23 + $0x310] sm:$0xff] %v3047_v40  ;;  %2221 = vst [vmem:[%s5089_s23 + $0x370] sm:$0xff] %v3047_v40  ;;  %3068 = vtanh.f32 %v216_v37  ;;  %v237_v37 = vld [vmem:[%s5068_s3 + $0x290] sm:$0xff] }
  0xbc   : > { %v3051_v44 = vpop.eup %3050  ;;  %1718 = vst [vmem:[%s5089_s23 + $0x318] sm:$0xff] %v3049_v42  ;;  %2222 = vst [vmem:[%s5089_s23 + $0x378] sm:$0xff] %v3049_v42  ;;  %3070 = vtanh.f32 %v217_v39  ;;  %v238_v39 = vld [vmem:[%s5068_s3 + $0x298] sm:$0xff] }
  0xbd   : > { %v3053_v46 = vpop.eup %3052  ;;  %1719 = vst [vmem:[%s5089_s23 + $0x320] sm:$0xff] %v3051_v44  ;;  %2223 = vst [vmem:[%s5089_s23 + $0x380] sm:$0xff] %v3051_v44  ;;  %3072 = vtanh.f32 %v218_v41  ;;  %v239_v41 = vld [vmem:[%s5068_s3 + $0x2a0] sm:$0xff] }
  0xbe   : > { %v3055_v47 = vpop.eup %3054  ;;  %1720 = vst [vmem:[%s5089_s23 + $0x328] sm:$0xff] %v3053_v46  ;;  %2224 = vst [vmem:[%s5089_s23 + $0x388] sm:$0xff] %v3053_v46  ;;  %3074 = vtanh.f32 %v219_v43  ;;  %v240_v43 = vld [vmem:[%s5068_s3 + $0x2a8] sm:$0xff] }
  0xbf   : > { %v3057_v48 = vpop.eup %3056  ;;  %1721 = vst [vmem:[%s5089_s23 + $0x330] sm:$0xff] %v3055_v47  ;;  %2225 = vst [vmem:[%s5089_s23 + $0x390] sm:$0xff] %v3055_v47  ;;  %3076 = vtanh.f32 %v220_v45  ;;  %v241_v45 = vld [vmem:[%s5068_s3 + $0x2b0] sm:$0xff]  ;;  %v242_v47 = vld [vmem:[%s5068_s3 + $0x2b8] sm:$0xff] }
  0xc0   : > { %v3059_v49 = vpop.eup %3058  ;;  %3078 = vtanh.f32 %v3057_v48 }
  0xc1   : > { %v3061_v50 = vpop.eup %3060  ;;  %3080 = vtanh.f32 %v3059_v49 }
  0xc2   : > { %v3063_v51 = vpop.eup %3062  ;;  %3082 = vtanh.f32 %v3061_v50 }
  0xc3   : > { %v3065_v52 = vpop.eup %3064  ;;  %3084 = vtanh.f32 %v3063_v51 }
  0xc4   : > { %v3067_v53 = vpop.eup %3066  ;;  %3086 = vtanh.f32 %v3065_v52 }
  0xc5   : > { %v3069_v54 = vpop.eup %3068  ;;  %3088 = vtanh.f32 %v3067_v53 }
  0xc6   : > { %v3071_v55 = vpop.eup %3070  ;;  %3090 = vtanh.f32 %v3069_v54 }
  0xc7   : > { %v3073_v56 = vpop.eup %3072  ;;  %3092 = vtanh.f32 %v3071_v55 }
  0xc8   : > { %v3075_v57 = vpop.eup %3074  ;;  %3094 = vtanh.f32 %v3073_v56 }
  0xc9   : > { %v3077_v59 = vpop.eup %3076  ;;  %3096 = vtanh.f32 %v3075_v57 }
  0xca   : > { %v3079_v61 = vpop.eup %3078  ;;  %3098 = vtanh.f32 %v3077_v59 }
  0xcb   : > { %v3081_v63 = vpop.eup %3080  ;;  %1722 = vst [vmem:[%s5089_s23 + $0x338] sm:$0xff] %v3079_v61  ;;  %2226 = vst [vmem:[%s5089_s23 + $0x398] sm:$0xff] %v3079_v61  ;;  %3100 = vtanh.f32 %v221_v58 }
  0xcc   : > { %v3083_v1 = vpop.eup %3082  ;;  %1723 = vst [vmem:[%s5089_s23 + $0x340] sm:$0xff] %v3081_v63  ;;  %2227 = vst [vmem:[%s5089_s23 + $0x3a0] sm:$0xff] %v3081_v63  ;;  %3102 = vtanh.f32 %v222_v60  ;;  %v243_v60 = vld [vmem:[%s5068_s3 + $0x2c0] sm:$0xff] }
  0xcd   : > { %v3085_v3 = vpop.eup %3084  ;;  %1724 = vst [vmem:[%s5089_s23 + $0x348] sm:$0xff] %v3083_v1  ;;  %2228 = vst [vmem:[%s5089_s23 + $0x3a8] sm:$0xff] %v3083_v1  ;;  %3104 = vtanh.f32 %v223_v62  ;;  %v244_v62 = vld [vmem:[%s5068_s3 + $0x2c8] sm:$0xff] }
  0xce   : > { %v3087_v5 = vpop.eup %3086  ;;  %1725 = vst [vmem:[%s5089_s23 + $0x350] sm:$0xff] %v3085_v3  ;;  %2229 = vst [vmem:[%s5089_s23 + $0x3b0] sm:$0xff] %v3085_v3  ;;  %3106 = vtanh.f32 %v224_v0  ;;  %v245_v0 = vld [vmem:[%s5068_s3 + $0x2d0] sm:$0xff] }
  0xcf   : > { %v3089_v7 = vpop.eup %3088  ;;  %1726 = vst [vmem:[%s5089_s23 + $0x358] sm:$0xff] %v3087_v5  ;;  %2230 = vst [vmem:[%s5089_s23 + $0x3b8] sm:$0xff] %v3087_v5  ;;  %3108 = vtanh.f32 %v225_v2  ;;  %v246_v2 = vld [vmem:[%s5068_s3 + $0x2d8] sm:$0xff] }
  0xd0   : > { %v3091_v9 = vpop.eup %3090  ;;  %1727 = vst [vmem:[%s5089_s23 + $0x3c0] sm:$0xff] %v3089_v7  ;;  %2231 = vst [vmem:[%s5089_s23 + $0x420] sm:$0xff] %v3089_v7  ;;  %3110 = vtanh.f32 %v226_v4  ;;  %v247_v4 = vld [vmem:[%s5068_s3 + $0x2e0] sm:$0xff] }
  0xd1   : > { %v3093_v11 = vpop.eup %3092  ;;  %1728 = vst [vmem:[%s5089_s23 + $0x3c8] sm:$0xff] %v3091_v9  ;;  %2232 = vst [vmem:[%s5089_s23 + $0x428] sm:$0xff] %v3091_v9  ;;  %3112 = vtanh.f32 %v227_v6  ;;  %v248_v6 = vld [vmem:[%s5068_s3 + $0x2e8] sm:$0xff] }
  0xd2   : > { %v3095_v13 = vpop.eup %3094  ;;  %1729 = vst [vmem:[%s5089_s23 + $0x3d0] sm:$0xff] %v3093_v11  ;;  %2233 = vst [vmem:[%s5089_s23 + $0x430] sm:$0xff] %v3093_v11  ;;  %3114 = vtanh.f32 %v228_v8  ;;  %v249_v8 = vld [vmem:[%s5068_s3 + $0x2f0] sm:$0xff] }
  0xd3   : > { %v3097_v15 = vpop.eup %3096  ;;  %1730 = vst [vmem:[%s5089_s23 + $0x3d8] sm:$0xff] %v3095_v13  ;;  %2234 = vst [vmem:[%s5089_s23 + $0x438] sm:$0xff] %v3095_v13  ;;  %3116 = vtanh.f32 %v229_v10  ;;  %v250_v10 = vld [vmem:[%s5068_s3 + $0x2f8] sm:$0xff] }
  0xd4   : > { %v3099_v16 = vpop.eup %3098  ;;  %1731 = vst [vmem:[%s5089_s23 + $0x3e0] sm:$0xff] %v3097_v15  ;;  %2235 = vst [vmem:[%s5089_s23 + $0x440] sm:$0xff] %v3097_v15  ;;  %3118 = vtanh.f32 %v230_v12  ;;  %v251_v12 = vld [vmem:[%s5068_s3 + $0x300] sm:$0xff] }
  0xd5   : > { %v3101_v17 = vpop.eup %3100  ;;  %1732 = vst [vmem:[%s5089_s23 + $0x3e8] sm:$0xff] %v3099_v16  ;;  %2236 = vst [vmem:[%s5089_s23 + $0x448] sm:$0xff] %v3099_v16  ;;  %3120 = vtanh.f32 %v231_v14  ;;  %v252_v14 = vld [vmem:[%s5068_s3 + $0x308] sm:$0xff]  ;;  %v253_v16 = vld [vmem:[%s5068_s3 + $0x310] sm:$0xff] }
  0xd6   : > { %v3103_v18 = vpop.eup %3102  ;;  %3122 = vtanh.f32 %v3101_v17 }
  0xd7   : > { %v3105_v19 = vpop.eup %3104  ;;  %3124 = vtanh.f32 %v3103_v18 }
  0xd8   : > { %v3107_v20 = vpop.eup %3106  ;;  %3126 = vtanh.f32 %v3105_v19 }
  0xd9   : > { %v3109_v21 = vpop.eup %3108  ;;  %3128 = vtanh.f32 %v3107_v20 }
  0xda   : > { %v3111_v22 = vpop.eup %3110  ;;  %3130 = vtanh.f32 %v3109_v21 }
  0xdb   : > { %v3113_v23 = vpop.eup %3112  ;;  %3132 = vtanh.f32 %v3111_v22 }
  0xdc   : > { %v3115_v24 = vpop.eup %3114  ;;  %3134 = vtanh.f32 %v3113_v23 }
  0xdd   : > { %v3117_v25 = vpop.eup %3116  ;;  %3136 = vtanh.f32 %v3115_v24 }
  0xde   : > { %v3119_v26 = vpop.eup %3118  ;;  %3138 = vtanh.f32 %v3117_v25 }
  0xdf   : > { %v3121_v28 = vpop.eup %3120  ;;  %3140 = vtanh.f32 %v3119_v26 }
  0xe0   : > { %v3123_v30 = vpop.eup %3122  ;;  %3142 = vtanh.f32 %v3121_v28 }
  0xe1   : > { %v3125_v32 = vpop.eup %3124  ;;  %1733 = vst [vmem:[%s5089_s23 + $0x3f0] sm:$0xff] %v3123_v30  ;;  %2237 = vst [vmem:[%s5089_s23 + $0x450] sm:$0xff] %v3123_v30  ;;  %3144 = vtanh.f32 %v232_v27 }
  0xe2   : > { %v3127_v34 = vpop.eup %3126  ;;  %1734 = vst [vmem:[%s5089_s23 + $0x3f8] sm:$0xff] %v3125_v32  ;;  %2238 = vst [vmem:[%s5089_s23 + $0x458] sm:$0xff] %v3125_v32  ;;  %3146 = vtanh.f32 %v233_v29  ;;  %v254_v29 = vld [vmem:[%s5068_s3 + $0x318] sm:$0xff] }
  0xe3   : > { %v3129_v36 = vpop.eup %3128  ;;  %1735 = vst [vmem:[%s5089_s23 + $0x400] sm:$0xff] %v3127_v34  ;;  %2239 = vst [vmem:[%s5089_s23 + $0x460] sm:$0xff] %v3127_v34  ;;  %3148 = vtanh.f32 %v234_v31  ;;  %v255_v31 = vld [vmem:[%s5068_s3 + $0x320] sm:$0xff] }
  0xe4   : > { %v3131_v38 = vpop.eup %3130  ;;  %1736 = vst [vmem:[%s5089_s23 + $0x408] sm:$0xff] %v3129_v36  ;;  %2240 = vst [vmem:[%s5089_s23 + $0x468] sm:$0xff] %v3129_v36  ;;  %3150 = vtanh.f32 %v235_v33  ;;  %v256_v33 = vld [vmem:[%s5068_s3 + $0x328] sm:$0xff] }
  0xe5   : > { %v3133_v40 = vpop.eup %3132  ;;  %1737 = vst [vmem:[%s5089_s23 + $0x410] sm:$0xff] %v3131_v38  ;;  %2241 = vst [vmem:[%s5089_s23 + $0x470] sm:$0xff] %v3131_v38  ;;  %3152 = vtanh.f32 %v236_v35  ;;  %v257_v35 = vld [vmem:[%s5068_s3 + $0x330] sm:$0xff] }
  0xe6   : > { %v3135_v42 = vpop.eup %3134  ;;  %1738 = vst [vmem:[%s5089_s23 + $0x418] sm:$0xff] %v3133_v40  ;;  %2242 = vst [vmem:[%s5089_s23 + $0x478] sm:$0xff] %v3133_v40  ;;  %3154 = vtanh.f32 %v237_v37  ;;  %v258_v37 = vld [vmem:[%s5068_s3 + $0x338] sm:$0xff] }
  0xe7   : > { %v3137_v44 = vpop.eup %3136  ;;  %1739 = vst [vmem:[%s5089_s23 + $0x480] sm:$0xff] %v3135_v42  ;;  %2243 = vst [vmem:[%s5089_s23 + $0x4e0] sm:$0xff] %v3135_v42  ;;  %3156 = vtanh.f32 %v238_v39  ;;  %v259_v39 = vld [vmem:[%s5068_s3 + $0x340] sm:$0xff] }
  0xe8   : > { %v3139_v46 = vpop.eup %3138  ;;  %1740 = vst [vmem:[%s5089_s23 + $0x488] sm:$0xff] %v3137_v44  ;;  %2244 = vst [vmem:[%s5089_s23 + $0x4e8] sm:$0xff] %v3137_v44  ;;  %3158 = vtanh.f32 %v239_v41  ;;  %v260_v41 = vld [vmem:[%s5068_s3 + $0x348] sm:$0xff] }
  0xe9   : > { %v3141_v48 = vpop.eup %3140  ;;  %1741 = vst [vmem:[%s5089_s23 + $0x490] sm:$0xff] %v3139_v46  ;;  %2245 = vst [vmem:[%s5089_s23 + $0x4f0] sm:$0xff] %v3139_v46  ;;  %3160 = vtanh.f32 %v240_v43  ;;  %v261_v43 = vld [vmem:[%s5068_s3 + $0x350] sm:$0xff] }
  0xea   : > { %v3143_v49 = vpop.eup %3142  ;;  %1742 = vst [vmem:[%s5089_s23 + $0x498] sm:$0xff] %v3141_v48  ;;  %2246 = vst [vmem:[%s5089_s23 + $0x4f8] sm:$0xff] %v3141_v48  ;;  %3162 = vtanh.f32 %v241_v45  ;;  %v262_v45 = vld [vmem:[%s5068_s3 + $0x358] sm:$0xff] }
  0xeb   : > { %v3145_v50 = vpop.eup %3144  ;;  %1743 = vst [vmem:[%s5089_s23 + $0x4a0] sm:$0xff] %v3143_v49  ;;  %2247 = vst [vmem:[%s5089_s23 + $0x500] sm:$0xff] %v3143_v49  ;;  %3164 = vtanh.f32 %v242_v47  ;;  %v263_v47 = vld [vmem:[%s5068_s3 + $0x360] sm:$0xff]  ;;  %v264_v49 = vld [vmem:[%s5068_s3 + $0x368] sm:$0xff] }
  0xec   : > { %v3147_v51 = vpop.eup %3146  ;;  %3166 = vtanh.f32 %v3145_v50 }
  0xed   : > { %v3149_v52 = vpop.eup %3148  ;;  %3168 = vtanh.f32 %v3147_v51 }
  0xee   : > { %v3151_v53 = vpop.eup %3150  ;;  %3170 = vtanh.f32 %v3149_v52 }
  0xef   : > { %v3153_v54 = vpop.eup %3152  ;;  %3172 = vtanh.f32 %v3151_v53 }
  0xf0   : > { %v3155_v55 = vpop.eup %3154  ;;  %3174 = vtanh.f32 %v3153_v54 }
  0xf1   : > { %v3157_v56 = vpop.eup %3156  ;;  %3176 = vtanh.f32 %v3155_v55 }
  0xf2   : > { %v3159_v57 = vpop.eup %3158  ;;  %3178 = vtanh.f32 %v3157_v56 }
  0xf3   : > { %v3161_v58 = vpop.eup %3160  ;;  %3180 = vtanh.f32 %v3159_v57 }
  0xf4   : > { %v3163_v59 = vpop.eup %3162  ;;  %3182 = vtanh.f32 %v3161_v58 }
  0xf5   : > { %v3165_v61 = vpop.eup %3164  ;;  %3184 = vtanh.f32 %v3163_v59 }
  0xf6   : > { %v3167_v63 = vpop.eup %3166  ;;  %3186 = vtanh.f32 %v3165_v61 }
  0xf7   : > { %v3169_v1 = vpop.eup %3168  ;;  %1744 = vst [vmem:[%s5089_s23 + $0x4a8] sm:$0xff] %v3167_v63  ;;  %2248 = vst [vmem:[%s5089_s23 + $0x508] sm:$0xff] %v3167_v63  ;;  %3188 = vtanh.f32 %v243_v60 }
  0xf8   : > { %v3171_v3 = vpop.eup %3170  ;;  %1745 = vst [vmem:[%s5089_s23 + $0x4b0] sm:$0xff] %v3169_v1  ;;  %2249 = vst [vmem:[%s5089_s23 + $0x510] sm:$0xff] %v3169_v1  ;;  %3190 = vtanh.f32 %v244_v62  ;;  %v265_v62 = vld [vmem:[%s5068_s3 + $0x370] sm:$0xff] }
  0xf9   : > { %v3173_v5 = vpop.eup %3172  ;;  %1746 = vst [vmem:[%s5089_s23 + $0x4b8] sm:$0xff] %v3171_v3  ;;  %2250 = vst [vmem:[%s5089_s23 + $0x518] sm:$0xff] %v3171_v3  ;;  %3192 = vtanh.f32 %v245_v0  ;;  %v266_v0 = vld [vmem:[%s5068_s3 + $0x378] sm:$0xff] }
  0xfa   : > { %v3175_v7 = vpop.eup %3174  ;;  %1747 = vst [vmem:[%s5089_s23 + $0x4c0] sm:$0xff] %v3173_v5  ;;  %2251 = vst [vmem:[%s5089_s23 + $0x520] sm:$0xff] %v3173_v5  ;;  %3194 = vtanh.f32 %v246_v2  ;;  %v267_v2 = vld [vmem:[%s5068_s3 + $0x380] sm:$0xff] }
  0xfb   : > { %v3177_v9 = vpop.eup %3176  ;;  %1748 = vst [vmem:[%s5089_s23 + $0x4c8] sm:$0xff] %v3175_v7  ;;  %2252 = vst [vmem:[%s5089_s23 + $0x528] sm:$0xff] %v3175_v7  ;;  %3196 = vtanh.f32 %v247_v4  ;;  %v268_v4 = vld [vmem:[%s5068_s3 + $0x388] sm:$0xff] }
  0xfc   : > { %v3179_v11 = vpop.eup %3178  ;;  %1749 = vst [vmem:[%s5089_s23 + $0x4d0] sm:$0xff] %v3177_v9  ;;  %2253 = vst [vmem:[%s5089_s23 + $0x530] sm:$0xff] %v3177_v9  ;;  %3198 = vtanh.f32 %v248_v6  ;;  %v269_v6 = vld [vmem:[%s5068_s3 + $0x390] sm:$0xff] }
  0xfd   : > { %v3181_v13 = vpop.eup %3180  ;;  %1750 = vst [vmem:[%s5089_s23 + $0x4d8] sm:$0xff] %v3179_v11  ;;  %2254 = vst [vmem:[%s5089_s23 + $0x538] sm:$0xff] %v3179_v11  ;;  %3200 = vtanh.f32 %v249_v8  ;;  %v270_v8 = vld [vmem:[%s5068_s3 + $0x398] sm:$0xff] }
  0xfe   : > { %v3183_v15 = vpop.eup %3182  ;;  %1751 = vst [vmem:[%s5089_s23 + $0x540] sm:$0xff] %v3181_v13  ;;  %2255 = vst [vmem:[%s5089_s23 + $0x5a0] sm:$0xff] %v3181_v13  ;;  %3202 = vtanh.f32 %v250_v10  ;;  %v271_v10 = vld [vmem:[%s5068_s3 + $0x3a0] sm:$0xff] }
  0xff   : > { %v3185_v17 = vpop.eup %3184  ;;  %1752 = vst [vmem:[%s5089_s23 + $0x548] sm:$0xff] %v3183_v15  ;;  %2256 = vst [vmem:[%s5089_s23 + $0x5a8] sm:$0xff] %v3183_v15  ;;  %3204 = vtanh.f32 %v251_v12  ;;  %v272_v12 = vld [vmem:[%s5068_s3 + $0x3a8] sm:$0xff] }
 0x100   : > { %v3187_v18 = vpop.eup %3186  ;;  %1753 = vst [vmem:[%s5089_s23 + $0x550] sm:$0xff] %v3185_v17  ;;  %2257 = vst [vmem:[%s5089_s23 + $0x5b0] sm:$0xff] %v3185_v17  ;;  %3206 = vtanh.f32 %v252_v14  ;;  %v273_v14 = vld [vmem:[%s5068_s3 + $0x3b0] sm:$0xff] }
 0x101   : > { %v3189_v19 = vpop.eup %3188  ;;  %1754 = vst [vmem:[%s5089_s23 + $0x558] sm:$0xff] %v3187_v18  ;;  %2258 = vst [vmem:[%s5089_s23 + $0x5b8] sm:$0xff] %v3187_v18  ;;  %3208 = vtanh.f32 %v253_v16  ;;  %v274_v16 = vld [vmem:[%s5068_s3 + $0x3b8] sm:$0xff]  ;;  %v275_v18 = vld [vmem:[%s5068_s3 + $0x3c0] sm:$0xff] }
 0x102   : > { %v3191_v20 = vpop.eup %3190  ;;  %3210 = vtanh.f32 %v3189_v19 }
 0x103   : > { %v3193_v21 = vpop.eup %3192  ;;  %3212 = vtanh.f32 %v3191_v20 }
 0x104   : > { %v3195_v22 = vpop.eup %3194  ;;  %3214 = vtanh.f32 %v3193_v21 }
 0x105   : > { %v3197_v23 = vpop.eup %3196  ;;  %3216 = vtanh.f32 %v3195_v22 }
 0x106   : > { %v3199_v24 = vpop.eup %3198  ;;  %3218 = vtanh.f32 %v3197_v23 }
 0x107   : > { %v3201_v25 = vpop.eup %3200  ;;  %3220 = vtanh.f32 %v3199_v24 }
 0x108   : > { %v3203_v26 = vpop.eup %3202  ;;  %3222 = vtanh.f32 %v3201_v25 }
 0x109   : > { %v3205_v27 = vpop.eup %3204  ;;  %3224 = vtanh.f32 %v3203_v26 }
 0x10a   : > { %v3207_v28 = vpop.eup %3206  ;;  %3226 = vtanh.f32 %v3205_v27 }
 0x10b   : > { %v3209_v30 = vpop.eup %3208  ;;  %3228 = vtanh.f32 %v3207_v28 }
 0x10c   : > { %v3211_v32 = vpop.eup %3210  ;;  %3230 = vtanh.f32 %v3209_v30 }
 0x10d   : > { %v3213_v34 = vpop.eup %3212  ;;  %1755 = vst [vmem:[%s5089_s23 + $0x560] sm:$0xff] %v3211_v32  ;;  %2259 = vst [vmem:[%s5089_s23 + $0x5c0] sm:$0xff] %v3211_v32  ;;  %3232 = vtanh.f32 %v254_v29 }
 0x10e   : > { %v3215_v36 = vpop.eup %3214  ;;  %1756 = vst [vmem:[%s5089_s23 + $0x568] sm:$0xff] %v3213_v34  ;;  %2260 = vst [vmem:[%s5089_s23 + $0x5c8] sm:$0xff] %v3213_v34  ;;  %3234 = vtanh.f32 %v255_v31  ;;  %v276_v31 = vld [vmem:[%s5068_s3 + $0x3c8] sm:$0xff] }
 0x10f   : > { %v3217_v38 = vpop.eup %3216  ;;  %1757 = vst [vmem:[%s5089_s23 + $0x570] sm:$0xff] %v3215_v36  ;;  %2261 = vst [vmem:[%s5089_s23 + $0x5d0] sm:$0xff] %v3215_v36  ;;  %3236 = vtanh.f32 %v256_v33  ;;  %v277_v33 = vld [vmem:[%s5068_s3 + $0x3d0] sm:$0xff] }
 0x110   : > { %v3219_v40 = vpop.eup %3218  ;;  %1758 = vst [vmem:[%s5089_s23 + $0x578] sm:$0xff] %v3217_v38  ;;  %2262 = vst [vmem:[%s5089_s23 + $0x5d8] sm:$0xff] %v3217_v38  ;;  %3238 = vtanh.f32 %v257_v35  ;;  %v278_v35 = vld [vmem:[%s5068_s3 + $0x3d8] sm:$0xff] }
 0x111   : > { %v3221_v42 = vpop.eup %3220  ;;  %1759 = vst [vmem:[%s5089_s23 + $0x580] sm:$0xff] %v3219_v40  ;;  %2263 = vst [vmem:[%s5089_s23 + $0x5e0] sm:$0xff] %v3219_v40  ;;  %3240 = vtanh.f32 %v258_v37  ;;  %v279_v37 = vld [vmem:[%s5068_s3 + $0x3e0] sm:$0xff] }
 0x112   : > { %v3223_v44 = vpop.eup %3222  ;;  %1760 = vst [vmem:[%s5089_s23 + $0x588] sm:$0xff] %v3221_v42  ;;  %2264 = vst [vmem:[%s5089_s23 + $0x5e8] sm:$0xff] %v3221_v42  ;;  %3242 = vtanh.f32 %v259_v39  ;;  %v280_v39 = vld [vmem:[%s5068_s3 + $0x3e8] sm:$0xff] }
 0x113   : > { %v3225_v46 = vpop.eup %3224  ;;  %1761 = vst [vmem:[%s5089_s23 + $0x590] sm:$0xff] %v3223_v44  ;;  %2265 = vst [vmem:[%s5089_s23 + $0x5f0] sm:$0xff] %v3223_v44  ;;  %3244 = vtanh.f32 %v260_v41  ;;  %v281_v41 = vld [vmem:[%s5068_s3 + $0x3f0] sm:$0xff] }
 0x114   : > { %v3227_v48 = vpop.eup %3226  ;;  %1762 = vst [vmem:[%s5089_s23 + $0x598] sm:$0xff] %v3225_v46  ;;  %2266 = vst [vmem:[%s5089_s23 + $0x5f8] sm:$0xff] %v3225_v46  ;;  %3246 = vtanh.f32 %v261_v43  ;;  %v282_v43 = vld [vmem:[%s5068_s3 + $0x3f8] sm:$0xff] }
 0x115   : > { %v3229_v50 = vpop.eup %3228  ;;  %1763 = vst [vmem:[%s5089_s23 + $0x600] sm:$0xff] %v3227_v48  ;;  %2267 = vst [vmem:[%s5089_s23 + $0x660] sm:$0xff] %v3227_v48  ;;  %3248 = vtanh.f32 %v262_v45  ;;  %v283_v45 = vld [vmem:[%s5068_s3 + $0x400] sm:$0xff] }
 0x116   : > { %v3231_v51 = vpop.eup %3230  ;;  %1764 = vst [vmem:[%s5089_s23 + $0x608] sm:$0xff] %v3229_v50  ;;  %2268 = vst [vmem:[%s5089_s23 + $0x668] sm:$0xff] %v3229_v50  ;;  %3250 = vtanh.f32 %v263_v47  ;;  %v284_v47 = vld [vmem:[%s5068_s3 + $0x408] sm:$0xff] }
 0x117   : > { %v3233_v52 = vpop.eup %3232  ;;  %1765 = vst [vmem:[%s5089_s23 + $0x610] sm:$0xff] %v3231_v51  ;;  %2269 = vst [vmem:[%s5089_s23 + $0x670] sm:$0xff] %v3231_v51  ;;  %3252 = vtanh.f32 %v264_v49  ;;  %v285_v49 = vld [vmem:[%s5068_s3 + $0x410] sm:$0xff]  ;;  %v286_v51 = vld [vmem:[%s5068_s3 + $0x418] sm:$0xff] }
 0x118   : > { %v3235_v53 = vpop.eup %3234  ;;  %3254 = vtanh.f32 %v3233_v52 }
 0x119   : > { %v3237_v54 = vpop.eup %3236  ;;  %3256 = vtanh.f32 %v3235_v53 }
 0x11a   : > { %v3239_v55 = vpop.eup %3238  ;;  %3258 = vtanh.f32 %v3237_v54 }
 0x11b   : > { %v3241_v56 = vpop.eup %3240  ;;  %3260 = vtanh.f32 %v3239_v55 }
 0x11c   : > { %v3243_v57 = vpop.eup %3242  ;;  %3262 = vtanh.f32 %v3241_v56 }
 0x11d   : > { %v3245_v58 = vpop.eup %3244  ;;  %3264 = vtanh.f32 %v3243_v57 }
 0x11e   : > { %v3247_v59 = vpop.eup %3246  ;;  %3266 = vtanh.f32 %v3245_v58 }
 0x11f   : > { %v3249_v60 = vpop.eup %3248  ;;  %3268 = vtanh.f32 %v3247_v59 }
 0x120   : > { %v3251_v61 = vpop.eup %3250  ;;  %3270 = vtanh.f32 %v3249_v60 }
 0x121   : > { %v3253_v63 = vpop.eup %3252  ;;  %3272 = vtanh.f32 %v3251_v61 }
 0x122   : > { %v3255_v1 = vpop.eup %3254  ;;  %3274 = vtanh.f32 %v3253_v63 }
 0x123   : > { %v3257_v3 = vpop.eup %3256  ;;  %1766 = vst [vmem:[%s5089_s23 + $0x618] sm:$0xff] %v3255_v1  ;;  %2270 = vst [vmem:[%s5089_s23 + $0x678] sm:$0xff] %v3255_v1  ;;  %3276 = vtanh.f32 %v265_v62 }
 0x124   : > { %v3259_v5 = vpop.eup %3258  ;;  %1767 = vst [vmem:[%s5089_s23 + $0x620] sm:$0xff] %v3257_v3  ;;  %2271 = vst [vmem:[%s5089_s23 + $0x680] sm:$0xff] %v3257_v3  ;;  %3278 = vtanh.f32 %v266_v0  ;;  %v287_v0 = vld [vmem:[%s5068_s3 + $0x420] sm:$0xff] }
 0x125   : > { %v3261_v7 = vpop.eup %3260  ;;  %1768 = vst [vmem:[%s5089_s23 + $0x628] sm:$0xff] %v3259_v5  ;;  %2272 = vst [vmem:[%s5089_s23 + $0x688] sm:$0xff] %v3259_v5  ;;  %3280 = vtanh.f32 %v267_v2  ;;  %v288_v2 = vld [vmem:[%s5068_s3 + $0x428] sm:$0xff] }
 0x126   : > { %v3263_v9 = vpop.eup %3262  ;;  %1769 = vst [vmem:[%s5089_s23 + $0x630] sm:$0xff] %v3261_v7  ;;  %2273 = vst [vmem:[%s5089_s23 + $0x690] sm:$0xff] %v3261_v7  ;;  %3282 = vtanh.f32 %v268_v4  ;;  %v289_v4 = vld [vmem:[%s5068_s3 + $0x430] sm:$0xff] }
 0x127   : > { %v3265_v11 = vpop.eup %3264  ;;  %1770 = vst [vmem:[%s5089_s23 + $0x638] sm:$0xff] %v3263_v9  ;;  %2274 = vst [vmem:[%s5089_s23 + $0x698] sm:$0xff] %v3263_v9  ;;  %3284 = vtanh.f32 %v269_v6  ;;  %v290_v6 = vld [vmem:[%s5068_s3 + $0x438] sm:$0xff] }
 0x128   : > { %v3267_v13 = vpop.eup %3266  ;;  %1771 = vst [vmem:[%s5089_s23 + $0x640] sm:$0xff] %v3265_v11  ;;  %2275 = vst [vmem:[%s5089_s23 + $0x6a0] sm:$0xff] %v3265_v11  ;;  %3286 = vtanh.f32 %v270_v8  ;;  %v291_v8 = vld [vmem:[%s5068_s3 + $0x440] sm:$0xff] }
 0x129   : > { %v3269_v15 = vpop.eup %3268  ;;  %1772 = vst [vmem:[%s5089_s23 + $0x648] sm:$0xff] %v3267_v13  ;;  %2276 = vst [vmem:[%s5089_s23 + $0x6a8] sm:$0xff] %v3267_v13  ;;  %3288 = vtanh.f32 %v271_v10  ;;  %v292_v10 = vld [vmem:[%s5068_s3 + $0x448] sm:$0xff] }
 0x12a   : > { %v3271_v17 = vpop.eup %3270  ;;  %1773 = vst [vmem:[%s5089_s23 + $0x650] sm:$0xff] %v3269_v15  ;;  %2277 = vst [vmem:[%s5089_s23 + $0x6b0] sm:$0xff] %v3269_v15  ;;  %3290 = vtanh.f32 %v272_v12  ;;  %v293_v12 = vld [vmem:[%s5068_s3 + $0x450] sm:$0xff] }
 0x12b   : > { %v3273_v19 = vpop.eup %3272  ;;  %1774 = vst [vmem:[%s5089_s23 + $0x658] sm:$0xff] %v3271_v17  ;;  %2278 = vst [vmem:[%s5089_s23 + $0x6b8] sm:$0xff] %v3271_v17  ;;  %3292 = vtanh.f32 %v273_v14  ;;  %v294_v14 = vld [vmem:[%s5068_s3 + $0x458] sm:$0xff] }
 0x12c   : > { %v3275_v20 = vpop.eup %3274  ;;  %1775 = vst [vmem:[%s5089_s23 + $0x6c0] sm:$0xff] %v3273_v19  ;;  %2279 = vst [vmem:[%s5089_s23 + $0x720] sm:$0xff] %v3273_v19  ;;  %3294 = vtanh.f32 %v274_v16  ;;  %v295_v16 = vld [vmem:[%s5068_s3 + $0x460] sm:$0xff] }
 0x12d   : > { %v3277_v21 = vpop.eup %3276  ;;  %1776 = vst [vmem:[%s5089_s23 + $0x6c8] sm:$0xff] %v3275_v20  ;;  %2280 = vst [vmem:[%s5089_s23 + $0x728] sm:$0xff] %v3275_v20  ;;  %3296 = vtanh.f32 %v275_v18  ;;  %v296_v18 = vld [vmem:[%s5068_s3 + $0x468] sm:$0xff]  ;;  %v297_v20 = vld [vmem:[%s5068_s3 + $0x470] sm:$0xff] }
 0x12e   : > { %v3279_v22 = vpop.eup %3278  ;;  %3298 = vtanh.f32 %v3277_v21 }
 0x12f   : > { %v3281_v23 = vpop.eup %3280  ;;  %3300 = vtanh.f32 %v3279_v22 }
 0x130   : > { %v3283_v24 = vpop.eup %3282  ;;  %3302 = vtanh.f32 %v3281_v23 }
 0x131   : > { %v3285_v25 = vpop.eup %3284  ;;  %3304 = vtanh.f32 %v3283_v24 }
 0x132   : > { %v3287_v26 = vpop.eup %3286  ;;  %3306 = vtanh.f32 %v3285_v25 }
 0x133   : > { %v3289_v27 = vpop.eup %3288  ;;  %3308 = vtanh.f32 %v3287_v26 }
 0x134   : > { %v3291_v28 = vpop.eup %3290  ;;  %3310 = vtanh.f32 %v3289_v27 }
 0x135   : > { %v3293_v29 = vpop.eup %3292  ;;  %3312 = vtanh.f32 %v3291_v28 }
 0x136   : > { %v3295_v30 = vpop.eup %3294  ;;  %3314 = vtanh.f32 %v3293_v29 }
 0x137   : > { %v3297_v32 = vpop.eup %3296  ;;  %3316 = vtanh.f32 %v3295_v30 }
 0x138   : > { %v3299_v34 = vpop.eup %3298  ;;  %3318 = vtanh.f32 %v3297_v32 }
 0x139   : > { %v3301_v36 = vpop.eup %3300  ;;  %1777 = vst [vmem:[%s5089_s23 + $0x6d0] sm:$0xff] %v3299_v34  ;;  %2281 = vst [vmem:[%s5089_s23 + $0x730] sm:$0xff] %v3299_v34  ;;  %3320 = vtanh.f32 %v276_v31 }
 0x13a   : > { %v3303_v38 = vpop.eup %3302  ;;  %1778 = vst [vmem:[%s5089_s23 + $0x6d8] sm:$0xff] %v3301_v36  ;;  %2282 = vst [vmem:[%s5089_s23 + $0x738] sm:$0xff] %v3301_v36  ;;  %3322 = vtanh.f32 %v277_v33  ;;  %v298_v33 = vld [vmem:[%s5068_s3 + $0x478] sm:$0xff] }
 0x13b   : > { %v3305_v40 = vpop.eup %3304  ;;  %1779 = vst [vmem:[%s5089_s23 + $0x6e0] sm:$0xff] %v3303_v38  ;;  %2283 = vst [vmem:[%s5089_s23 + $0x740] sm:$0xff] %v3303_v38  ;;  %3324 = vtanh.f32 %v278_v35  ;;  %v299_v35 = vld [vmem:[%s5068_s3 + $0x480] sm:$0xff] }
 0x13c   : > { %v3307_v42 = vpop.eup %3306  ;;  %1780 = vst [vmem:[%s5089_s23 + $0x6e8] sm:$0xff] %v3305_v40  ;;  %2284 = vst [vmem:[%s5089_s23 + $0x748] sm:$0xff] %v3305_v40  ;;  %3326 = vtanh.f32 %v279_v37  ;;  %v300_v37 = vld [vmem:[%s5068_s3 + $0x488] sm:$0xff] }
 0x13d   : > { %v3309_v44 = vpop.eup %3308  ;;  %1781 = vst [vmem:[%s5089_s23 + $0x6f0] sm:$0xff] %v3307_v42  ;;  %2285 = vst [vmem:[%s5089_s23 + $0x750] sm:$0xff] %v3307_v42  ;;  %3328 = vtanh.f32 %v280_v39  ;;  %v301_v39 = vld [vmem:[%s5068_s3 + $0x490] sm:$0xff] }
 0x13e   : > { %v3311_v46 = vpop.eup %3310  ;;  %1782 = vst [vmem:[%s5089_s23 + $0x6f8] sm:$0xff] %v3309_v44  ;;  %2286 = vst [vmem:[%s5089_s23 + $0x758] sm:$0xff] %v3309_v44  ;;  %3330 = vtanh.f32 %v281_v41  ;;  %v302_v41 = vld [vmem:[%s5068_s3 + $0x498] sm:$0xff] }
 0x13f   : > { %v3313_v48 = vpop.eup %3312  ;;  %1783 = vst [vmem:[%s5089_s23 + $0x700] sm:$0xff] %v3311_v46  ;;  %2287 = vst [vmem:[%s5089_s23 + $0x760] sm:$0xff] %v3311_v46  ;;  %3332 = vtanh.f32 %v282_v43  ;;  %v303_v43 = vld [vmem:[%s5068_s3 + $0x4a0] sm:$0xff] }
 0x140   : > { %v3315_v50 = vpop.eup %3314  ;;  %1784 = vst [vmem:[%s5089_s23 + $0x708] sm:$0xff] %v3313_v48  ;;  %2288 = vst [vmem:[%s5089_s23 + $0x768] sm:$0xff] %v3313_v48  ;;  %3334 = vtanh.f32 %v283_v45  ;;  %v304_v45 = vld [vmem:[%s5068_s3 + $0x4a8] sm:$0xff] }
 0x141   : > { %v3317_v52 = vpop.eup %3316  ;;  %1785 = vst [vmem:[%s5089_s23 + $0x710] sm:$0xff] %v3315_v50  ;;  %2289 = vst [vmem:[%s5089_s23 + $0x770] sm:$0xff] %v3315_v50  ;;  %3336 = vtanh.f32 %v284_v47  ;;  %v305_v47 = vld [vmem:[%s5068_s3 + $0x4b0] sm:$0xff] }
 0x142   : > { %v3319_v53 = vpop.eup %3318  ;;  %1786 = vst [vmem:[%s5089_s23 + $0x718] sm:$0xff] %v3317_v52  ;;  %2290 = vst [vmem:[%s5089_s23 + $0x778] sm:$0xff] %v3317_v52  ;;  %3338 = vtanh.f32 %v285_v49  ;;  %v306_v49 = vld [vmem:[%s5068_s3 + $0x4b8] sm:$0xff] }
 0x143   : > { %v3321_v54 = vpop.eup %3320  ;;  %1787 = vst [vmem:[%s5089_s23 + $0x780] sm:$0xff] %v3319_v53  ;;  %2291 = vst [vmem:[%s5089_s23 + $0x7e0] sm:$0xff] %v3319_v53  ;;  %3340 = vtanh.f32 %v286_v51  ;;  %v307_v51 = vld [vmem:[%s5068_s3 + $0x4c0] sm:$0xff]  ;;  %v308_v53 = vld [vmem:[%s5068_s3 + $0x4c8] sm:$0xff] }
 0x144   : > { %v3323_v55 = vpop.eup %3322  ;;  %3342 = vtanh.f32 %v3321_v54 }
 0x145   : > { %v3325_v56 = vpop.eup %3324  ;;  %3344 = vtanh.f32 %v3323_v55 }
 0x146   : > { %v3327_v57 = vpop.eup %3326  ;;  %3346 = vtanh.f32 %v3325_v56 }
 0x147   : > { %v3329_v58 = vpop.eup %3328  ;;  %3348 = vtanh.f32 %v3327_v57 }
 0x148   : > { %v3331_v59 = vpop.eup %3330  ;;  %3350 = vtanh.f32 %v3329_v58 }
 0x149   : > { %v3333_v60 = vpop.eup %3332  ;;  %3352 = vtanh.f32 %v3331_v59 }
 0x14a   : > { %v3335_v61 = vpop.eup %3334  ;;  %3354 = vtanh.f32 %v3333_v60 }
 0x14b   : > { %v3337_v62 = vpop.eup %3336  ;;  %3356 = vtanh.f32 %v3335_v61 }
 0x14c   : > { %v3339_v63 = vpop.eup %3338  ;;  %3358 = vtanh.f32 %v3337_v62 }
 0x14d   : > { %v3341_v1 = vpop.eup %3340  ;;  %3360 = vtanh.f32 %v3339_v63 }
 0x14e   : > { %v3343_v3 = vpop.eup %3342  ;;  %3362 = vtanh.f32 %v3341_v1 }
 0x14f   : > { %v3345_v5 = vpop.eup %3344  ;;  %1788 = vst [vmem:[%s5089_s23 + $0x788] sm:$0xff] %v3343_v3  ;;  %2292 = vst [vmem:[%s5089_s23 + $0x7e8] sm:$0xff] %v3343_v3  ;;  %3364 = vtanh.f32 %v287_v0 }
 0x150   : > { %v3347_v7 = vpop.eup %3346  ;;  %1789 = vst [vmem:[%s5089_s23 + $0x790] sm:$0xff] %v3345_v5  ;;  %2293 = vst [vmem:[%s5089_s23 + $0x7f0] sm:$0xff] %v3345_v5  ;;  %3366 = vtanh.f32 %v288_v2  ;;  %v309_v2 = vld [vmem:[%s5068_s3 + $0x4d0] sm:$0xff] }
 0x151   : > { %v3349_v9 = vpop.eup %3348  ;;  %1790 = vst [vmem:[%s5089_s23 + $0x798] sm:$0xff] %v3347_v7  ;;  %2294 = vst [vmem:[%s5089_s23 + $0x7f8] sm:$0xff] %v3347_v7  ;;  %3368 = vtanh.f32 %v289_v4  ;;  %v310_v4 = vld [vmem:[%s5068_s3 + $0x4d8] sm:$0xff] }
 0x152   : > { %v3351_v11 = vpop.eup %3350  ;;  %1791 = vst [vmem:[%s5089_s23 + $0x7a0] sm:$0xff] %v3349_v9  ;;  %2295 = vst [vmem:[%s5089_s23 + $0x800] sm:$0xff] %v3349_v9  ;;  %3370 = vtanh.f32 %v290_v6  ;;  %v311_v6 = vld [vmem:[%s5068_s3 + $0x4e0] sm:$0xff] }
 0x153   : > { %v3353_v13 = vpop.eup %3352  ;;  %1792 = vst [vmem:[%s5089_s23 + $0x7a8] sm:$0xff] %v3351_v11  ;;  %2296 = vst [vmem:[%s5089_s23 + $0x808] sm:$0xff] %v3351_v11  ;;  %3372 = vtanh.f32 %v291_v8  ;;  %v312_v8 = vld [vmem:[%s5068_s3 + $0x4e8] sm:$0xff] }
 0x154   : > { %v3355_v15 = vpop.eup %3354  ;;  %1793 = vst [vmem:[%s5089_s23 + $0x7b0] sm:$0xff] %v3353_v13  ;;  %2297 = vst [vmem:[%s5089_s23 + $0x810] sm:$0xff] %v3353_v13  ;;  %3374 = vtanh.f32 %v292_v10  ;;  %v313_v10 = vld [vmem:[%s5068_s3 + $0x4f0] sm:$0xff] }
 0x155   : > { %v3357_v17 = vpop.eup %3356  ;;  %1794 = vst [vmem:[%s5089_s23 + $0x7b8] sm:$0xff] %v3355_v15  ;;  %2298 = vst [vmem:[%s5089_s23 + $0x818] sm:$0xff] %v3355_v15  ;;  %3376 = vtanh.f32 %v293_v12  ;;  %v314_v12 = vld [vmem:[%s5068_s3 + $0x4f8] sm:$0xff] }
 0x156   : > { %v3359_v19 = vpop.eup %3358  ;;  %1795 = vst [vmem:[%s5089_s23 + $0x7c0] sm:$0xff] %v3357_v17  ;;  %2299 = vst [vmem:[%s5089_s23 + $0x820] sm:$0xff] %v3357_v17  ;;  %3378 = vtanh.f32 %v294_v14  ;;  %v315_v14 = vld [vmem:[%s5068_s3 + $0x500] sm:$0xff] }
 0x157   : > { %v3361_v21 = vpop.eup %3360  ;;  %1796 = vst [vmem:[%s5089_s23 + $0x7c8] sm:$0xff] %v3359_v19  ;;  %2300 = vst [vmem:[%s5089_s23 + $0x828] sm:$0xff] %v3359_v19  ;;  %3380 = vtanh.f32 %v295_v16  ;;  %v316_v16 = vld [vmem:[%s5068_s3 + $0x508] sm:$0xff] }
 0x158   : > { %v3363_v22 = vpop.eup %3362  ;;  %1797 = vst [vmem:[%s5089_s23 + $0x7d0] sm:$0xff] %v3361_v21  ;;  %2301 = vst [vmem:[%s5089_s23 + $0x830] sm:$0xff] %v3361_v21  ;;  %3382 = vtanh.f32 %v296_v18  ;;  %v317_v18 = vld [vmem:[%s5068_s3 + $0x510] sm:$0xff] }
 0x159   : > { %v3365_v23 = vpop.eup %3364  ;;  %1798 = vst [vmem:[%s5089_s23 + $0x7d8] sm:$0xff] %v3363_v22  ;;  %2302 = vst [vmem:[%s5089_s23 + $0x838] sm:$0xff] %v3363_v22  ;;  %3384 = vtanh.f32 %v297_v20  ;;  %v318_v20 = vld [vmem:[%s5068_s3 + $0x518] sm:$0xff]  ;;  %v319_v22 = vld [vmem:[%s5068_s3 + $0x520] sm:$0xff] }
 0x15a   : > { %v3367_v24 = vpop.eup %3366  ;;  %3386 = vtanh.f32 %v3365_v23 }
 0x15b   : > { %v3369_v25 = vpop.eup %3368  ;;  %3388 = vtanh.f32 %v3367_v24 }
 0x15c   : > { %v3371_v26 = vpop.eup %3370  ;;  %3390 = vtanh.f32 %v3369_v25 }
 0x15d   : > { %v3373_v27 = vpop.eup %3372  ;;  %3392 = vtanh.f32 %v3371_v26 }
 0x15e   : > { %v3375_v28 = vpop.eup %3374  ;;  %3394 = vtanh.f32 %v3373_v27 }
 0x15f   : > { %v3377_v29 = vpop.eup %3376  ;;  %3396 = vtanh.f32 %v3375_v28 }
 0x160   : > { %v3379_v30 = vpop.eup %3378  ;;  %3398 = vtanh.f32 %v3377_v29 }
 0x161   : > { %v3381_v31 = vpop.eup %3380  ;;  %3400 = vtanh.f32 %v3379_v30 }
 0x162   : > { %v3383_v32 = vpop.eup %3382  ;;  %3402 = vtanh.f32 %v3381_v31 }
 0x163   : > { %v3385_v34 = vpop.eup %3384  ;;  %3404 = vtanh.f32 %v3383_v32 }
 0x164   : > { %v3387_v36 = vpop.eup %3386  ;;  %3406 = vtanh.f32 %v3385_v34 }
 0x165   : > { %v3389_v38 = vpop.eup %3388  ;;  %1799 = vst [vmem:[%s5089_s23 + $0x840] sm:$0xff] %v3387_v36  ;;  %2303 = vst [vmem:[%s5089_s23 + $0x8a0] sm:$0xff] %v3387_v36  ;;  %3408 = vtanh.f32 %v298_v33 }
 0x166   : > { %v3391_v40 = vpop.eup %3390  ;;  %1800 = vst [vmem:[%s5089_s23 + $0x848] sm:$0xff] %v3389_v38  ;;  %2304 = vst [vmem:[%s5089_s23 + $0x8a8] sm:$0xff] %v3389_v38  ;;  %3410 = vtanh.f32 %v299_v35  ;;  %v320_v35 = vld [vmem:[%s5068_s3 + $0x528] sm:$0xff] }
 0x167   : > { %v3393_v42 = vpop.eup %3392  ;;  %1801 = vst [vmem:[%s5089_s23 + $0x850] sm:$0xff] %v3391_v40  ;;  %2305 = vst [vmem:[%s5089_s23 + $0x8b0] sm:$0xff] %v3391_v40  ;;  %3412 = vtanh.f32 %v300_v37  ;;  %v321_v37 = vld [vmem:[%s5068_s3 + $0x530] sm:$0xff] }
 0x168   : > { %v3395_v44 = vpop.eup %3394  ;;  %1802 = vst [vmem:[%s5089_s23 + $0x858] sm:$0xff] %v3393_v42  ;;  %2306 = vst [vmem:[%s5089_s23 + $0x8b8] sm:$0xff] %v3393_v42  ;;  %3414 = vtanh.f32 %v301_v39  ;;  %v322_v39 = vld [vmem:[%s5068_s3 + $0x538] sm:$0xff] }
 0x169   : > { %v3397_v46 = vpop.eup %3396  ;;  %1803 = vst [vmem:[%s5089_s23 + $0x860] sm:$0xff] %v3395_v44  ;;  %2307 = vst [vmem:[%s5089_s23 + $0x8c0] sm:$0xff] %v3395_v44  ;;  %3416 = vtanh.f32 %v302_v41  ;;  %v323_v41 = vld [vmem:[%s5068_s3 + $0x540] sm:$0xff] }
 0x16a   : > { %v3399_v48 = vpop.eup %3398  ;;  %1804 = vst [vmem:[%s5089_s23 + $0x868] sm:$0xff] %v3397_v46  ;;  %2308 = vst [vmem:[%s5089_s23 + $0x8c8] sm:$0xff] %v3397_v46  ;;  %3418 = vtanh.f32 %v303_v43  ;;  %v324_v43 = vld [vmem:[%s5068_s3 + $0x548] sm:$0xff] }
 0x16b   : > { %v3401_v50 = vpop.eup %3400  ;;  %1805 = vst [vmem:[%s5089_s23 + $0x870] sm:$0xff] %v3399_v48  ;;  %2309 = vst [vmem:[%s5089_s23 + $0x8d0] sm:$0xff] %v3399_v48  ;;  %3420 = vtanh.f32 %v304_v45  ;;  %v325_v45 = vld [vmem:[%s5068_s3 + $0x550] sm:$0xff] }
 0x16c   : > { %v3403_v52 = vpop.eup %3402  ;;  %1806 = vst [vmem:[%s5089_s23 + $0x878] sm:$0xff] %v3401_v50  ;;  %2310 = vst [vmem:[%s5089_s23 + $0x8d8] sm:$0xff] %v3401_v50  ;;  %3422 = vtanh.f32 %v305_v47  ;;  %v326_v47 = vld [vmem:[%s5068_s3 + $0x558] sm:$0xff] }
 0x16d   : > { %v3405_v54 = vpop.eup %3404  ;;  %1807 = vst [vmem:[%s5089_s23 + $0x880] sm:$0xff] %v3403_v52  ;;  %2311 = vst [vmem:[%s5089_s23 + $0x8e0] sm:$0xff] %v3403_v52  ;;  %3424 = vtanh.f32 %v306_v49  ;;  %v327_v49 = vld [vmem:[%s5068_s3 + $0x560] sm:$0xff] }
 0x16e   : > { %v3407_v55 = vpop.eup %3406  ;;  %1808 = vst [vmem:[%s5089_s23 + $0x888] sm:$0xff] %v3405_v54  ;;  %2312 = vst [vmem:[%s5089_s23 + $0x8e8] sm:$0xff] %v3405_v54  ;;  %3426 = vtanh.f32 %v307_v51  ;;  %v328_v51 = vld [vmem:[%s5068_s3 + $0x568] sm:$0xff] }
 0x16f   : > { %v3409_v56 = vpop.eup %3408  ;;  %1809 = vst [vmem:[%s5089_s23 + $0x890] sm:$0xff] %v3407_v55  ;;  %2313 = vst [vmem:[%s5089_s23 + $0x8f0] sm:$0xff] %v3407_v55  ;;  %3428 = vtanh.f32 %v308_v53  ;;  %v329_v53 = vld [vmem:[%s5068_s3 + $0x570] sm:$0xff]  ;;  %v330_v55 = vld [vmem:[%s5068_s3 + $0x578] sm:$0xff] }
 0x170   : > { %v3411_v57 = vpop.eup %3410  ;;  %3430 = vtanh.f32 %v3409_v56 }
 0x171   : > { %v3413_v58 = vpop.eup %3412  ;;  %3432 = vtanh.f32 %v3411_v57 }
 0x172   : > { %v3415_v59 = vpop.eup %3414  ;;  %3434 = vtanh.f32 %v3413_v58 }
 0x173   : > { %v3417_v60 = vpop.eup %3416  ;;  %3436 = vtanh.f32 %v3415_v59 }
 0x174   : > { %v3419_v61 = vpop.eup %3418  ;;  %3438 = vtanh.f32 %v3417_v60 }
 0x175   : > { %v3421_v62 = vpop.eup %3420  ;;  %3440 = vtanh.f32 %v3419_v61 }
 0x176   : > { %v3423_v63 = vpop.eup %3422  ;;  %3442 = vtanh.f32 %v3421_v62 }
 0x177   : > { %v3425_v0 = vpop.eup %3424  ;;  %3444 = vtanh.f32 %v3423_v63 }
 0x178   : > { %v3427_v1 = vpop.eup %3426  ;;  %3446 = vtanh.f32 %v3425_v0 }
 0x179   : > { %v3429_v3 = vpop.eup %3428  ;;  %3448 = vtanh.f32 %v3427_v1 }
 0x17a   : > { %v3431_v5 = vpop.eup %3430  ;;  %3450 = vtanh.f32 %v3429_v3 }
 0x17b   : > { %v3433_v7 = vpop.eup %3432  ;;  %1810 = vst [vmem:[%s5089_s23 + $0x898] sm:$0xff] %v3431_v5  ;;  %2314 = vst [vmem:[%s5089_s23 + $0x8f8] sm:$0xff] %v3431_v5  ;;  %3452 = vtanh.f32 %v309_v2 }
 0x17c   : > { %v3435_v9 = vpop.eup %3434  ;;  %1811 = vst [vmem:[%s5089_s23 + $0x900] sm:$0xff] %v3433_v7  ;;  %2315 = vst [vmem:[%s5089_s23 + $0x960] sm:$0xff] %v3433_v7  ;;  %3454 = vtanh.f32 %v310_v4  ;;  %v331_v4 = vld [vmem:[%s5068_s3 + $0x580] sm:$0xff] }
 0x17d   : > { %v3437_v11 = vpop.eup %3436  ;;  %1812 = vst [vmem:[%s5089_s23 + $0x908] sm:$0xff] %v3435_v9  ;;  %2316 = vst [vmem:[%s5089_s23 + $0x968] sm:$0xff] %v3435_v9  ;;  %3456 = vtanh.f32 %v311_v6  ;;  %v332_v6 = vld [vmem:[%s5068_s3 + $0x588] sm:$0xff] }
 0x17e   : > { %v3439_v13 = vpop.eup %3438  ;;  %1813 = vst [vmem:[%s5089_s23 + $0x910] sm:$0xff] %v3437_v11  ;;  %2317 = vst [vmem:[%s5089_s23 + $0x970] sm:$0xff] %v3437_v11  ;;  %3458 = vtanh.f32 %v312_v8  ;;  %v333_v8 = vld [vmem:[%s5068_s3 + $0x590] sm:$0xff] }
 0x17f   : > { %v3441_v15 = vpop.eup %3440  ;;  %1814 = vst [vmem:[%s5089_s23 + $0x918] sm:$0xff] %v3439_v13  ;;  %2318 = vst [vmem:[%s5089_s23 + $0x978] sm:$0xff] %v3439_v13  ;;  %3460 = vtanh.f32 %v313_v10  ;;  %v334_v10 = vld [vmem:[%s5068_s3 + $0x598] sm:$0xff] }
 0x180   : > { %v3443_v17 = vpop.eup %3442  ;;  %1815 = vst [vmem:[%s5089_s23 + $0x920] sm:$0xff] %v3441_v15  ;;  %2319 = vst [vmem:[%s5089_s23 + $0x980] sm:$0xff] %v3441_v15  ;;  %3462 = vtanh.f32 %v314_v12  ;;  %v335_v12 = vld [vmem:[%s5068_s3 + $0x5a0] sm:$0xff] }
 0x181   : > { %v3445_v19 = vpop.eup %3444  ;;  %1816 = vst [vmem:[%s5089_s23 + $0x928] sm:$0xff] %v3443_v17  ;;  %2320 = vst [vmem:[%s5089_s23 + $0x988] sm:$0xff] %v3443_v17  ;;  %3464 = vtanh.f32 %v315_v14  ;;  %v336_v14 = vld [vmem:[%s5068_s3 + $0x5a8] sm:$0xff] }
 0x182   : > { %v3447_v21 = vpop.eup %3446  ;;  %1817 = vst [vmem:[%s5089_s23 + $0x930] sm:$0xff] %v3445_v19  ;;  %2321 = vst [vmem:[%s5089_s23 + $0x990] sm:$0xff] %v3445_v19  ;;  %3466 = vtanh.f32 %v316_v16  ;;  %v337_v16 = vld [vmem:[%s5068_s3 + $0x5b0] sm:$0xff] }
 0x183   : > { %v3449_v23 = vpop.eup %3448  ;;  %1818 = vst [vmem:[%s5089_s23 + $0x938] sm:$0xff] %v3447_v21  ;;  %2322 = vst [vmem:[%s5089_s23 + $0x998] sm:$0xff] %v3447_v21  ;;  %3468 = vtanh.f32 %v317_v18  ;;  %v338_v18 = vld [vmem:[%s5068_s3 + $0x5b8] sm:$0xff] }
 0x184   : > { %v3451_v24 = vpop.eup %3450  ;;  %1819 = vst [vmem:[%s5089_s23 + $0x940] sm:$0xff] %v3449_v23  ;;  %2323 = vst [vmem:[%s5089_s23 + $0x9a0] sm:$0xff] %v3449_v23  ;;  %3470 = vtanh.f32 %v318_v20  ;;  %v339_v20 = vld [vmem:[%s5068_s3 + $0x5c0] sm:$0xff] }
 0x185   : > { %v3453_v25 = vpop.eup %3452  ;;  %1820 = vst [vmem:[%s5089_s23 + $0x948] sm:$0xff] %v3451_v24  ;;  %2324 = vst [vmem:[%s5089_s23 + $0x9a8] sm:$0xff] %v3451_v24  ;;  %3472 = vtanh.f32 %v319_v22  ;;  %v340_v22 = vld [vmem:[%s5068_s3 + $0x5c8] sm:$0xff]  ;;  %v341_v24 = vld [vmem:[%s5068_s3 + $0x5d0] sm:$0xff] }
 0x186   : > { %v3455_v26 = vpop.eup %3454  ;;  %3474 = vtanh.f32 %v3453_v25 }
 0x187   : > { %v3457_v27 = vpop.eup %3456  ;;  %3476 = vtanh.f32 %v3455_v26 }
 0x188   : > { %v3459_v28 = vpop.eup %3458  ;;  %3478 = vtanh.f32 %v3457_v27 }
 0x189   : > { %v3461_v29 = vpop.eup %3460  ;;  %3480 = vtanh.f32 %v3459_v28 }
 0x18a   : > { %v3463_v30 = vpop.eup %3462  ;;  %3482 = vtanh.f32 %v3461_v29 }
 0x18b   : > { %v3465_v31 = vpop.eup %3464  ;;  %3484 = vtanh.f32 %v3463_v30 }
 0x18c   : > { %v3467_v32 = vpop.eup %3466  ;;  %3486 = vtanh.f32 %v3465_v31 }
 0x18d   : > { %v3469_v33 = vpop.eup %3468  ;;  %3488 = vtanh.f32 %v3467_v32 }
 0x18e   : > { %v3471_v34 = vpop.eup %3470  ;;  %3490 = vtanh.f32 %v3469_v33 }
 0x18f   : > { %v3473_v36 = vpop.eup %3472  ;;  %3492 = vtanh.f32 %v3471_v34 }
 0x190   : > { %v3475_v38 = vpop.eup %3474  ;;  %3494 = vtanh.f32 %v3473_v36 }
 0x191   : > { %v3477_v40 = vpop.eup %3476  ;;  %1821 = vst [vmem:[%s5089_s23 + $0x950] sm:$0xff] %v3475_v38  ;;  %2325 = vst [vmem:[%s5089_s23 + $0x9b0] sm:$0xff] %v3475_v38  ;;  %3496 = vtanh.f32 %v320_v35 }
 0x192   : > { %v3479_v42 = vpop.eup %3478  ;;  %1822 = vst [vmem:[%s5089_s23 + $0x958] sm:$0xff] %v3477_v40  ;;  %2326 = vst [vmem:[%s5089_s23 + $0x9b8] sm:$0xff] %v3477_v40  ;;  %3498 = vtanh.f32 %v321_v37  ;;  %v342_v37 = vld [vmem:[%s5068_s3 + $0x5d8] sm:$0xff] }
 0x193   : > { %v3481_v44 = vpop.eup %3480  ;;  %1823 = vst [vmem:[%s5089_s23 + $0x9c0] sm:$0xff] %v3479_v42  ;;  %2327 = vst [vmem:[%s5089_s23 + $0xa20] sm:$0xff] %v3479_v42  ;;  %3500 = vtanh.f32 %v322_v39  ;;  %v343_v39 = vld [vmem:[%s5068_s3 + $0x5e0] sm:$0xff] }
 0x194   : > { %v3483_v46 = vpop.eup %3482  ;;  %1824 = vst [vmem:[%s5089_s23 + $0x9c8] sm:$0xff] %v3481_v44  ;;  %2328 = vst [vmem:[%s5089_s23 + $0xa28] sm:$0xff] %v3481_v44  ;;  %3502 = vtanh.f32 %v323_v41  ;;  %v344_v41 = vld [vmem:[%s5068_s3 + $0x5e8] sm:$0xff] }
 0x195   : > { %v3485_v48 = vpop.eup %3484  ;;  %1825 = vst [vmem:[%s5089_s23 + $0x9d0] sm:$0xff] %v3483_v46  ;;  %2329 = vst [vmem:[%s5089_s23 + $0xa30] sm:$0xff] %v3483_v46  ;;  %3504 = vtanh.f32 %v324_v43  ;;  %v345_v43 = vld [vmem:[%s5068_s3 + $0x5f0] sm:$0xff] }
 0x196   : > { %v3487_v50 = vpop.eup %3486  ;;  %1826 = vst [vmem:[%s5089_s23 + $0x9d8] sm:$0xff] %v3485_v48  ;;  %2330 = vst [vmem:[%s5089_s23 + $0xa38] sm:$0xff] %v3485_v48  ;;  %3506 = vtanh.f32 %v325_v45  ;;  %v346_v45 = vld [vmem:[%s5068_s3 + $0x5f8] sm:$0xff] }
 0x197   : > { %v3489_v52 = vpop.eup %3488  ;;  %1827 = vst [vmem:[%s5089_s23 + $0x9e0] sm:$0xff] %v3487_v50  ;;  %2331 = vst [vmem:[%s5089_s23 + $0xa40] sm:$0xff] %v3487_v50  ;;  %3508 = vtanh.f32 %v326_v47  ;;  %v347_v47 = vld [vmem:[%s5068_s3 + $0x600] sm:$0xff] }
 0x198   : > { %v3491_v54 = vpop.eup %3490  ;;  %1828 = vst [vmem:[%s5089_s23 + $0x9e8] sm:$0xff] %v3489_v52  ;;  %2332 = vst [vmem:[%s5089_s23 + $0xa48] sm:$0xff] %v3489_v52  ;;  %3510 = vtanh.f32 %v327_v49  ;;  %v348_v49 = vld [vmem:[%s5068_s3 + $0x608] sm:$0xff] }
 0x199   : > { %v3493_v56 = vpop.eup %3492  ;;  %1829 = vst [vmem:[%s5089_s23 + $0x9f0] sm:$0xff] %v3491_v54  ;;  %2333 = vst [vmem:[%s5089_s23 + $0xa50] sm:$0xff] %v3491_v54  ;;  %3512 = vtanh.f32 %v328_v51  ;;  %v349_v51 = vld [vmem:[%s5068_s3 + $0x610] sm:$0xff] }
 0x19a   : > { %v3495_v57 = vpop.eup %3494  ;;  %1830 = vst [vmem:[%s5089_s23 + $0x9f8] sm:$0xff] %v3493_v56  ;;  %2334 = vst [vmem:[%s5089_s23 + $0xa58] sm:$0xff] %v3493_v56  ;;  %3514 = vtanh.f32 %v329_v53  ;;  %v350_v53 = vld [vmem:[%s5068_s3 + $0x618] sm:$0xff] }
 0x19b   : > { %v3497_v58 = vpop.eup %3496  ;;  %1831 = vst [vmem:[%s5089_s23 + $0xa00] sm:$0xff] %v3495_v57  ;;  %2335 = vst [vmem:[%s5089_s23 + $0xa60] sm:$0xff] %v3495_v57  ;;  %3516 = vtanh.f32 %v330_v55  ;;  %v351_v55 = vld [vmem:[%s5068_s3 + $0x620] sm:$0xff]  ;;  %v352_v57 = vld [vmem:[%s5068_s3 + $0x628] sm:$0xff] }
 0x19c   : > { %v3499_v59 = vpop.eup %3498  ;;  %3518 = vtanh.f32 %v3497_v58 }
 0x19d   : > { %v3501_v60 = vpop.eup %3500  ;;  %3520 = vtanh.f32 %v3499_v59 }
 0x19e   : > { %v3503_v61 = vpop.eup %3502  ;;  %3522 = vtanh.f32 %v3501_v60 }
 0x19f   : > { %v3505_v62 = vpop.eup %3504  ;;  %3524 = vtanh.f32 %v3503_v61 }
 0x1a0   : > { %v3507_v63 = vpop.eup %3506  ;;  %3526 = vtanh.f32 %v3505_v62 }
 0x1a1   : > { %v3509_v0 = vpop.eup %3508  ;;  %3528 = vtanh.f32 %v3507_v63 }
 0x1a2   : > { %v3511_v1 = vpop.eup %3510  ;;  %3530 = vtanh.f32 %v3509_v0 }
 0x1a3   : > { %v3513_v2 = vpop.eup %3512  ;;  %3532 = vtanh.f32 %v3511_v1 }
 0x1a4   : > { %v3515_v3 = vpop.eup %3514  ;;  %3534 = vtanh.f32 %v3513_v2 }
 0x1a5   : > { %v3517_v5 = vpop.eup %3516  ;;  %3536 = vtanh.f32 %v3515_v3 }
 0x1a6   : > { %v3519_v7 = vpop.eup %3518  ;;  %3538 = vtanh.f32 %v3517_v5 }
 0x1a7   : > { %v3521_v9 = vpop.eup %3520  ;;  %1832 = vst [vmem:[%s5089_s23 + $0xa08] sm:$0xff] %v3519_v7  ;;  %2336 = vst [vmem:[%s5089_s23 + $0xa68] sm:$0xff] %v3519_v7  ;;  %3540 = vtanh.f32 %v331_v4 }
 0x1a8   : > { %v3523_v11 = vpop.eup %3522  ;;  %1833 = vst [vmem:[%s5089_s23 + $0xa10] sm:$0xff] %v3521_v9  ;;  %2337 = vst [vmem:[%s5089_s23 + $0xa70] sm:$0xff] %v3521_v9  ;;  %3542 = vtanh.f32 %v332_v6  ;;  %v353_v6 = vld [vmem:[%s5068_s3 + $0x630] sm:$0xff] }
 0x1a9   : > { %v3525_v13 = vpop.eup %3524  ;;  %1834 = vst [vmem:[%s5089_s23 + $0xa18] sm:$0xff] %v3523_v11  ;;  %2338 = vst [vmem:[%s5089_s23 + $0xa78] sm:$0xff] %v3523_v11  ;;  %3544 = vtanh.f32 %v333_v8  ;;  %v354_v8 = vld [vmem:[%s5068_s3 + $0x638] sm:$0xff] }
 0x1aa   : > { %v3527_v15 = vpop.eup %3526  ;;  %1835 = vst [vmem:[%s5089_s23 + $0xa80] sm:$0xff] %v3525_v13  ;;  %2339 = vst [vmem:[%s5089_s23 + $0xae0] sm:$0xff] %v3525_v13  ;;  %3546 = vtanh.f32 %v334_v10  ;;  %v355_v10 = vld [vmem:[%s5068_s3 + $0x640] sm:$0xff] }
 0x1ab   : > { %v3529_v17 = vpop.eup %3528  ;;  %1836 = vst [vmem:[%s5089_s23 + $0xa88] sm:$0xff] %v3527_v15  ;;  %2340 = vst [vmem:[%s5089_s23 + $0xae8] sm:$0xff] %v3527_v15  ;;  %3548 = vtanh.f32 %v335_v12  ;;  %v356_v12 = vld [vmem:[%s5068_s3 + $0x648] sm:$0xff] }
 0x1ac   : > { %v3531_v19 = vpop.eup %3530  ;;  %1837 = vst [vmem:[%s5089_s23 + $0xa90] sm:$0xff] %v3529_v17  ;;  %2341 = vst [vmem:[%s5089_s23 + $0xaf0] sm:$0xff] %v3529_v17  ;;  %3550 = vtanh.f32 %v336_v14  ;;  %v357_v14 = vld [vmem:[%s5068_s3 + $0x650] sm:$0xff] }
 0x1ad   : > { %v3533_v21 = vpop.eup %3532  ;;  %1838 = vst [vmem:[%s5089_s23 + $0xa98] sm:$0xff] %v3531_v19  ;;  %2342 = vst [vmem:[%s5089_s23 + $0xaf8] sm:$0xff] %v3531_v19  ;;  %3552 = vtanh.f32 %v337_v16  ;;  %v358_v16 = vld [vmem:[%s5068_s3 + $0x658] sm:$0xff] }
 0x1ae   : > { %v3535_v23 = vpop.eup %3534  ;;  %1839 = vst [vmem:[%s5089_s23 + $0xaa0] sm:$0xff] %v3533_v21  ;;  %2343 = vst [vmem:[%s5089_s23 + $0xb00] sm:$0xff] %v3533_v21  ;;  %3554 = vtanh.f32 %v338_v18  ;;  %v359_v18 = vld [vmem:[%s5068_s3 + $0x660] sm:$0xff] }
 0x1af   : > { %v3537_v25 = vpop.eup %3536  ;;  %1840 = vst [vmem:[%s5089_s23 + $0xaa8] sm:$0xff] %v3535_v23  ;;  %2344 = vst [vmem:[%s5089_s23 + $0xb08] sm:$0xff] %v3535_v23  ;;  %3556 = vtanh.f32 %v339_v20  ;;  %v360_v20 = vld [vmem:[%s5068_s3 + $0x668] sm:$0xff] }
 0x1b0   : > { %v3539_v26 = vpop.eup %3538  ;;  %1841 = vst [vmem:[%s5089_s23 + $0xab0] sm:$0xff] %v3537_v25  ;;  %2345 = vst [vmem:[%s5089_s23 + $0xb10] sm:$0xff] %v3537_v25  ;;  %3558 = vtanh.f32 %v340_v22  ;;  %v361_v22 = vld [vmem:[%s5068_s3 + $0x670] sm:$0xff] }
 0x1b1   : > { %v3541_v27 = vpop.eup %3540  ;;  %1842 = vst [vmem:[%s5089_s23 + $0xab8] sm:$0xff] %v3539_v26  ;;  %2346 = vst [vmem:[%s5089_s23 + $0xb18] sm:$0xff] %v3539_v26  ;;  %3560 = vtanh.f32 %v341_v24  ;;  %v362_v24 = vld [vmem:[%s5068_s3 + $0x678] sm:$0xff]  ;;  %v363_v26 = vld [vmem:[%s5068_s3 + $0x680] sm:$0xff] }
 0x1b2   : > { %v3543_v28 = vpop.eup %3542  ;;  %3562 = vtanh.f32 %v3541_v27 }
 0x1b3   : > { %v3545_v29 = vpop.eup %3544  ;;  %3564 = vtanh.f32 %v3543_v28 }
 0x1b4   : > { %v3547_v30 = vpop.eup %3546  ;;  %3566 = vtanh.f32 %v3545_v29 }
 0x1b5   : > { %v3549_v31 = vpop.eup %3548  ;;  %3568 = vtanh.f32 %v3547_v30 }
 0x1b6   : > { %v3551_v32 = vpop.eup %3550  ;;  %3570 = vtanh.f32 %v3549_v31 }
 0x1b7   : > { %v3553_v33 = vpop.eup %3552  ;;  %3572 = vtanh.f32 %v3551_v32 }
 0x1b8   : > { %v3555_v34 = vpop.eup %3554  ;;  %3574 = vtanh.f32 %v3553_v33 }
 0x1b9   : > { %v3557_v35 = vpop.eup %3556  ;;  %3576 = vtanh.f32 %v3555_v34 }
 0x1ba   : > { %v3559_v36 = vpop.eup %3558  ;;  %3578 = vtanh.f32 %v3557_v35 }
 0x1bb   : > { %v3561_v38 = vpop.eup %3560  ;;  %3580 = vtanh.f32 %v3559_v36 }
 0x1bc   : > { %v3563_v40 = vpop.eup %3562  ;;  %3582 = vtanh.f32 %v3561_v38 }
 0x1bd   : > { %v3565_v42 = vpop.eup %3564  ;;  %1843 = vst [vmem:[%s5089_s23 + $0xac0] sm:$0xff] %v3563_v40  ;;  %2347 = vst [vmem:[%s5089_s23 + $0xb20] sm:$0xff] %v3563_v40  ;;  %3584 = vtanh.f32 %v342_v37 }
 0x1be   : > { %v3567_v44 = vpop.eup %3566  ;;  %1844 = vst [vmem:[%s5089_s23 + $0xac8] sm:$0xff] %v3565_v42  ;;  %2348 = vst [vmem:[%s5089_s23 + $0xb28] sm:$0xff] %v3565_v42  ;;  %3586 = vtanh.f32 %v343_v39  ;;  %v364_v39 = vld [vmem:[%s5068_s3 + $0x688] sm:$0xff] }
 0x1bf   : > { %v3569_v46 = vpop.eup %3568  ;;  %1845 = vst [vmem:[%s5089_s23 + $0xad0] sm:$0xff] %v3567_v44  ;;  %2349 = vst [vmem:[%s5089_s23 + $0xb30] sm:$0xff] %v3567_v44  ;;  %3588 = vtanh.f32 %v344_v41  ;;  %v365_v41 = vld [vmem:[%s5068_s3 + $0x690] sm:$0xff] }
 0x1c0   : > { %v3571_v48 = vpop.eup %3570  ;;  %1846 = vst [vmem:[%s5089_s23 + $0xad8] sm:$0xff] %v3569_v46  ;;  %2350 = vst [vmem:[%s5089_s23 + $0xb38] sm:$0xff] %v3569_v46  ;;  %3590 = vtanh.f32 %v345_v43  ;;  %v366_v43 = vld [vmem:[%s5068_s3 + $0x698] sm:$0xff] }
 0x1c1   : > { %v3573_v50 = vpop.eup %3572  ;;  %1847 = vst [vmem:[%s5089_s23 + $0xb40] sm:$0xff] %v3571_v48  ;;  %2351 = vst [vmem:[%s5089_s23 + $0xba0] sm:$0xff] %v3571_v48  ;;  %3592 = vtanh.f32 %v346_v45  ;;  %v367_v45 = vld [vmem:[%s5068_s3 + $0x6a0] sm:$0xff] }
 0x1c2   : > { %v3575_v52 = vpop.eup %3574  ;;  %1848 = vst [vmem:[%s5089_s23 + $0xb48] sm:$0xff] %v3573_v50  ;;  %2352 = vst [vmem:[%s5089_s23 + $0xba8] sm:$0xff] %v3573_v50  ;;  %3594 = vtanh.f32 %v347_v47  ;;  %v368_v47 = vld [vmem:[%s5068_s3 + $0x6a8] sm:$0xff] }
 0x1c3   : > { %v3577_v54 = vpop.eup %3576  ;;  %1849 = vst [vmem:[%s5089_s23 + $0xb50] sm:$0xff] %v3575_v52  ;;  %2353 = vst [vmem:[%s5089_s23 + $0xbb0] sm:$0xff] %v3575_v52  ;;  %3596 = vtanh.f32 %v348_v49  ;;  %v369_v49 = vld [vmem:[%s5068_s3 + $0x6b0] sm:$0xff] }
 0x1c4   : > { %v3579_v56 = vpop.eup %3578  ;;  %1850 = vst [vmem:[%s5089_s23 + $0xb58] sm:$0xff] %v3577_v54  ;;  %2354 = vst [vmem:[%s5089_s23 + $0xbb8] sm:$0xff] %v3577_v54  ;;  %3598 = vtanh.f32 %v349_v51  ;;  %v370_v51 = vld [vmem:[%s5068_s3 + $0x6b8] sm:$0xff] }
 0x1c5   : > { %v3581_v58 = vpop.eup %3580  ;;  %1851 = vst [vmem:[%s5089_s23 + $0xb60] sm:$0xff] %v3579_v56  ;;  %2355 = vst [vmem:[%s5089_s23 + $0xbc0] sm:$0xff] %v3579_v56  ;;  %3600 = vtanh.f32 %v350_v53  ;;  %v371_v53 = vld [vmem:[%s5068_s3 + $0x6c0] sm:$0xff] }
 0x1c6   : > { %v3583_v59 = vpop.eup %3582  ;;  %1852 = vst [vmem:[%s5089_s23 + $0xb68] sm:$0xff] %v3581_v58  ;;  %2356 = vst [vmem:[%s5089_s23 + $0xbc8] sm:$0xff] %v3581_v58  ;;  %3602 = vtanh.f32 %v351_v55  ;;  %v372_v55 = vld [vmem:[%s5068_s3 + $0x6c8] sm:$0xff] }
 0x1c7   : > { %v3585_v60 = vpop.eup %3584  ;;  %1853 = vst [vmem:[%s5089_s23 + $0xb70] sm:$0xff] %v3583_v59  ;;  %2357 = vst [vmem:[%s5089_s23 + $0xbd0] sm:$0xff] %v3583_v59  ;;  %3604 = vtanh.f32 %v352_v57  ;;  %v373_v57 = vld [vmem:[%s5068_s3 + $0x6d0] sm:$0xff]  ;;  %v374_v59 = vld [vmem:[%s5068_s3 + $0x6d8] sm:$0xff] }
 0x1c8   : > { %v3587_v61 = vpop.eup %3586  ;;  %3606 = vtanh.f32 %v3585_v60 }
 0x1c9   : > { %v3589_v62 = vpop.eup %3588  ;;  %3608 = vtanh.f32 %v3587_v61 }
 0x1ca   : > { %v3591_v63 = vpop.eup %3590  ;;  %3610 = vtanh.f32 %v3589_v62 }
 0x1cb   : > { %v3593_v0 = vpop.eup %3592  ;;  %3612 = vtanh.f32 %v3591_v63 }
 0x1cc   : > { %v3595_v1 = vpop.eup %3594  ;;  %3614 = vtanh.f32 %v3593_v0 }
 0x1cd   : > { %v3597_v2 = vpop.eup %3596  ;;  %3616 = vtanh.f32 %v3595_v1 }
 0x1ce   : > { %v3599_v3 = vpop.eup %3598  ;;  %3618 = vtanh.f32 %v3597_v2 }
 0x1cf   : > { %v3601_v4 = vpop.eup %3600  ;;  %3620 = vtanh.f32 %v3599_v3 }
 0x1d0   : > { %v3603_v5 = vpop.eup %3602  ;;  %3622 = vtanh.f32 %v3601_v4 }
 0x1d1   : > { %v3605_v7 = vpop.eup %3604  ;;  %3624 = vtanh.f32 %v3603_v5 }
 0x1d2   : > { %v3607_v9 = vpop.eup %3606  ;;  %3626 = vtanh.f32 %v3605_v7 }
 0x1d3   : > { %v3609_v11 = vpop.eup %3608  ;;  %1854 = vst [vmem:[%s5089_s23 + $0xb78] sm:$0xff] %v3607_v9  ;;  %2358 = vst [vmem:[%s5089_s23 + $0xbd8] sm:$0xff] %v3607_v9  ;;  %3628 = vtanh.f32 %v353_v6 }
 0x1d4   : > { %v3611_v13 = vpop.eup %3610  ;;  %1855 = vst [vmem:[%s5089_s23 + $0xb80] sm:$0xff] %v3609_v11  ;;  %2359 = vst [vmem:[%s5089_s23 + $0xbe0] sm:$0xff] %v3609_v11  ;;  %3630 = vtanh.f32 %v354_v8  ;;  %v375_v8 = vld [vmem:[%s5068_s3 + $0x6e0] sm:$0xff] }
 0x1d5   : > { %v3613_v15 = vpop.eup %3612  ;;  %1856 = vst [vmem:[%s5089_s23 + $0xb88] sm:$0xff] %v3611_v13  ;;  %2360 = vst [vmem:[%s5089_s23 + $0xbe8] sm:$0xff] %v3611_v13  ;;  %3632 = vtanh.f32 %v355_v10  ;;  %v376_v10 = vld [vmem:[%s5068_s3 + $0x6e8] sm:$0xff] }
 0x1d6   : > { %v3615_v17 = vpop.eup %3614  ;;  %1857 = vst [vmem:[%s5089_s23 + $0xb90] sm:$0xff] %v3613_v15  ;;  %2361 = vst [vmem:[%s5089_s23 + $0xbf0] sm:$0xff] %v3613_v15  ;;  %3634 = vtanh.f32 %v356_v12  ;;  %v377_v12 = vld [vmem:[%s5068_s3 + $0x6f0] sm:$0xff] }
 0x1d7   : > { %v3617_v19 = vpop.eup %3616  ;;  %1858 = vst [vmem:[%s5089_s23 + $0xb98] sm:$0xff] %v3615_v17  ;;  %2362 = vst [vmem:[%s5089_s23 + $0xbf8] sm:$0xff] %v3615_v17  ;;  %3636 = vtanh.f32 %v357_v14  ;;  %v378_v14 = vld [vmem:[%s5068_s3 + $0x6f8] sm:$0xff] }
 0x1d8   : > { %v3619_v21 = vpop.eup %3618  ;;  %1859 = vst [vmem:[%s5089_s23 + $0xc00] sm:$0xff] %v3617_v19  ;;  %2363 = vst [vmem:[%s5089_s23 + $0xc60] sm:$0xff] %v3617_v19  ;;  %3638 = vtanh.f32 %v358_v16  ;;  %v379_v16 = vld [vmem:[%s5068_s3 + $0x700] sm:$0xff] }
 0x1d9   : > { %v3621_v23 = vpop.eup %3620  ;;  %1860 = vst [vmem:[%s5089_s23 + $0xc08] sm:$0xff] %v3619_v21  ;;  %2364 = vst [vmem:[%s5089_s23 + $0xc68] sm:$0xff] %v3619_v21  ;;  %3640 = vtanh.f32 %v359_v18  ;;  %v380_v18 = vld [vmem:[%s5068_s3 + $0x708] sm:$0xff] }
 0x1da   : > { %v3623_v25 = vpop.eup %3622  ;;  %1861 = vst [vmem:[%s5089_s23 + $0xc10] sm:$0xff] %v3621_v23  ;;  %2365 = vst [vmem:[%s5089_s23 + $0xc70] sm:$0xff] %v3621_v23  ;;  %3642 = vtanh.f32 %v360_v20  ;;  %v381_v20 = vld [vmem:[%s5068_s3 + $0x710] sm:$0xff] }
 0x1db   : > { %v3625_v27 = vpop.eup %3624  ;;  %1862 = vst [vmem:[%s5089_s23 + $0xc18] sm:$0xff] %v3623_v25  ;;  %2366 = vst [vmem:[%s5089_s23 + $0xc78] sm:$0xff] %v3623_v25  ;;  %3644 = vtanh.f32 %v361_v22  ;;  %v382_v22 = vld [vmem:[%s5068_s3 + $0x718] sm:$0xff] }
 0x1dc   : > { %v3627_v28 = vpop.eup %3626  ;;  %1863 = vst [vmem:[%s5089_s23 + $0xc20] sm:$0xff] %v3625_v27  ;;  %2367 = vst [vmem:[%s5089_s23 + $0xc80] sm:$0xff] %v3625_v27  ;;  %3646 = vtanh.f32 %v362_v24  ;;  %v383_v24 = vld [vmem:[%s5068_s3 + $0x720] sm:$0xff] }
 0x1dd   : > { %v3629_v29 = vpop.eup %3628  ;;  %1864 = vst [vmem:[%s5089_s23 + $0xc28] sm:$0xff] %v3627_v28  ;;  %2368 = vst [vmem:[%s5089_s23 + $0xc88] sm:$0xff] %v3627_v28  ;;  %3648 = vtanh.f32 %v363_v26  ;;  %v384_v26 = vld [vmem:[%s5068_s3 + $0x728] sm:$0xff]  ;;  %v385_v28 = vld [vmem:[%s5068_s3 + $0x730] sm:$0xff] }
 0x1de   : > { %v3631_v30 = vpop.eup %3630  ;;  %3650 = vtanh.f32 %v3629_v29 }
 0x1df   : > { %v3633_v31 = vpop.eup %3632  ;;  %3652 = vtanh.f32 %v3631_v30 }
 0x1e0   : > { %v3635_v32 = vpop.eup %3634  ;;  %3654 = vtanh.f32 %v3633_v31 }
 0x1e1   : > { %v3637_v33 = vpop.eup %3636  ;;  %3656 = vtanh.f32 %v3635_v32 }
 0x1e2   : > { %v3639_v34 = vpop.eup %3638  ;;  %3658 = vtanh.f32 %v3637_v33 }
 0x1e3   : > { %v3641_v35 = vpop.eup %3640  ;;  %3660 = vtanh.f32 %v3639_v34 }
 0x1e4   : > { %v3643_v36 = vpop.eup %3642  ;;  %3662 = vtanh.f32 %v3641_v35 }
 0x1e5   : > { %v3645_v37 = vpop.eup %3644  ;;  %3664 = vtanh.f32 %v3643_v36 }
 0x1e6   : > { %v3647_v38 = vpop.eup %3646  ;;  %3666 = vtanh.f32 %v3645_v37 }
 0x1e7   : > { %v3649_v40 = vpop.eup %3648  ;;  %3668 = vtanh.f32 %v3647_v38 }
 0x1e8   : > { %v3651_v42 = vpop.eup %3650  ;;  %3670 = vtanh.f32 %v3649_v40 }
 0x1e9   : > { %v3653_v44 = vpop.eup %3652  ;;  %1865 = vst [vmem:[%s5089_s23 + $0xc30] sm:$0xff] %v3651_v42  ;;  %2369 = vst [vmem:[%s5089_s23 + $0xc90] sm:$0xff] %v3651_v42  ;;  %3672 = vtanh.f32 %v364_v39 }
 0x1ea   : > { %v3655_v46 = vpop.eup %3654  ;;  %1866 = vst [vmem:[%s5089_s23 + $0xc38] sm:$0xff] %v3653_v44  ;;  %2370 = vst [vmem:[%s5089_s23 + $0xc98] sm:$0xff] %v3653_v44  ;;  %3674 = vtanh.f32 %v365_v41  ;;  %v386_v41 = vld [vmem:[%s5068_s3 + $0x738] sm:$0xff] }
 0x1eb   : > { %v3657_v48 = vpop.eup %3656  ;;  %1867 = vst [vmem:[%s5089_s23 + $0xc40] sm:$0xff] %v3655_v46  ;;  %2371 = vst [vmem:[%s5089_s23 + $0xca0] sm:$0xff] %v3655_v46  ;;  %3676 = vtanh.f32 %v366_v43  ;;  %v387_v43 = vld [vmem:[%s5068_s3 + $0x740] sm:$0xff] }
 0x1ec   : > { %v3659_v50 = vpop.eup %3658  ;;  %1868 = vst [vmem:[%s5089_s23 + $0xc48] sm:$0xff] %v3657_v48  ;;  %2372 = vst [vmem:[%s5089_s23 + $0xca8] sm:$0xff] %v3657_v48  ;;  %3678 = vtanh.f32 %v367_v45  ;;  %v388_v45 = vld [vmem:[%s5068_s3 + $0x748] sm:$0xff] }
 0x1ed   : > { %v3661_v52 = vpop.eup %3660  ;;  %1869 = vst [vmem:[%s5089_s23 + $0xc50] sm:$0xff] %v3659_v50  ;;  %2373 = vst [vmem:[%s5089_s23 + $0xcb0] sm:$0xff] %v3659_v50  ;;  %3680 = vtanh.f32 %v368_v47  ;;  %v389_v47 = vld [vmem:[%s5068_s3 + $0x750] sm:$0xff] }
 0x1ee   : > { %v3663_v54 = vpop.eup %3662  ;;  %1870 = vst [vmem:[%s5089_s23 + $0xc58] sm:$0xff] %v3661_v52  ;;  %2374 = vst [vmem:[%s5089_s23 + $0xcb8] sm:$0xff] %v3661_v52  ;;  %3682 = vtanh.f32 %v369_v49  ;;  %v390_v49 = vld [vmem:[%s5068_s3 + $0x758] sm:$0xff] }
 0x1ef   : > { %v3665_v56 = vpop.eup %3664  ;;  %1871 = vst [vmem:[%s5089_s23 + $0xcc0] sm:$0xff] %v3663_v54  ;;  %2375 = vst [vmem:[%s5089_s23 + $0xd20] sm:$0xff] %v3663_v54  ;;  %3684 = vtanh.f32 %v370_v51  ;;  %v391_v51 = vld [vmem:[%s5068_s3 + $0x760] sm:$0xff] }
 0x1f0   : > { %v3667_v58 = vpop.eup %3666  ;;  %1872 = vst [vmem:[%s5089_s23 + $0xcc8] sm:$0xff] %v3665_v56  ;;  %2376 = vst [vmem:[%s5089_s23 + $0xd28] sm:$0xff] %v3665_v56  ;;  %3686 = vtanh.f32 %v371_v53  ;;  %v392_v53 = vld [vmem:[%s5068_s3 + $0x768] sm:$0xff] }
 0x1f1   : > { %v3669_v60 = vpop.eup %3668  ;;  %1873 = vst [vmem:[%s5089_s23 + $0xcd0] sm:$0xff] %v3667_v58  ;;  %2377 = vst [vmem:[%s5089_s23 + $0xd30] sm:$0xff] %v3667_v58  ;;  %3688 = vtanh.f32 %v372_v55  ;;  %v393_v55 = vld [vmem:[%s5068_s3 + $0x770] sm:$0xff] }
 0x1f2   : > { %v3671_v61 = vpop.eup %3670  ;;  %1874 = vst [vmem:[%s5089_s23 + $0xcd8] sm:$0xff] %v3669_v60  ;;  %2378 = vst [vmem:[%s5089_s23 + $0xd38] sm:$0xff] %v3669_v60  ;;  %3690 = vtanh.f32 %v373_v57  ;;  %v394_v57 = vld [vmem:[%s5068_s3 + $0x778] sm:$0xff] }
 0x1f3   : > { %v3673_v62 = vpop.eup %3672  ;;  %1875 = vst [vmem:[%s5089_s23 + $0xce0] sm:$0xff] %v3671_v61  ;;  %2379 = vst [vmem:[%s5089_s23 + $0xd40] sm:$0xff] %v3671_v61  ;;  %3692 = vtanh.f32 %v374_v59  ;;  %v395_v59 = vld [vmem:[%s5068_s3 + $0x780] sm:$0xff]  ;;  %v396_v61 = vld [vmem:[%s5068_s3 + $0x788] sm:$0xff] }
 0x1f4   : > { %v3675_v63 = vpop.eup %3674  ;;  %3694 = vtanh.f32 %v3673_v62 }
 0x1f5   : > { %v3677_v0 = vpop.eup %3676  ;;  %3696 = vtanh.f32 %v3675_v63 }
 0x1f6   : > { %v3679_v1 = vpop.eup %3678  ;;  %3698 = vtanh.f32 %v3677_v0 }
 0x1f7   : > { %v3681_v2 = vpop.eup %3680  ;;  %3700 = vtanh.f32 %v3679_v1 }
 0x1f8   : > { %v3683_v3 = vpop.eup %3682  ;;  %3702 = vtanh.f32 %v3681_v2 }
 0x1f9   : > { %v3685_v4 = vpop.eup %3684  ;;  %3704 = vtanh.f32 %v3683_v3 }
 0x1fa   : > { %v3687_v5 = vpop.eup %3686  ;;  %3706 = vtanh.f32 %v3685_v4 }
 0x1fb   : > { %v3689_v6 = vpop.eup %3688  ;;  %3708 = vtanh.f32 %v3687_v5 }
 0x1fc   : > { %v3691_v7 = vpop.eup %3690  ;;  %3710 = vtanh.f32 %v3689_v6 }
 0x1fd   : > { %v3693_v9 = vpop.eup %3692  ;;  %3712 = vtanh.f32 %v3691_v7 }
 0x1fe   : > { %v3695_v11 = vpop.eup %3694  ;;  %3714 = vtanh.f32 %v3693_v9 }
 0x1ff   : > { %v3697_v13 = vpop.eup %3696  ;;  %1876 = vst [vmem:[%s5089_s23 + $0xce8] sm:$0xff] %v3695_v11  ;;  %2380 = vst [vmem:[%s5089_s23 + $0xd48] sm:$0xff] %v3695_v11  ;;  %3716 = vtanh.f32 %v375_v8 }
 0x200   : > { %v3699_v15 = vpop.eup %3698  ;;  %1877 = vst [vmem:[%s5089_s23 + $0xcf0] sm:$0xff] %v3697_v13  ;;  %2381 = vst [vmem:[%s5089_s23 + $0xd50] sm:$0xff] %v3697_v13  ;;  %3718 = vtanh.f32 %v376_v10  ;;  %v397_v10 = vld [vmem:[%s5068_s3 + $0x790] sm:$0xff] }
 0x201   : > { %v3701_v17 = vpop.eup %3700  ;;  %1878 = vst [vmem:[%s5089_s23 + $0xcf8] sm:$0xff] %v3699_v15  ;;  %2382 = vst [vmem:[%s5089_s23 + $0xd58] sm:$0xff] %v3699_v15  ;;  %3720 = vtanh.f32 %v377_v12  ;;  %v398_v12 = vld [vmem:[%s5068_s3 + $0x798] sm:$0xff] }
 0x202   : > { %v3703_v19 = vpop.eup %3702  ;;  %1879 = vst [vmem:[%s5089_s23 + $0xd00] sm:$0xff] %v3701_v17  ;;  %2383 = vst [vmem:[%s5089_s23 + $0xd60] sm:$0xff] %v3701_v17  ;;  %3722 = vtanh.f32 %v378_v14  ;;  %v399_v14 = vld [vmem:[%s5068_s3 + $0x7a0] sm:$0xff] }
 0x203   : > { %v3705_v21 = vpop.eup %3704  ;;  %1880 = vst [vmem:[%s5089_s23 + $0xd08] sm:$0xff] %v3703_v19  ;;  %2384 = vst [vmem:[%s5089_s23 + $0xd68] sm:$0xff] %v3703_v19  ;;  %3724 = vtanh.f32 %v379_v16  ;;  %v400_v16 = vld [vmem:[%s5068_s3 + $0x7a8] sm:$0xff] }
 0x204   : > { %v3707_v23 = vpop.eup %3706  ;;  %1881 = vst [vmem:[%s5089_s23 + $0xd10] sm:$0xff] %v3705_v21  ;;  %2385 = vst [vmem:[%s5089_s23 + $0xd70] sm:$0xff] %v3705_v21  ;;  %3726 = vtanh.f32 %v380_v18  ;;  %v401_v18 = vld [vmem:[%s5068_s3 + $0x7b0] sm:$0xff] }
 0x205   : > { %v3709_v25 = vpop.eup %3708  ;;  %1882 = vst [vmem:[%s5089_s23 + $0xd18] sm:$0xff] %v3707_v23  ;;  %2386 = vst [vmem:[%s5089_s23 + $0xd78] sm:$0xff] %v3707_v23  ;;  %3728 = vtanh.f32 %v381_v20  ;;  %v402_v20 = vld [vmem:[%s5068_s3 + $0x7b8] sm:$0xff] }
 0x206   : > { %v3711_v27 = vpop.eup %3710  ;;  %1883 = vst [vmem:[%s5089_s23 + $0xd80] sm:$0xff] %v3709_v25  ;;  %2387 = vst [vmem:[%s5089_s23 + $0xde0] sm:$0xff] %v3709_v25  ;;  %3730 = vtanh.f32 %v382_v22  ;;  %v403_v22 = vld [vmem:[%s5068_s3 + $0x7c0] sm:$0xff] }
 0x207   : > { %v3713_v29 = vpop.eup %3712  ;;  %1884 = vst [vmem:[%s5089_s23 + $0xd88] sm:$0xff] %v3711_v27  ;;  %2388 = vst [vmem:[%s5089_s23 + $0xde8] sm:$0xff] %v3711_v27  ;;  %3732 = vtanh.f32 %v383_v24  ;;  %v404_v24 = vld [vmem:[%s5068_s3 + $0x7c8] sm:$0xff] }
 0x208   : > { %v3715_v30 = vpop.eup %3714  ;;  %1885 = vst [vmem:[%s5089_s23 + $0xd90] sm:$0xff] %v3713_v29  ;;  %2389 = vst [vmem:[%s5089_s23 + $0xdf0] sm:$0xff] %v3713_v29  ;;  %3734 = vtanh.f32 %v384_v26  ;;  %v405_v26 = vld [vmem:[%s5068_s3 + $0x7d0] sm:$0xff] }
 0x209   : > { %v3717_v31 = vpop.eup %3716  ;;  %1886 = vst [vmem:[%s5089_s23 + $0xd98] sm:$0xff] %v3715_v30  ;;  %2390 = vst [vmem:[%s5089_s23 + $0xdf8] sm:$0xff] %v3715_v30  ;;  %3736 = vtanh.f32 %v385_v28  ;;  %v406_v28 = vld [vmem:[%s5068_s3 + $0x7d8] sm:$0xff]  ;;  %v407_v30 = vld [vmem:[%s5068_s3 + $0x7e0] sm:$0xff] }
 0x20a   : > { %v3719_v32 = vpop.eup %3718  ;;  %3738 = vtanh.f32 %v3717_v31 }
 0x20b   : > { %v3721_v33 = vpop.eup %3720  ;;  %3740 = vtanh.f32 %v3719_v32 }
 0x20c   : > { %v3723_v34 = vpop.eup %3722  ;;  %3742 = vtanh.f32 %v3721_v33 }
 0x20d   : > { %v3725_v35 = vpop.eup %3724  ;;  %3744 = vtanh.f32 %v3723_v34 }
 0x20e   : > { %v3727_v36 = vpop.eup %3726  ;;  %3746 = vtanh.f32 %v3725_v35 }
 0x20f   : > { %v3729_v37 = vpop.eup %3728  ;;  %3748 = vtanh.f32 %v3727_v36 }
 0x210   : > { %v3731_v38 = vpop.eup %3730  ;;  %3750 = vtanh.f32 %v3729_v37 }
 0x211   : > { %v3733_v39 = vpop.eup %3732  ;;  %3752 = vtanh.f32 %v3731_v38 }
 0x212   : > { %v3735_v40 = vpop.eup %3734  ;;  %3754 = vtanh.f32 %v3733_v39 }
 0x213   : > { %v3737_v42 = vpop.eup %3736  ;;  %3756 = vtanh.f32 %v3735_v40 }
 0x214   : > { %v3739_v44 = vpop.eup %3738  ;;  %3758 = vtanh.f32 %v3737_v42 }
 0x215   : > { %v3741_v46 = vpop.eup %3740  ;;  %1887 = vst [vmem:[%s5089_s23 + $0xda0] sm:$0xff] %v3739_v44  ;;  %2391 = vst [vmem:[%s5089_s23 + $0xe00] sm:$0xff] %v3739_v44  ;;  %3760 = vtanh.f32 %v386_v41 }
 0x216   : > { %v3743_v48 = vpop.eup %3742  ;;  %1888 = vst [vmem:[%s5089_s23 + $0xda8] sm:$0xff] %v3741_v46  ;;  %2392 = vst [vmem:[%s5089_s23 + $0xe08] sm:$0xff] %v3741_v46  ;;  %3762 = vtanh.f32 %v387_v43  ;;  %v408_v43 = vld [vmem:[%s5068_s3 + $0x7e8] sm:$0xff] }
 0x217   : > { %v3745_v50 = vpop.eup %3744  ;;  %1889 = vst [vmem:[%s5089_s23 + $0xdb0] sm:$0xff] %v3743_v48  ;;  %2393 = vst [vmem:[%s5089_s23 + $0xe10] sm:$0xff] %v3743_v48  ;;  %3764 = vtanh.f32 %v388_v45  ;;  %v409_v45 = vld [vmem:[%s5068_s3 + $0x7f0] sm:$0xff] }
 0x218   : > { %v3747_v52 = vpop.eup %3746  ;;  %1890 = vst [vmem:[%s5089_s23 + $0xdb8] sm:$0xff] %v3745_v50  ;;  %2394 = vst [vmem:[%s5089_s23 + $0xe18] sm:$0xff] %v3745_v50  ;;  %3766 = vtanh.f32 %v389_v47  ;;  %v410_v47 = vld [vmem:[%s5068_s3 + $0x7f8] sm:$0xff] }
 0x219   : > { %v3749_v54 = vpop.eup %3748  ;;  %1891 = vst [vmem:[%s5089_s23 + $0xdc0] sm:$0xff] %v3747_v52  ;;  %2395 = vst [vmem:[%s5089_s23 + $0xe20] sm:$0xff] %v3747_v52  ;;  %3768 = vtanh.f32 %v390_v49  ;;  %v411_v49 = vld [vmem:[%s5068_s3 + $0x800] sm:$0xff] }
 0x21a   : > { %v3751_v56 = vpop.eup %3750  ;;  %1892 = vst [vmem:[%s5089_s23 + $0xdc8] sm:$0xff] %v3749_v54  ;;  %2396 = vst [vmem:[%s5089_s23 + $0xe28] sm:$0xff] %v3749_v54  ;;  %3770 = vtanh.f32 %v391_v51  ;;  %v412_v51 = vld [vmem:[%s5068_s3 + $0x808] sm:$0xff] }
 0x21b   : > { %v3753_v58 = vpop.eup %3752  ;;  %1893 = vst [vmem:[%s5089_s23 + $0xdd0] sm:$0xff] %v3751_v56  ;;  %2397 = vst [vmem:[%s5089_s23 + $0xe30] sm:$0xff] %v3751_v56  ;;  %3772 = vtanh.f32 %v392_v53  ;;  %v413_v53 = vld [vmem:[%s5068_s3 + $0x810] sm:$0xff] }
 0x21c   : > { %v3755_v60 = vpop.eup %3754  ;;  %1894 = vst [vmem:[%s5089_s23 + $0xdd8] sm:$0xff] %v3753_v58  ;;  %2398 = vst [vmem:[%s5089_s23 + $0xe38] sm:$0xff] %v3753_v58  ;;  %3774 = vtanh.f32 %v393_v55  ;;  %v414_v55 = vld [vmem:[%s5068_s3 + $0x818] sm:$0xff] }
 0x21d   : > { %v3757_v62 = vpop.eup %3756  ;;  %1895 = vst [vmem:[%s5089_s23 + $0xe40] sm:$0xff] %v3755_v60  ;;  %2399 = vst [vmem:[%s5089_s23 + $0xea0] sm:$0xff] %v3755_v60  ;;  %3776 = vtanh.f32 %v394_v57  ;;  %v415_v57 = vld [vmem:[%s5068_s3 + $0x820] sm:$0xff] }
 0x21e   : > { %v3759_v63 = vpop.eup %3758  ;;  %1896 = vst [vmem:[%s5089_s23 + $0xe48] sm:$0xff] %v3757_v62  ;;  %2400 = vst [vmem:[%s5089_s23 + $0xea8] sm:$0xff] %v3757_v62  ;;  %3778 = vtanh.f32 %v395_v59  ;;  %v416_v59 = vld [vmem:[%s5068_s3 + $0x828] sm:$0xff] }
 0x21f   : > { %v3761_v0 = vpop.eup %3760  ;;  %1897 = vst [vmem:[%s5089_s23 + $0xe50] sm:$0xff] %v3759_v63  ;;  %2401 = vst [vmem:[%s5089_s23 + $0xeb0] sm:$0xff] %v3759_v63  ;;  %3780 = vtanh.f32 %v396_v61  ;;  %v417_v61 = vld [vmem:[%s5068_s3 + $0x830] sm:$0xff]  ;;  %v418_v63 = vld [vmem:[%s5068_s3 + $0x838] sm:$0xff] }
 0x220   : > { %v3763_v1 = vpop.eup %3762  ;;  %3782 = vtanh.f32 %v3761_v0 }
 0x221   : > { %v3765_v2 = vpop.eup %3764  ;;  %3784 = vtanh.f32 %v3763_v1 }
 0x222   : > { %v3767_v3 = vpop.eup %3766  ;;  %3786 = vtanh.f32 %v3765_v2 }
 0x223   : > { %v3769_v4 = vpop.eup %3768  ;;  %3788 = vtanh.f32 %v3767_v3 }
 0x224   : > { %v3771_v5 = vpop.eup %3770  ;;  %3790 = vtanh.f32 %v3769_v4 }
 0x225   : > { %v3773_v6 = vpop.eup %3772  ;;  %3792 = vtanh.f32 %v3771_v5 }
 0x226   : > { %v3775_v7 = vpop.eup %3774  ;;  %3794 = vtanh.f32 %v3773_v6 }
 0x227   : > { %v3777_v8 = vpop.eup %3776  ;;  %3796 = vtanh.f32 %v3775_v7 }
 0x228   : > { %v3779_v9 = vpop.eup %3778  ;;  %3798 = vtanh.f32 %v3777_v8 }
 0x229   : > { %v3781_v11 = vpop.eup %3780  ;;  %3800 = vtanh.f32 %v3779_v9 }
 0x22a   : > { %v3783_v13 = vpop.eup %3782  ;;  %3802 = vtanh.f32 %v3781_v11 }
 0x22b   : > { %v3785_v15 = vpop.eup %3784  ;;  %1898 = vst [vmem:[%s5089_s23 + $0xe58] sm:$0xff] %v3783_v13  ;;  %2402 = vst [vmem:[%s5089_s23 + $0xeb8] sm:$0xff] %v3783_v13  ;;  %3804 = vtanh.f32 %v397_v10 }
 0x22c   : > { %v3787_v17 = vpop.eup %3786  ;;  %1899 = vst [vmem:[%s5089_s23 + $0xe60] sm:$0xff] %v3785_v15  ;;  %2403 = vst [vmem:[%s5089_s23 + $0xec0] sm:$0xff] %v3785_v15  ;;  %3806 = vtanh.f32 %v398_v12  ;;  %v419_v12 = vld [vmem:[%s5068_s3 + $0x840] sm:$0xff] }
 0x22d   : > { %v3789_v19 = vpop.eup %3788  ;;  %1900 = vst [vmem:[%s5089_s23 + $0xe68] sm:$0xff] %v3787_v17  ;;  %2404 = vst [vmem:[%s5089_s23 + $0xec8] sm:$0xff] %v3787_v17  ;;  %3808 = vtanh.f32 %v399_v14  ;;  %v420_v14 = vld [vmem:[%s5068_s3 + $0x848] sm:$0xff] }
 0x22e   : > { %v3791_v21 = vpop.eup %3790  ;;  %1901 = vst [vmem:[%s5089_s23 + $0xe70] sm:$0xff] %v3789_v19  ;;  %2405 = vst [vmem:[%s5089_s23 + $0xed0] sm:$0xff] %v3789_v19  ;;  %3810 = vtanh.f32 %v400_v16  ;;  %v421_v16 = vld [vmem:[%s5068_s3 + $0x850] sm:$0xff] }
 0x22f   : > { %v3793_v23 = vpop.eup %3792  ;;  %1902 = vst [vmem:[%s5089_s23 + $0xe78] sm:$0xff] %v3791_v21  ;;  %2406 = vst [vmem:[%s5089_s23 + $0xed8] sm:$0xff] %v3791_v21  ;;  %3812 = vtanh.f32 %v401_v18  ;;  %v422_v18 = vld [vmem:[%s5068_s3 + $0x858] sm:$0xff] }
 0x230   : > { %v3795_v25 = vpop.eup %3794  ;;  %1903 = vst [vmem:[%s5089_s23 + $0xe80] sm:$0xff] %v3793_v23  ;;  %2407 = vst [vmem:[%s5089_s23 + $0xee0] sm:$0xff] %v3793_v23  ;;  %3814 = vtanh.f32 %v402_v20  ;;  %v423_v20 = vld [vmem:[%s5068_s3 + $0x860] sm:$0xff] }
 0x231   : > { %v3797_v27 = vpop.eup %3796  ;;  %1904 = vst [vmem:[%s5089_s23 + $0xe88] sm:$0xff] %v3795_v25  ;;  %2408 = vst [vmem:[%s5089_s23 + $0xee8] sm:$0xff] %v3795_v25  ;;  %3816 = vtanh.f32 %v403_v22  ;;  %v424_v22 = vld [vmem:[%s5068_s3 + $0x868] sm:$0xff] }
 0x232   : > { %v3799_v29 = vpop.eup %3798  ;;  %1905 = vst [vmem:[%s5089_s23 + $0xe90] sm:$0xff] %v3797_v27  ;;  %2409 = vst [vmem:[%s5089_s23 + $0xef0] sm:$0xff] %v3797_v27  ;;  %3818 = vtanh.f32 %v404_v24  ;;  %v425_v24 = vld [vmem:[%s5068_s3 + $0x870] sm:$0xff] }
 0x233   : > { %v3801_v31 = vpop.eup %3800  ;;  %1906 = vst [vmem:[%s5089_s23 + $0xe98] sm:$0xff] %v3799_v29  ;;  %2410 = vst [vmem:[%s5089_s23 + $0xef8] sm:$0xff] %v3799_v29  ;;  %3820 = vtanh.f32 %v405_v26  ;;  %v426_v26 = vld [vmem:[%s5068_s3 + $0x878] sm:$0xff] }
 0x234   : > { %v3803_v32 = vpop.eup %3802  ;;  %1907 = vst [vmem:[%s5089_s23 + $0xf00] sm:$0xff] %v3801_v31  ;;  %2411 = vst [vmem:[%s5089_s23 + $0xf60] sm:$0xff] %v3801_v31  ;;  %3822 = vtanh.f32 %v406_v28  ;;  %v427_v28 = vld [vmem:[%s5068_s3 + $0x880] sm:$0xff] }
 0x235   : > { %v3805_v33 = vpop.eup %3804  ;;  %1908 = vst [vmem:[%s5089_s23 + $0xf08] sm:$0xff] %v3803_v32  ;;  %2412 = vst [vmem:[%s5089_s23 + $0xf68] sm:$0xff] %v3803_v32  ;;  %3824 = vtanh.f32 %v407_v30  ;;  %v428_v30 = vld [vmem:[%s5068_s3 + $0x888] sm:$0xff]  ;;  %v429_v32 = vld [vmem:[%s5068_s3 + $0x890] sm:$0xff] }
 0x236   : > { %v3807_v34 = vpop.eup %3806  ;;  %3826 = vtanh.f32 %v3805_v33 }
 0x237   : > { %v3809_v35 = vpop.eup %3808  ;;  %3828 = vtanh.f32 %v3807_v34 }
 0x238   : > { %v3811_v36 = vpop.eup %3810  ;;  %3830 = vtanh.f32 %v3809_v35 }
 0x239   : > { %v3813_v37 = vpop.eup %3812  ;;  %3832 = vtanh.f32 %v3811_v36 }
 0x23a   : > { %v3815_v38 = vpop.eup %3814  ;;  %3834 = vtanh.f32 %v3813_v37 }
 0x23b   : > { %v3817_v39 = vpop.eup %3816  ;;  %3836 = vtanh.f32 %v3815_v38 }
 0x23c   : > { %v3819_v40 = vpop.eup %3818  ;;  %3838 = vtanh.f32 %v3817_v39 }
 0x23d   : > { %v3821_v41 = vpop.eup %3820  ;;  %3840 = vtanh.f32 %v3819_v40 }
 0x23e   : > { %v3823_v42 = vpop.eup %3822  ;;  %3842 = vtanh.f32 %v3821_v41 }
 0x23f   : > { %v3825_v44 = vpop.eup %3824  ;;  %3844 = vtanh.f32 %v3823_v42 }
 0x240   : > { %v3827_v46 = vpop.eup %3826  ;;  %3846 = vtanh.f32 %v3825_v44 }
 0x241   : > { %v3829_v48 = vpop.eup %3828  ;;  %1909 = vst [vmem:[%s5089_s23 + $0xf10] sm:$0xff] %v3827_v46  ;;  %2413 = vst [vmem:[%s5089_s23 + $0xf70] sm:$0xff] %v3827_v46  ;;  %3848 = vtanh.f32 %v408_v43 }
 0x242   : > { %v3831_v50 = vpop.eup %3830  ;;  %1910 = vst [vmem:[%s5089_s23 + $0xf18] sm:$0xff] %v3829_v48  ;;  %2414 = vst [vmem:[%s5089_s23 + $0xf78] sm:$0xff] %v3829_v48  ;;  %3850 = vtanh.f32 %v409_v45  ;;  %v430_v45 = vld [vmem:[%s5068_s3 + $0x898] sm:$0xff] }
 0x243   : > { %v3833_v52 = vpop.eup %3832  ;;  %1911 = vst [vmem:[%s5089_s23 + $0xf20] sm:$0xff] %v3831_v50  ;;  %2415 = vst [vmem:[%s5089_s23 + $0xf80] sm:$0xff] %v3831_v50  ;;  %3852 = vtanh.f32 %v410_v47  ;;  %v431_v47 = vld [vmem:[%s5068_s3 + $0x8a0] sm:$0xff] }
 0x244   : > { %v3835_v54 = vpop.eup %3834  ;;  %1912 = vst [vmem:[%s5089_s23 + $0xf28] sm:$0xff] %v3833_v52  ;;  %2416 = vst [vmem:[%s5089_s23 + $0xf88] sm:$0xff] %v3833_v52  ;;  %3854 = vtanh.f32 %v411_v49  ;;  %v432_v49 = vld [vmem:[%s5068_s3 + $0x8a8] sm:$0xff] }
 0x245   : > { %v3837_v56 = vpop.eup %3836  ;;  %1913 = vst [vmem:[%s5089_s23 + $0xf30] sm:$0xff] %v3835_v54  ;;  %2417 = vst [vmem:[%s5089_s23 + $0xf90] sm:$0xff] %v3835_v54  ;;  %3856 = vtanh.f32 %v412_v51  ;;  %v433_v51 = vld [vmem:[%s5068_s3 + $0x8b0] sm:$0xff] }
 0x246   : > { %v3839_v58 = vpop.eup %3838  ;;  %1914 = vst [vmem:[%s5089_s23 + $0xf38] sm:$0xff] %v3837_v56  ;;  %2418 = vst [vmem:[%s5089_s23 + $0xf98] sm:$0xff] %v3837_v56  ;;  %3858 = vtanh.f32 %v413_v53  ;;  %v434_v53 = vld [vmem:[%s5068_s3 + $0x8b8] sm:$0xff] }
 0x247   : > { %v3841_v60 = vpop.eup %3840  ;;  %1915 = vst [vmem:[%s5089_s23 + $0xf40] sm:$0xff] %v3839_v58  ;;  %2419 = vst [vmem:[%s5089_s23 + $0xfa0] sm:$0xff] %v3839_v58  ;;  %3860 = vtanh.f32 %v414_v55  ;;  %v435_v55 = vld [vmem:[%s5068_s3 + $0x8c0] sm:$0xff] }
 0x248   : > { %v3843_v62 = vpop.eup %3842  ;;  %1916 = vst [vmem:[%s5089_s23 + $0xf48] sm:$0xff] %v3841_v60  ;;  %2420 = vst [vmem:[%s5089_s23 + $0xfa8] sm:$0xff] %v3841_v60  ;;  %3862 = vtanh.f32 %v415_v57  ;;  %v436_v57 = vld [vmem:[%s5068_s3 + $0x8c8] sm:$0xff] }
 0x249   : > { %v3845_v0 = vpop.eup %3844  ;;  %1917 = vst [vmem:[%s5089_s23 + $0xf50] sm:$0xff] %v3843_v62  ;;  %2421 = vst [vmem:[%s5089_s23 + $0xfb0] sm:$0xff] %v3843_v62  ;;  %3864 = vtanh.f32 %v416_v59  ;;  %v437_v59 = vld [vmem:[%s5068_s3 + $0x8d0] sm:$0xff] }
 0x24a   : > { %v3847_v1 = vpop.eup %3846  ;;  %1918 = vst [vmem:[%s5089_s23 + $0xf58] sm:$0xff] %v3845_v0  ;;  %2422 = vst [vmem:[%s5089_s23 + $0xfb8] sm:$0xff] %v3845_v0  ;;  %3866 = vtanh.f32 %v417_v61  ;;  %v438_v61 = vld [vmem:[%s5068_s3 + $0x8d8] sm:$0xff] }
 0x24b   : > { %v3849_v2 = vpop.eup %3848  ;;  %1919 = vst [vmem:[%s5089_s23 + $0xfc0] sm:$0xff] %v3847_v1  ;;  %2423 = vst [vmem:[%s5089_s23 + $0x1020] sm:$0xff] %v3847_v1  ;;  %3868 = vtanh.f32 %v418_v63  ;;  %v439_v63 = vld [vmem:[%s5068_s3 + $0x8e0] sm:$0xff]  ;;  %v440_v1 = vld [vmem:[%s5068_s3 + $0x8e8] sm:$0xff] }
 0x24c   : > { %v3851_v3 = vpop.eup %3850  ;;  %3870 = vtanh.f32 %v3849_v2 }
 0x24d   : > { %v3853_v4 = vpop.eup %3852  ;;  %3872 = vtanh.f32 %v3851_v3 }
 0x24e   : > { %v3855_v5 = vpop.eup %3854  ;;  %3874 = vtanh.f32 %v3853_v4 }
 0x24f   : > { %v3857_v6 = vpop.eup %3856  ;;  %3876 = vtanh.f32 %v3855_v5 }
 0x250   : > { %v3859_v7 = vpop.eup %3858  ;;  %3878 = vtanh.f32 %v3857_v6 }
 0x251   : > { %v3861_v8 = vpop.eup %3860  ;;  %3880 = vtanh.f32 %v3859_v7 }
 0x252   : > { %v3863_v9 = vpop.eup %3862  ;;  %3882 = vtanh.f32 %v3861_v8 }
 0x253   : > { %v3865_v10 = vpop.eup %3864  ;;  %3884 = vtanh.f32 %v3863_v9 }
 0x254   : > { %v3867_v11 = vpop.eup %3866  ;;  %3886 = vtanh.f32 %v3865_v10 }
 0x255   : > { %v3869_v13 = vpop.eup %3868  ;;  %3888 = vtanh.f32 %v3867_v11 }
 0x256   : > { %v3871_v15 = vpop.eup %3870  ;;  %3890 = vtanh.f32 %v3869_v13 }
 0x257   : > { %v3873_v17 = vpop.eup %3872  ;;  %1920 = vst [vmem:[%s5089_s23 + $0xfc8] sm:$0xff] %v3871_v15  ;;  %2424 = vst [vmem:[%s5089_s23 + $0x1028] sm:$0xff] %v3871_v15  ;;  %3892 = vtanh.f32 %v419_v12 }
 0x258   : > { %v3875_v19 = vpop.eup %3874  ;;  %1921 = vst [vmem:[%s5089_s23 + $0xfd0] sm:$0xff] %v3873_v17  ;;  %2425 = vst [vmem:[%s5089_s23 + $0x1030] sm:$0xff] %v3873_v17  ;;  %3894 = vtanh.f32 %v420_v14  ;;  %v441_v14 = vld [vmem:[%s5068_s3 + $0x8f0] sm:$0xff] }
 0x259   : > { %v3877_v21 = vpop.eup %3876  ;;  %1922 = vst [vmem:[%s5089_s23 + $0xfd8] sm:$0xff] %v3875_v19  ;;  %2426 = vst [vmem:[%s5089_s23 + $0x1038] sm:$0xff] %v3875_v19  ;;  %3896 = vtanh.f32 %v421_v16  ;;  %v442_v16 = vld [vmem:[%s5068_s3 + $0x8f8] sm:$0xff] }
 0x25a   : > { %v3879_v23 = vpop.eup %3878  ;;  %1923 = vst [vmem:[%s5089_s23 + $0xfe0] sm:$0xff] %v3877_v21  ;;  %2427 = vst [vmem:[%s5089_s23 + $0x1040] sm:$0xff] %v3877_v21  ;;  %3898 = vtanh.f32 %v422_v18  ;;  %v443_v18 = vld [vmem:[%s5068_s3 + $0x900] sm:$0xff] }
 0x25b   : > { %v3881_v25 = vpop.eup %3880  ;;  %1924 = vst [vmem:[%s5089_s23 + $0xfe8] sm:$0xff] %v3879_v23  ;;  %2428 = vst [vmem:[%s5089_s23 + $0x1048] sm:$0xff] %v3879_v23  ;;  %3900 = vtanh.f32 %v423_v20  ;;  %v444_v20 = vld [vmem:[%s5068_s3 + $0x908] sm:$0xff] }
 0x25c   : > { %v3883_v27 = vpop.eup %3882  ;;  %1925 = vst [vmem:[%s5089_s23 + $0xff0] sm:$0xff] %v3881_v25  ;;  %2429 = vst [vmem:[%s5089_s23 + $0x1050] sm:$0xff] %v3881_v25  ;;  %3902 = vtanh.f32 %v424_v22  ;;  %v445_v22 = vld [vmem:[%s5068_s3 + $0x910] sm:$0xff] }
 0x25d   : > { %v3885_v29 = vpop.eup %3884  ;;  %1926 = vst [vmem:[%s5089_s23 + $0xff8] sm:$0xff] %v3883_v27  ;;  %2430 = vst [vmem:[%s5089_s23 + $0x1058] sm:$0xff] %v3883_v27  ;;  %3904 = vtanh.f32 %v425_v24  ;;  %v446_v24 = vld [vmem:[%s5068_s3 + $0x918] sm:$0xff] }
 0x25e   : > { %v3887_v31 = vpop.eup %3886  ;;  %1927 = vst [vmem:[%s5089_s23 + $0x1000] sm:$0xff] %v3885_v29  ;;  %2431 = vst [vmem:[%s5089_s23 + $0x1060] sm:$0xff] %v3885_v29  ;;  %3906 = vtanh.f32 %v426_v26  ;;  %v447_v26 = vld [vmem:[%s5068_s3 + $0x920] sm:$0xff] }
 0x25f   : > { %v3889_v33 = vpop.eup %3888  ;;  %1928 = vst [vmem:[%s5089_s23 + $0x1008] sm:$0xff] %v3887_v31  ;;  %2432 = vst [vmem:[%s5089_s23 + $0x1068] sm:$0xff] %v3887_v31  ;;  %3908 = vtanh.f32 %v427_v28  ;;  %v448_v28 = vld [vmem:[%s5068_s3 + $0x928] sm:$0xff] }
 0x260   : > { %v3891_v34 = vpop.eup %3890  ;;  %1929 = vst [vmem:[%s5089_s23 + $0x1010] sm:$0xff] %v3889_v33  ;;  %2433 = vst [vmem:[%s5089_s23 + $0x1070] sm:$0xff] %v3889_v33  ;;  %3910 = vtanh.f32 %v428_v30  ;;  %v449_v30 = vld [vmem:[%s5068_s3 + $0x930] sm:$0xff] }
 0x261   : > { %v3893_v35 = vpop.eup %3892  ;;  %1930 = vst [vmem:[%s5089_s23 + $0x1018] sm:$0xff] %v3891_v34  ;;  %2434 = vst [vmem:[%s5089_s23 + $0x1078] sm:$0xff] %v3891_v34  ;;  %3912 = vtanh.f32 %v429_v32  ;;  %v450_v32 = vld [vmem:[%s5068_s3 + $0x938] sm:$0xff]  ;;  %v451_v34 = vld [vmem:[%s5068_s3 + $0x940] sm:$0xff] }
 0x262   : > { %v3895_v36 = vpop.eup %3894  ;;  %3914 = vtanh.f32 %v3893_v35 }
 0x263   : > { %v3897_v37 = vpop.eup %3896  ;;  %3916 = vtanh.f32 %v3895_v36 }
 0x264   : > { %v3899_v38 = vpop.eup %3898  ;;  %3918 = vtanh.f32 %v3897_v37 }
 0x265   : > { %v3901_v39 = vpop.eup %3900  ;;  %3920 = vtanh.f32 %v3899_v38 }
 0x266   : > { %v3903_v40 = vpop.eup %3902  ;;  %3922 = vtanh.f32 %v3901_v39 }
 0x267   : > { %v3905_v41 = vpop.eup %3904  ;;  %3924 = vtanh.f32 %v3903_v40 }
 0x268   : > { %v3907_v42 = vpop.eup %3906  ;;  %3926 = vtanh.f32 %v3905_v41 }
 0x269   : > { %v3909_v43 = vpop.eup %3908  ;;  %3928 = vtanh.f32 %v3907_v42 }
 0x26a   : > { %v3911_v44 = vpop.eup %3910  ;;  %3930 = vtanh.f32 %v3909_v43 }
 0x26b   : > { %v3913_v46 = vpop.eup %3912  ;;  %3932 = vtanh.f32 %v3911_v44 }
 0x26c   : > { %v3915_v48 = vpop.eup %3914  ;;  %3934 = vtanh.f32 %v3913_v46 }
 0x26d   : > { %v3917_v50 = vpop.eup %3916  ;;  %1931 = vst [vmem:[%s5089_s23 + $0x1080] sm:$0xff] %v3915_v48  ;;  %2435 = vst [vmem:[%s5089_s23 + $0x10e0] sm:$0xff] %v3915_v48  ;;  %3936 = vtanh.f32 %v430_v45 }
 0x26e   : > { %v3919_v52 = vpop.eup %3918  ;;  %1932 = vst [vmem:[%s5089_s23 + $0x1088] sm:$0xff] %v3917_v50  ;;  %2436 = vst [vmem:[%s5089_s23 + $0x10e8] sm:$0xff] %v3917_v50  ;;  %3938 = vtanh.f32 %v431_v47  ;;  %v452_v47 = vld [vmem:[%s5068_s3 + $0x948] sm:$0xff] }
 0x26f   : > { %v3921_v54 = vpop.eup %3920  ;;  %1933 = vst [vmem:[%s5089_s23 + $0x1090] sm:$0xff] %v3919_v52  ;;  %2437 = vst [vmem:[%s5089_s23 + $0x10f0] sm:$0xff] %v3919_v52  ;;  %3940 = vtanh.f32 %v432_v49  ;;  %v453_v49 = vld [vmem:[%s5068_s3 + $0x950] sm:$0xff] }
 0x270   : > { %v3923_v56 = vpop.eup %3922  ;;  %1934 = vst [vmem:[%s5089_s23 + $0x1098] sm:$0xff] %v3921_v54  ;;  %2438 = vst [vmem:[%s5089_s23 + $0x10f8] sm:$0xff] %v3921_v54  ;;  %3942 = vtanh.f32 %v433_v51  ;;  %v454_v51 = vld [vmem:[%s5068_s3 + $0x958] sm:$0xff] }
 0x271   : > { %v3925_v58 = vpop.eup %3924  ;;  %1935 = vst [vmem:[%s5089_s23 + $0x10a0] sm:$0xff] %v3923_v56  ;;  %2439 = vst [vmem:[%s5089_s23 + $0x1100] sm:$0xff] %v3923_v56  ;;  %3944 = vtanh.f32 %v434_v53  ;;  %v455_v53 = vld [vmem:[%s5068_s3 + $0x960] sm:$0xff] }
 0x272   : > { %v3927_v60 = vpop.eup %3926  ;;  %1936 = vst [vmem:[%s5089_s23 + $0x10a8] sm:$0xff] %v3925_v58  ;;  %2440 = vst [vmem:[%s5089_s23 + $0x1108] sm:$0xff] %v3925_v58  ;;  %3946 = vtanh.f32 %v435_v55  ;;  %v456_v55 = vld [vmem:[%s5068_s3 + $0x968] sm:$0xff] }
 0x273   : > { %v3929_v62 = vpop.eup %3928  ;;  %1937 = vst [vmem:[%s5089_s23 + $0x10b0] sm:$0xff] %v3927_v60  ;;  %2441 = vst [vmem:[%s5089_s23 + $0x1110] sm:$0xff] %v3927_v60  ;;  %3948 = vtanh.f32 %v436_v57  ;;  %v457_v57 = vld [vmem:[%s5068_s3 + $0x970] sm:$0xff] }
 0x274   : > { %v3931_v0 = vpop.eup %3930  ;;  %1938 = vst [vmem:[%s5089_s23 + $0x10b8] sm:$0xff] %v3929_v62  ;;  %2442 = vst [vmem:[%s5089_s23 + $0x1118] sm:$0xff] %v3929_v62  ;;  %3950 = vtanh.f32 %v437_v59  ;;  %v458_v59 = vld [vmem:[%s5068_s3 + $0x978] sm:$0xff] }
 0x275   : > { %v3933_v2 = vpop.eup %3932  ;;  %1939 = vst [vmem:[%s5089_s23 + $0x10c0] sm:$0xff] %v3931_v0  ;;  %2443 = vst [vmem:[%s5089_s23 + $0x1120] sm:$0xff] %v3931_v0  ;;  %3952 = vtanh.f32 %v438_v61  ;;  %v459_v61 = vld [vmem:[%s5068_s3 + $0x980] sm:$0xff] }
 0x276   : > { %v3935_v3 = vpop.eup %3934  ;;  %1940 = vst [vmem:[%s5089_s23 + $0x10c8] sm:$0xff] %v3933_v2  ;;  %2444 = vst [vmem:[%s5089_s23 + $0x1128] sm:$0xff] %v3933_v2  ;;  %3954 = vtanh.f32 %v439_v63  ;;  %v460_v63 = vld [vmem:[%s5068_s3 + $0x988] sm:$0xff] }
 0x277   : > { %v3937_v4 = vpop.eup %3936  ;;  %1941 = vst [vmem:[%s5089_s23 + $0x10d0] sm:$0xff] %v3935_v3  ;;  %2445 = vst [vmem:[%s5089_s23 + $0x1130] sm:$0xff] %v3935_v3  ;;  %3956 = vtanh.f32 %v440_v1  ;;  %v461_v1 = vld [vmem:[%s5068_s3 + $0x990] sm:$0xff]  ;;  %v462_v3 = vld [vmem:[%s5068_s3 + $0x998] sm:$0xff] }
 0x278   : > { %v3939_v5 = vpop.eup %3938  ;;  %3958 = vtanh.f32 %v3937_v4 }
 0x279   : > { %v3941_v6 = vpop.eup %3940  ;;  %3960 = vtanh.f32 %v3939_v5 }
 0x27a   : > { %v3943_v7 = vpop.eup %3942  ;;  %3962 = vtanh.f32 %v3941_v6 }
 0x27b   : > { %v3945_v8 = vpop.eup %3944  ;;  %3964 = vtanh.f32 %v3943_v7 }
 0x27c   : > { %v3947_v9 = vpop.eup %3946  ;;  %3966 = vtanh.f32 %v3945_v8 }
 0x27d   : > { %v3949_v10 = vpop.eup %3948  ;;  %3968 = vtanh.f32 %v3947_v9 }
 0x27e   : > { %v3951_v11 = vpop.eup %3950  ;;  %3970 = vtanh.f32 %v3949_v10 }
 0x27f   : > { %v3953_v12 = vpop.eup %3952  ;;  %3972 = vtanh.f32 %v3951_v11 }
 0x280   : > { %v3955_v13 = vpop.eup %3954  ;;  %3974 = vtanh.f32 %v3953_v12 }
 0x281   : > { %v3957_v15 = vpop.eup %3956  ;;  %3976 = vtanh.f32 %v3955_v13 }
 0x282   : > { %v3959_v17 = vpop.eup %3958  ;;  %3978 = vtanh.f32 %v3957_v15 }
 0x283   : > { %v3961_v19 = vpop.eup %3960  ;;  %1942 = vst [vmem:[%s5089_s23 + $0x10d8] sm:$0xff] %v3959_v17  ;;  %2446 = vst [vmem:[%s5089_s23 + $0x1138] sm:$0xff] %v3959_v17  ;;  %3980 = vtanh.f32 %v441_v14 }
 0x284   : > { %v3963_v21 = vpop.eup %3962  ;;  %1943 = vst [vmem:[%s5089_s23 + $0x1140] sm:$0xff] %v3961_v19  ;;  %2447 = vst [vmem:[%s5089_s23 + $0x11a0] sm:$0xff] %v3961_v19  ;;  %3982 = vtanh.f32 %v442_v16  ;;  %v463_v16 = vld [vmem:[%s5068_s3 + $0x9a0] sm:$0xff] }
 0x285   : > { %v3965_v23 = vpop.eup %3964  ;;  %1944 = vst [vmem:[%s5089_s23 + $0x1148] sm:$0xff] %v3963_v21  ;;  %2448 = vst [vmem:[%s5089_s23 + $0x11a8] sm:$0xff] %v3963_v21  ;;  %3984 = vtanh.f32 %v443_v18  ;;  %v464_v18 = vld [vmem:[%s5068_s3 + $0x9a8] sm:$0xff] }
 0x286   : > { %v3967_v25 = vpop.eup %3966  ;;  %1945 = vst [vmem:[%s5089_s23 + $0x1150] sm:$0xff] %v3965_v23  ;;  %2449 = vst [vmem:[%s5089_s23 + $0x11b0] sm:$0xff] %v3965_v23  ;;  %3986 = vtanh.f32 %v444_v20  ;;  %v465_v20 = vld [vmem:[%s5068_s3 + $0x9b0] sm:$0xff] }
 0x287   : > { %v3969_v27 = vpop.eup %3968  ;;  %1946 = vst [vmem:[%s5089_s23 + $0x1158] sm:$0xff] %v3967_v25  ;;  %2450 = vst [vmem:[%s5089_s23 + $0x11b8] sm:$0xff] %v3967_v25  ;;  %3988 = vtanh.f32 %v445_v22  ;;  %v466_v22 = vld [vmem:[%s5068_s3 + $0x9b8] sm:$0xff] }
 0x288   : > { %v3971_v29 = vpop.eup %3970  ;;  %1947 = vst [vmem:[%s5089_s23 + $0x1160] sm:$0xff] %v3969_v27  ;;  %2451 = vst [vmem:[%s5089_s23 + $0x11c0] sm:$0xff] %v3969_v27  ;;  %3990 = vtanh.f32 %v446_v24  ;;  %v467_v24 = vld [vmem:[%s5068_s3 + $0x9c0] sm:$0xff] }
 0x289   : > { %v3973_v31 = vpop.eup %3972  ;;  %1948 = vst [vmem:[%s5089_s23 + $0x1168] sm:$0xff] %v3971_v29  ;;  %2452 = vst [vmem:[%s5089_s23 + $0x11c8] sm:$0xff] %v3971_v29  ;;  %3992 = vtanh.f32 %v447_v26  ;;  %v468_v26 = vld [vmem:[%s5068_s3 + $0x9c8] sm:$0xff] }
 0x28a   : > { %v3975_v33 = vpop.eup %3974  ;;  %1949 = vst [vmem:[%s5089_s23 + $0x1170] sm:$0xff] %v3973_v31  ;;  %2453 = vst [vmem:[%s5089_s23 + $0x11d0] sm:$0xff] %v3973_v31  ;;  %3994 = vtanh.f32 %v448_v28  ;;  %v469_v28 = vld [vmem:[%s5068_s3 + $0x9d0] sm:$0xff] }
 0x28b   : > { %v3977_v35 = vpop.eup %3976  ;;  %1950 = vst [vmem:[%s5089_s23 + $0x1178] sm:$0xff] %v3975_v33  ;;  %2454 = vst [vmem:[%s5089_s23 + $0x11d8] sm:$0xff] %v3975_v33  ;;  %3996 = vtanh.f32 %v449_v30  ;;  %v470_v30 = vld [vmem:[%s5068_s3 + $0x9d8] sm:$0xff] }
 0x28c   : > { %v3979_v36 = vpop.eup %3978  ;;  %1951 = vst [vmem:[%s5089_s23 + $0x1180] sm:$0xff] %v3977_v35  ;;  %2455 = vst [vmem:[%s5089_s23 + $0x11e0] sm:$0xff] %v3977_v35  ;;  %3998 = vtanh.f32 %v450_v32  ;;  %v471_v32 = vld [vmem:[%s5068_s3 + $0x9e0] sm:$0xff] }
 0x28d   : > { %v3981_v37 = vpop.eup %3980  ;;  %1952 = vst [vmem:[%s5089_s23 + $0x1188] sm:$0xff] %v3979_v36  ;;  %2456 = vst [vmem:[%s5089_s23 + $0x11e8] sm:$0xff] %v3979_v36  ;;  %4000 = vtanh.f32 %v451_v34  ;;  %v472_v34 = vld [vmem:[%s5068_s3 + $0x9e8] sm:$0xff]  ;;  %v473_v36 = vld [vmem:[%s5068_s3 + $0x9f0] sm:$0xff] }
 0x28e   : > { %v3983_v38 = vpop.eup %3982  ;;  %4002 = vtanh.f32 %v3981_v37 }
 0x28f   : > { %v3985_v39 = vpop.eup %3984  ;;  %4004 = vtanh.f32 %v3983_v38 }
 0x290   : > { %v3987_v40 = vpop.eup %3986  ;;  %4006 = vtanh.f32 %v3985_v39 }
 0x291   : > { %v3989_v41 = vpop.eup %3988  ;;  %4008 = vtanh.f32 %v3987_v40 }
 0x292   : > { %v3991_v42 = vpop.eup %3990  ;;  %4010 = vtanh.f32 %v3989_v41 }
 0x293   : > { %v3993_v43 = vpop.eup %3992  ;;  %4012 = vtanh.f32 %v3991_v42 }
 0x294   : > { %v3995_v44 = vpop.eup %3994  ;;  %4014 = vtanh.f32 %v3993_v43 }
 0x295   : > { %v3997_v45 = vpop.eup %3996  ;;  %4016 = vtanh.f32 %v3995_v44 }
 0x296   : > { %v3999_v46 = vpop.eup %3998  ;;  %4018 = vtanh.f32 %v3997_v45 }
 0x297   : > { %v4001_v48 = vpop.eup %4000  ;;  %4020 = vtanh.f32 %v3999_v46 }
 0x298   : > { %v4003_v50 = vpop.eup %4002  ;;  %4022 = vtanh.f32 %v4001_v48 }
 0x299   : > { %v4005_v52 = vpop.eup %4004  ;;  %1953 = vst [vmem:[%s5089_s23 + $0x1190] sm:$0xff] %v4003_v50  ;;  %2457 = vst [vmem:[%s5089_s23 + $0x11f0] sm:$0xff] %v4003_v50  ;;  %4024 = vtanh.f32 %v452_v47 }
 0x29a   : > { %v4007_v54 = vpop.eup %4006  ;;  %1954 = vst [vmem:[%s5089_s23 + $0x1198] sm:$0xff] %v4005_v52  ;;  %2458 = vst [vmem:[%s5089_s23 + $0x11f8] sm:$0xff] %v4005_v52  ;;  %4026 = vtanh.f32 %v453_v49  ;;  %v474_v49 = vld [vmem:[%s5068_s3 + $0x9f8] sm:$0xff] }
 0x29b   : > { %v4009_v56 = vpop.eup %4008  ;;  %1955 = vst [vmem:[%s5089_s23 + $0x1200] sm:$0xff] %v4007_v54  ;;  %2459 = vst [vmem:[%s5089_s23 + $0x1260] sm:$0xff] %v4007_v54  ;;  %4028 = vtanh.f32 %v454_v51  ;;  %v475_v51 = vld [vmem:[%s5068_s3 + $0xa00] sm:$0xff] }
 0x29c   : > { %v4011_v58 = vpop.eup %4010  ;;  %1956 = vst [vmem:[%s5089_s23 + $0x1208] sm:$0xff] %v4009_v56  ;;  %2460 = vst [vmem:[%s5089_s23 + $0x1268] sm:$0xff] %v4009_v56  ;;  %4030 = vtanh.f32 %v455_v53  ;;  %v476_v53 = vld [vmem:[%s5068_s3 + $0xa08] sm:$0xff] }
 0x29d   : > { %v4013_v60 = vpop.eup %4012  ;;  %1957 = vst [vmem:[%s5089_s23 + $0x1210] sm:$0xff] %v4011_v58  ;;  %2461 = vst [vmem:[%s5089_s23 + $0x1270] sm:$0xff] %v4011_v58  ;;  %4032 = vtanh.f32 %v456_v55  ;;  %v477_v55 = vld [vmem:[%s5068_s3 + $0xa10] sm:$0xff] }
 0x29e   : > { %v4015_v62 = vpop.eup %4014  ;;  %1958 = vst [vmem:[%s5089_s23 + $0x1218] sm:$0xff] %v4013_v60  ;;  %2462 = vst [vmem:[%s5089_s23 + $0x1278] sm:$0xff] %v4013_v60  ;;  %4034 = vtanh.f32 %v457_v57  ;;  %v478_v57 = vld [vmem:[%s5068_s3 + $0xa18] sm:$0xff] }
 0x29f   : > { %v4017_v0 = vpop.eup %4016  ;;  %1959 = vst [vmem:[%s5089_s23 + $0x1220] sm:$0xff] %v4015_v62  ;;  %2463 = vst [vmem:[%s5089_s23 + $0x1280] sm:$0xff] %v4015_v62  ;;  %4036 = vtanh.f32 %v458_v59  ;;  %v479_v59 = vld [vmem:[%s5068_s3 + $0xa20] sm:$0xff] }
 0x2a0   : > { %v4019_v2 = vpop.eup %4018  ;;  %1960 = vst [vmem:[%s5089_s23 + $0x1228] sm:$0xff] %v4017_v0  ;;  %2464 = vst [vmem:[%s5089_s23 + $0x1288] sm:$0xff] %v4017_v0  ;;  %4038 = vtanh.f32 %v459_v61  ;;  %v480_v61 = vld [vmem:[%s5068_s3 + $0xa28] sm:$0xff] }
 0x2a1   : > { %v4021_v4 = vpop.eup %4020  ;;  %1961 = vst [vmem:[%s5089_s23 + $0x1230] sm:$0xff] %v4019_v2  ;;  %2465 = vst [vmem:[%s5089_s23 + $0x1290] sm:$0xff] %v4019_v2  ;;  %4040 = vtanh.f32 %v460_v63  ;;  %v481_v63 = vld [vmem:[%s5068_s3 + $0xa30] sm:$0xff] }
 0x2a2   : > { %v4023_v5 = vpop.eup %4022  ;;  %1962 = vst [vmem:[%s5089_s23 + $0x1238] sm:$0xff] %v4021_v4  ;;  %2466 = vst [vmem:[%s5089_s23 + $0x1298] sm:$0xff] %v4021_v4  ;;  %4042 = vtanh.f32 %v461_v1  ;;  %v482_v1 = vld [vmem:[%s5068_s3 + $0xa38] sm:$0xff] }
 0x2a3   : > { %v4025_v6 = vpop.eup %4024  ;;  %1963 = vst [vmem:[%s5089_s23 + $0x1240] sm:$0xff] %v4023_v5  ;;  %2467 = vst [vmem:[%s5089_s23 + $0x12a0] sm:$0xff] %v4023_v5  ;;  %4044 = vtanh.f32 %v462_v3  ;;  %v483_v3 = vld [vmem:[%s5068_s3 + $0xa40] sm:$0xff]  ;;  %v484_v5 = vld [vmem:[%s5068_s3 + $0xa48] sm:$0xff] }
 0x2a4   : > { %v4027_v7 = vpop.eup %4026  ;;  %4046 = vtanh.f32 %v4025_v6 }
 0x2a5   : > { %v4029_v8 = vpop.eup %4028  ;;  %4048 = vtanh.f32 %v4027_v7 }
 0x2a6   : > { %v4031_v9 = vpop.eup %4030  ;;  %4050 = vtanh.f32 %v4029_v8 }
 0x2a7   : > { %v4033_v10 = vpop.eup %4032  ;;  %4052 = vtanh.f32 %v4031_v9 }
 0x2a8   : > { %v4035_v11 = vpop.eup %4034  ;;  %4054 = vtanh.f32 %v4033_v10 }
 0x2a9   : > { %v4037_v12 = vpop.eup %4036  ;;  %4056 = vtanh.f32 %v4035_v11 }
 0x2aa   : > { %v4039_v13 = vpop.eup %4038  ;;  %4058 = vtanh.f32 %v4037_v12 }
 0x2ab   : > { %v4041_v14 = vpop.eup %4040  ;;  %4060 = vtanh.f32 %v4039_v13 }
 0x2ac   : > { %v4043_v15 = vpop.eup %4042  ;;  %4062 = vtanh.f32 %v4041_v14 }
 0x2ad   : > { %v4045_v17 = vpop.eup %4044  ;;  %4064 = vtanh.f32 %v4043_v15 }
 0x2ae   : > { %v4047_v19 = vpop.eup %4046  ;;  %4066 = vtanh.f32 %v4045_v17 }
 0x2af   : > { %v4049_v21 = vpop.eup %4048  ;;  %1964 = vst [vmem:[%s5089_s23 + $0x1248] sm:$0xff] %v4047_v19  ;;  %2468 = vst [vmem:[%s5089_s23 + $0x12a8] sm:$0xff] %v4047_v19  ;;  %4068 = vtanh.f32 %v463_v16 }
 0x2b0   : > { %v4051_v23 = vpop.eup %4050  ;;  %1965 = vst [vmem:[%s5089_s23 + $0x1250] sm:$0xff] %v4049_v21  ;;  %2469 = vst [vmem:[%s5089_s23 + $0x12b0] sm:$0xff] %v4049_v21  ;;  %4070 = vtanh.f32 %v464_v18  ;;  %v485_v18 = vld [vmem:[%s5068_s3 + $0xa50] sm:$0xff] }
 0x2b1   : > { %v4053_v25 = vpop.eup %4052  ;;  %1966 = vst [vmem:[%s5089_s23 + $0x1258] sm:$0xff] %v4051_v23  ;;  %2470 = vst [vmem:[%s5089_s23 + $0x12b8] sm:$0xff] %v4051_v23  ;;  %4072 = vtanh.f32 %v465_v20  ;;  %v486_v20 = vld [vmem:[%s5068_s3 + $0xa58] sm:$0xff] }
 0x2b2   : > { %v4055_v27 = vpop.eup %4054  ;;  %1967 = vst [vmem:[%s5089_s23 + $0x12c0] sm:$0xff] %v4053_v25  ;;  %2471 = vst [vmem:[%s5089_s23 + $0x1320] sm:$0xff] %v4053_v25  ;;  %4074 = vtanh.f32 %v466_v22  ;;  %v487_v22 = vld [vmem:[%s5068_s3 + $0xa60] sm:$0xff] }
 0x2b3   : > { %v4057_v29 = vpop.eup %4056  ;;  %1968 = vst [vmem:[%s5089_s23 + $0x12c8] sm:$0xff] %v4055_v27  ;;  %2472 = vst [vmem:[%s5089_s23 + $0x1328] sm:$0xff] %v4055_v27  ;;  %4076 = vtanh.f32 %v467_v24  ;;  %v488_v24 = vld [vmem:[%s5068_s3 + $0xa68] sm:$0xff] }
 0x2b4   : > { %v4059_v31 = vpop.eup %4058  ;;  %1969 = vst [vmem:[%s5089_s23 + $0x12d0] sm:$0xff] %v4057_v29  ;;  %2473 = vst [vmem:[%s5089_s23 + $0x1330] sm:$0xff] %v4057_v29  ;;  %4078 = vtanh.f32 %v468_v26  ;;  %v489_v26 = vld [vmem:[%s5068_s3 + $0xa70] sm:$0xff] }
 0x2b5   : > { %v4061_v33 = vpop.eup %4060  ;;  %1970 = vst [vmem:[%s5089_s23 + $0x12d8] sm:$0xff] %v4059_v31  ;;  %2474 = vst [vmem:[%s5089_s23 + $0x1338] sm:$0xff] %v4059_v31  ;;  %4080 = vtanh.f32 %v469_v28  ;;  %v490_v28 = vld [vmem:[%s5068_s3 + $0xa78] sm:$0xff] }
 0x2b6   : > { %v4063_v35 = vpop.eup %4062  ;;  %1971 = vst [vmem:[%s5089_s23 + $0x12e0] sm:$0xff] %v4061_v33  ;;  %2475 = vst [vmem:[%s5089_s23 + $0x1340] sm:$0xff] %v4061_v33  ;;  %4082 = vtanh.f32 %v470_v30  ;;  %v491_v30 = vld [vmem:[%s5068_s3 + $0xa80] sm:$0xff] }
 0x2b7   : > { %v4065_v37 = vpop.eup %4064  ;;  %1972 = vst [vmem:[%s5089_s23 + $0x12e8] sm:$0xff] %v4063_v35  ;;  %2476 = vst [vmem:[%s5089_s23 + $0x1348] sm:$0xff] %v4063_v35  ;;  %4084 = vtanh.f32 %v471_v32  ;;  %v492_v32 = vld [vmem:[%s5068_s3 + $0xa88] sm:$0xff] }
 0x2b8   : > { %v4067_v38 = vpop.eup %4066  ;;  %1973 = vst [vmem:[%s5089_s23 + $0x12f0] sm:$0xff] %v4065_v37  ;;  %2477 = vst [vmem:[%s5089_s23 + $0x1350] sm:$0xff] %v4065_v37  ;;  %4086 = vtanh.f32 %v472_v34  ;;  %v493_v34 = vld [vmem:[%s5068_s3 + $0xa90] sm:$0xff] }
 0x2b9   : > { %v4069_v39 = vpop.eup %4068  ;;  %1974 = vst [vmem:[%s5089_s23 + $0x12f8] sm:$0xff] %v4067_v38  ;;  %2478 = vst [vmem:[%s5089_s23 + $0x1358] sm:$0xff] %v4067_v38  ;;  %4088 = vtanh.f32 %v473_v36  ;;  %v494_v36 = vld [vmem:[%s5068_s3 + $0xa98] sm:$0xff]  ;;  %v495_v38 = vld [vmem:[%s5068_s3 + $0xaa0] sm:$0xff] }
 0x2ba   : > { %v4071_v40 = vpop.eup %4070  ;;  %4090 = vtanh.f32 %v4069_v39 }
 0x2bb   : > { %v4073_v41 = vpop.eup %4072  ;;  %4092 = vtanh.f32 %v4071_v40 }
 0x2bc   : > { %v4075_v42 = vpop.eup %4074  ;;  %4094 = vtanh.f32 %v4073_v41 }
 0x2bd   : > { %v4077_v43 = vpop.eup %4076  ;;  %4096 = vtanh.f32 %v4075_v42 }
 0x2be   : > { %v4079_v44 = vpop.eup %4078  ;;  %4098 = vtanh.f32 %v4077_v43 }
 0x2bf   : > { %v4081_v45 = vpop.eup %4080  ;;  %4100 = vtanh.f32 %v4079_v44 }
 0x2c0   : > { %v4083_v46 = vpop.eup %4082  ;;  %4102 = vtanh.f32 %v4081_v45 }
 0x2c1   : > { %v4085_v47 = vpop.eup %4084  ;;  %4104 = vtanh.f32 %v4083_v46 }
 0x2c2   : > { %v4087_v48 = vpop.eup %4086  ;;  %4106 = vtanh.f32 %v4085_v47 }
 0x2c3   : > { %v4089_v50 = vpop.eup %4088  ;;  %4108 = vtanh.f32 %v4087_v48 }
 0x2c4   : > { %v4091_v52 = vpop.eup %4090  ;;  %4110 = vtanh.f32 %v4089_v50 }
 0x2c5   : > { %v4093_v54 = vpop.eup %4092  ;;  %1975 = vst [vmem:[%s5089_s23 + $0x1300] sm:$0xff] %v4091_v52  ;;  %2479 = vst [vmem:[%s5089_s23 + $0x1360] sm:$0xff] %v4091_v52  ;;  %4112 = vtanh.f32 %v474_v49 }
 0x2c6   : > { %v4095_v56 = vpop.eup %4094  ;;  %1976 = vst [vmem:[%s5089_s23 + $0x1308] sm:$0xff] %v4093_v54  ;;  %2480 = vst [vmem:[%s5089_s23 + $0x1368] sm:$0xff] %v4093_v54  ;;  %4114 = vtanh.f32 %v475_v51  ;;  %v496_v51 = vld [vmem:[%s5068_s3 + $0xaa8] sm:$0xff] }
 0x2c7   : > { %v4097_v58 = vpop.eup %4096  ;;  %1977 = vst [vmem:[%s5089_s23 + $0x1310] sm:$0xff] %v4095_v56  ;;  %2481 = vst [vmem:[%s5089_s23 + $0x1370] sm:$0xff] %v4095_v56  ;;  %4116 = vtanh.f32 %v476_v53  ;;  %v497_v53 = vld [vmem:[%s5068_s3 + $0xab0] sm:$0xff] }
 0x2c8   : > { %v4099_v60 = vpop.eup %4098  ;;  %1978 = vst [vmem:[%s5089_s23 + $0x1318] sm:$0xff] %v4097_v58  ;;  %2482 = vst [vmem:[%s5089_s23 + $0x1378] sm:$0xff] %v4097_v58  ;;  %4118 = vtanh.f32 %v477_v55  ;;  %v498_v55 = vld [vmem:[%s5068_s3 + $0xab8] sm:$0xff] }
 0x2c9   : > { %v4101_v62 = vpop.eup %4100  ;;  %1979 = vst [vmem:[%s5089_s23 + $0x1380] sm:$0xff] %v4099_v60  ;;  %2483 = vst [vmem:[%s5089_s23 + $0x13e0] sm:$0xff] %v4099_v60  ;;  %4120 = vtanh.f32 %v478_v57  ;;  %v499_v57 = vld [vmem:[%s5068_s3 + $0xac0] sm:$0xff] }
 0x2ca   : > { %v4103_v0 = vpop.eup %4102  ;;  %1980 = vst [vmem:[%s5089_s23 + $0x1388] sm:$0xff] %v4101_v62  ;;  %2484 = vst [vmem:[%s5089_s23 + $0x13e8] sm:$0xff] %v4101_v62  ;;  %4122 = vtanh.f32 %v479_v59  ;;  %v500_v59 = vld [vmem:[%s5068_s3 + $0xac8] sm:$0xff] }
 0x2cb   : > { %v4105_v2 = vpop.eup %4104  ;;  %1981 = vst [vmem:[%s5089_s23 + $0x1390] sm:$0xff] %v4103_v0  ;;  %2485 = vst [vmem:[%s5089_s23 + $0x13f0] sm:$0xff] %v4103_v0  ;;  %4124 = vtanh.f32 %v480_v61  ;;  %v501_v61 = vld [vmem:[%s5068_s3 + $0xad0] sm:$0xff] }
 0x2cc   : > { %v4107_v4 = vpop.eup %4106  ;;  %1982 = vst [vmem:[%s5089_s23 + $0x1398] sm:$0xff] %v4105_v2  ;;  %2486 = vst [vmem:[%s5089_s23 + $0x13f8] sm:$0xff] %v4105_v2  ;;  %4126 = vtanh.f32 %v481_v63  ;;  %v502_v63 = vld [vmem:[%s5068_s3 + $0xad8] sm:$0xff] }
 0x2cd   : > { %v4109_v6 = vpop.eup %4108  ;;  %1983 = vst [vmem:[%s5089_s23 + $0x13a0] sm:$0xff] %v4107_v4  ;;  %2487 = vst [vmem:[%s5089_s23 + $0x1400] sm:$0xff] %v4107_v4  ;;  %4128 = vtanh.f32 %v482_v1  ;;  %v503_v1 = vld [vmem:[%s5068_s3 + $0xae0] sm:$0xff] }
 0x2ce   : > { %v4111_v7 = vpop.eup %4110  ;;  %1984 = vst [vmem:[%s5089_s23 + $0x13a8] sm:$0xff] %v4109_v6  ;;  %2488 = vst [vmem:[%s5089_s23 + $0x1408] sm:$0xff] %v4109_v6  ;;  %4130 = vtanh.f32 %v483_v3  ;;  %v504_v3 = vld [vmem:[%s5068_s3 + $0xae8] sm:$0xff] }
 0x2cf   : > { %v4113_v8 = vpop.eup %4112  ;;  %1985 = vst [vmem:[%s5089_s23 + $0x13b0] sm:$0xff] %v4111_v7  ;;  %2489 = vst [vmem:[%s5089_s23 + $0x1410] sm:$0xff] %v4111_v7  ;;  %4132 = vtanh.f32 %v484_v5  ;;  %v505_v5 = vld [vmem:[%s5068_s3 + $0xaf0] sm:$0xff]  ;;  %v506_v7 = vld [vmem:[%s5068_s3 + $0xaf8] sm:$0xff] }
 0x2d0   : > { %v4115_v9 = vpop.eup %4114  ;;  %4134 = vtanh.f32 %v4113_v8 }
 0x2d1   : > { %v4117_v10 = vpop.eup %4116  ;;  %4136 = vtanh.f32 %v4115_v9 }
 0x2d2   : > { %v4119_v11 = vpop.eup %4118  ;;  %4138 = vtanh.f32 %v4117_v10 }
 0x2d3   : > { %v4121_v12 = vpop.eup %4120  ;;  %4140 = vtanh.f32 %v4119_v11 }
 0x2d4   : > { %v4123_v13 = vpop.eup %4122  ;;  %4142 = vtanh.f32 %v4121_v12 }
 0x2d5   : > { %v4125_v14 = vpop.eup %4124  ;;  %4144 = vtanh.f32 %v4123_v13 }
 0x2d6   : > { %v4127_v15 = vpop.eup %4126  ;;  %4146 = vtanh.f32 %v4125_v14 }
 0x2d7   : > { %v4129_v16 = vpop.eup %4128  ;;  %4148 = vtanh.f32 %v4127_v15 }
 0x2d8   : > { %v4131_v17 = vpop.eup %4130  ;;  %4150 = vtanh.f32 %v4129_v16 }
 0x2d9   : > { %v4133_v19 = vpop.eup %4132  ;;  %4152 = vtanh.f32 %v4131_v17 }
 0x2da   : > { %v4135_v21 = vpop.eup %4134  ;;  %4154 = vtanh.f32 %v4133_v19 }
 0x2db   : > { %v4137_v23 = vpop.eup %4136  ;;  %1986 = vst [vmem:[%s5089_s23 + $0x13b8] sm:$0xff] %v4135_v21  ;;  %2490 = vst [vmem:[%s5089_s23 + $0x1418] sm:$0xff] %v4135_v21  ;;  %4156 = vtanh.f32 %v485_v18 }
 0x2dc   : > { %v4139_v25 = vpop.eup %4138  ;;  %1987 = vst [vmem:[%s5089_s23 + $0x13c0] sm:$0xff] %v4137_v23  ;;  %2491 = vst [vmem:[%s5089_s23 + $0x1420] sm:$0xff] %v4137_v23  ;;  %4158 = vtanh.f32 %v486_v20  ;;  %v507_v20 = vld [vmem:[%s5068_s3 + $0xb00] sm:$0xff] }
 0x2dd   : > { %v4141_v27 = vpop.eup %4140  ;;  %1988 = vst [vmem:[%s5089_s23 + $0x13c8] sm:$0xff] %v4139_v25  ;;  %2492 = vst [vmem:[%s5089_s23 + $0x1428] sm:$0xff] %v4139_v25  ;;  %4160 = vtanh.f32 %v487_v22  ;;  %v508_v22 = vld [vmem:[%s5068_s3 + $0xb08] sm:$0xff] }
 0x2de   : > { %v4143_v29 = vpop.eup %4142  ;;  %1989 = vst [vmem:[%s5089_s23 + $0x13d0] sm:$0xff] %v4141_v27  ;;  %2493 = vst [vmem:[%s5089_s23 + $0x1430] sm:$0xff] %v4141_v27  ;;  %4162 = vtanh.f32 %v488_v24  ;;  %v509_v24 = vld [vmem:[%s5068_s3 + $0xb10] sm:$0xff] }
 0x2df   : > { %v4145_v31 = vpop.eup %4144  ;;  %1990 = vst [vmem:[%s5089_s23 + $0x13d8] sm:$0xff] %v4143_v29  ;;  %2494 = vst [vmem:[%s5089_s23 + $0x1438] sm:$0xff] %v4143_v29  ;;  %4164 = vtanh.f32 %v489_v26  ;;  %v510_v26 = vld [vmem:[%s5068_s3 + $0xb18] sm:$0xff] }
 0x2e0   : > { %v4147_v33 = vpop.eup %4146  ;;  %1991 = vst [vmem:[%s5089_s23 + $0x1440] sm:$0xff] %v4145_v31  ;;  %2495 = vst [vmem:[%s5089_s23 + $0x14a0] sm:$0xff] %v4145_v31  ;;  %4166 = vtanh.f32 %v490_v28  ;;  %v511_v28 = vld [vmem:[%s5068_s3 + $0xb20] sm:$0xff] }
 0x2e1   : > { %v4149_v35 = vpop.eup %4148  ;;  %1992 = vst [vmem:[%s5089_s23 + $0x1448] sm:$0xff] %v4147_v33  ;;  %2496 = vst [vmem:[%s5089_s23 + $0x14a8] sm:$0xff] %v4147_v33  ;;  %4168 = vtanh.f32 %v491_v30  ;;  %v512_v30 = vld [vmem:[%s5068_s3 + $0xb28] sm:$0xff] }
 0x2e2   : > { %v4151_v37 = vpop.eup %4150  ;;  %1993 = vst [vmem:[%s5089_s23 + $0x1450] sm:$0xff] %v4149_v35  ;;  %2497 = vst [vmem:[%s5089_s23 + $0x14b0] sm:$0xff] %v4149_v35  ;;  %4170 = vtanh.f32 %v492_v32  ;;  %v513_v32 = vld [vmem:[%s5068_s3 + $0xb30] sm:$0xff] }
 0x2e3   : > { %v4153_v39 = vpop.eup %4152  ;;  %1994 = vst [vmem:[%s5089_s23 + $0x1458] sm:$0xff] %v4151_v37  ;;  %2498 = vst [vmem:[%s5089_s23 + $0x14b8] sm:$0xff] %v4151_v37  ;;  %4172 = vtanh.f32 %v493_v34  ;;  %v514_v34 = vld [vmem:[%s5068_s3 + $0xb38] sm:$0xff] }
 0x2e4   : > { %v4155_v40 = vpop.eup %4154  ;;  %1995 = vst [vmem:[%s5089_s23 + $0x1460] sm:$0xff] %v4153_v39  ;;  %2499 = vst [vmem:[%s5089_s23 + $0x14c0] sm:$0xff] %v4153_v39  ;;  %4174 = vtanh.f32 %v494_v36  ;;  %v515_v36 = vld [vmem:[%s5068_s3 + $0xb40] sm:$0xff] }
 0x2e5   : > { %v4157_v41 = vpop.eup %4156  ;;  %1996 = vst [vmem:[%s5089_s23 + $0x1468] sm:$0xff] %v4155_v40  ;;  %2500 = vst [vmem:[%s5089_s23 + $0x14c8] sm:$0xff] %v4155_v40  ;;  %4176 = vtanh.f32 %v495_v38  ;;  %v516_v38 = vld [vmem:[%s5068_s3 + $0xb48] sm:$0xff]  ;;  %v517_v40 = vld [vmem:[%s5068_s3 + $0xb50] sm:$0xff] }
 0x2e6   : > { %v4159_v42 = vpop.eup %4158  ;;  %4178 = vtanh.f32 %v4157_v41 }
 0x2e7   : > { %v4161_v43 = vpop.eup %4160  ;;  %4180 = vtanh.f32 %v4159_v42 }
 0x2e8   : > { %v4163_v44 = vpop.eup %4162  ;;  %4182 = vtanh.f32 %v4161_v43 }
 0x2e9   : > { %v4165_v45 = vpop.eup %4164  ;;  %4184 = vtanh.f32 %v4163_v44 }
 0x2ea   : > { %v4167_v46 = vpop.eup %4166  ;;  %4186 = vtanh.f32 %v4165_v45 }
 0x2eb   : > { %v4169_v47 = vpop.eup %4168  ;;  %4188 = vtanh.f32 %v4167_v46 }
 0x2ec   : > { %v4171_v48 = vpop.eup %4170  ;;  %4190 = vtanh.f32 %v4169_v47 }
 0x2ed   : > { %v4173_v49 = vpop.eup %4172  ;;  %4192 = vtanh.f32 %v4171_v48 }
 0x2ee   : > { %v4175_v50 = vpop.eup %4174  ;;  %4194 = vtanh.f32 %v4173_v49 }
 0x2ef   : > { %v4177_v52 = vpop.eup %4176  ;;  %4196 = vtanh.f32 %v4175_v50 }
 0x2f0   : > { %v4179_v54 = vpop.eup %4178  ;;  %4198 = vtanh.f32 %v4177_v52 }
 0x2f1   : > { %v4181_v56 = vpop.eup %4180  ;;  %1997 = vst [vmem:[%s5089_s23 + $0x1470] sm:$0xff] %v4179_v54  ;;  %2501 = vst [vmem:[%s5089_s23 + $0x14d0] sm:$0xff] %v4179_v54  ;;  %4200 = vtanh.f32 %v496_v51 }
 0x2f2   : > { %v4183_v58 = vpop.eup %4182  ;;  %1998 = vst [vmem:[%s5089_s23 + $0x1478] sm:$0xff] %v4181_v56  ;;  %2502 = vst [vmem:[%s5089_s23 + $0x14d8] sm:$0xff] %v4181_v56  ;;  %4202 = vtanh.f32 %v497_v53  ;;  %v518_v53 = vld [vmem:[%s5068_s3 + $0xb58] sm:$0xff] }
 0x2f3   : > { %v4185_v60 = vpop.eup %4184  ;;  %1999 = vst [vmem:[%s5089_s23 + $0x1480] sm:$0xff] %v4183_v58  ;;  %2503 = vst [vmem:[%s5089_s23 + $0x14e0] sm:$0xff] %v4183_v58  ;;  %4204 = vtanh.f32 %v498_v55  ;;  %v519_v55 = vld [vmem:[%s5068_s3 + $0xb60] sm:$0xff] }
 0x2f4   : > { %v4187_v62 = vpop.eup %4186  ;;  %2000 = vst [vmem:[%s5089_s23 + $0x1488] sm:$0xff] %v4185_v60  ;;  %2504 = vst [vmem:[%s5089_s23 + $0x14e8] sm:$0xff] %v4185_v60  ;;  %4206 = vtanh.f32 %v499_v57  ;;  %v520_v57 = vld [vmem:[%s5068_s3 + $0xb68] sm:$0xff] }
 0x2f5   : > { %v4189_v0 = vpop.eup %4188  ;;  %2001 = vst [vmem:[%s5089_s23 + $0x1490] sm:$0xff] %v4187_v62  ;;  %2505 = vst [vmem:[%s5089_s23 + $0x14f0] sm:$0xff] %v4187_v62  ;;  %4208 = vtanh.f32 %v500_v59  ;;  %v521_v59 = vld [vmem:[%s5068_s3 + $0xb70] sm:$0xff] }
 0x2f6   : > { %v4191_v2 = vpop.eup %4190  ;;  %2002 = vst [vmem:[%s5089_s23 + $0x1498] sm:$0xff] %v4189_v0  ;;  %2506 = vst [vmem:[%s5089_s23 + $0x14f8] sm:$0xff] %v4189_v0  ;;  %4210 = vtanh.f32 %v501_v61  ;;  %v522_v61 = vld [vmem:[%s5068_s3 + $0xb78] sm:$0xff] }
 0x2f7   : > { %v4193_v4 = vpop.eup %4192  ;;  %2003 = vst [vmem:[%s5089_s23 + $0x1500] sm:$0xff] %v4191_v2  ;;  %2507 = vst [vmem:[%s5089_s23 + $0x1560] sm:$0xff] %v4191_v2  ;;  %4212 = vtanh.f32 %v502_v63  ;;  %v523_v63 = vld [vmem:[%s5068_s3 + $0xb80] sm:$0xff] }
 0x2f8   : > { %v4195_v6 = vpop.eup %4194  ;;  %2004 = vst [vmem:[%s5089_s23 + $0x1508] sm:$0xff] %v4193_v4  ;;  %2508 = vst [vmem:[%s5089_s23 + $0x1568] sm:$0xff] %v4193_v4  ;;  %4214 = vtanh.f32 %v503_v1  ;;  %v524_v1 = vld [vmem:[%s5068_s3 + $0xb88] sm:$0xff] }
 0x2f9   : > { %v4197_v8 = vpop.eup %4196  ;;  %2005 = vst [vmem:[%s5089_s23 + $0x1510] sm:$0xff] %v4195_v6  ;;  %2509 = vst [vmem:[%s5089_s23 + $0x1570] sm:$0xff] %v4195_v6  ;;  %4216 = vtanh.f32 %v504_v3  ;;  %v525_v3 = vld [vmem:[%s5068_s3 + $0xb90] sm:$0xff] }
 0x2fa   : > { %v4199_v9 = vpop.eup %4198  ;;  %2006 = vst [vmem:[%s5089_s23 + $0x1518] sm:$0xff] %v4197_v8  ;;  %2510 = vst [vmem:[%s5089_s23 + $0x1578] sm:$0xff] %v4197_v8  ;;  %4218 = vtanh.f32 %v505_v5  ;;  %v526_v5 = vld [vmem:[%s5068_s3 + $0xb98] sm:$0xff] }
 0x2fb   : > { %v4201_v10 = vpop.eup %4200  ;;  %2007 = vst [vmem:[%s5089_s23 + $0x1520] sm:$0xff] %v4199_v9  ;;  %2511 = vst [vmem:[%s5089_s23 + $0x1580] sm:$0xff] %v4199_v9  ;;  %4220 = vtanh.f32 %v506_v7  ;;  %v527_v7 = vld [vmem:[%s5068_s3 + $0xba0] sm:$0xff]  ;;  %v528_v9 = vld [vmem:[%s5068_s3 + $0xba8] sm:$0xff] }
 0x2fc   : > { %v4203_v11 = vpop.eup %4202  ;;  %4222 = vtanh.f32 %v4201_v10 }
 0x2fd   : > { %v4205_v12 = vpop.eup %4204  ;;  %4224 = vtanh.f32 %v4203_v11 }
 0x2fe   : > { %v4207_v13 = vpop.eup %4206  ;;  %4226 = vtanh.f32 %v4205_v12 }
 0x2ff   : > { %v4209_v14 = vpop.eup %4208  ;;  %4228 = vtanh.f32 %v4207_v13 }
 0x300   : > { %v4211_v15 = vpop.eup %4210  ;;  %4230 = vtanh.f32 %v4209_v14 }
 0x301   : > { %v4213_v16 = vpop.eup %4212  ;;  %4232 = vtanh.f32 %v4211_v15 }
 0x302   : > { %v4215_v17 = vpop.eup %4214  ;;  %4234 = vtanh.f32 %v4213_v16 }
 0x303   : > { %v4217_v18 = vpop.eup %4216  ;;  %4236 = vtanh.f32 %v4215_v17 }
 0x304   : > { %v4219_v19 = vpop.eup %4218  ;;  %4238 = vtanh.f32 %v4217_v18 }
 0x305   : > { %v4221_v21 = vpop.eup %4220  ;;  %4240 = vtanh.f32 %v4219_v19 }
 0x306   : > { %v4223_v23 = vpop.eup %4222  ;;  %4242 = vtanh.f32 %v4221_v21 }
 0x307   : > { %v4225_v25 = vpop.eup %4224  ;;  %2008 = vst [vmem:[%s5089_s23 + $0x1528] sm:$0xff] %v4223_v23  ;;  %2512 = vst [vmem:[%s5089_s23 + $0x1588] sm:$0xff] %v4223_v23  ;;  %4244 = vtanh.f32 %v507_v20 }
 0x308   : > { %v4227_v27 = vpop.eup %4226  ;;  %2009 = vst [vmem:[%s5089_s23 + $0x1530] sm:$0xff] %v4225_v25  ;;  %2513 = vst [vmem:[%s5089_s23 + $0x1590] sm:$0xff] %v4225_v25  ;;  %4246 = vtanh.f32 %v508_v22  ;;  %v529_v22 = vld [vmem:[%s5068_s3 + $0xbb0] sm:$0xff] }
 0x309   : > { %v4229_v29 = vpop.eup %4228  ;;  %2010 = vst [vmem:[%s5089_s23 + $0x1538] sm:$0xff] %v4227_v27  ;;  %2514 = vst [vmem:[%s5089_s23 + $0x1598] sm:$0xff] %v4227_v27  ;;  %4248 = vtanh.f32 %v509_v24  ;;  %v530_v24 = vld [vmem:[%s5068_s3 + $0xbb8] sm:$0xff] }
 0x30a   : > { %v4231_v31 = vpop.eup %4230  ;;  %2011 = vst [vmem:[%s5089_s23 + $0x1540] sm:$0xff] %v4229_v29  ;;  %2515 = vst [vmem:[%s5089_s23 + $0x15a0] sm:$0xff] %v4229_v29  ;;  %4250 = vtanh.f32 %v510_v26  ;;  %v531_v26 = vld [vmem:[%s5068_s3 + $0xbc0] sm:$0xff] }
 0x30b   : > { %v4233_v33 = vpop.eup %4232  ;;  %2012 = vst [vmem:[%s5089_s23 + $0x1548] sm:$0xff] %v4231_v31  ;;  %2516 = vst [vmem:[%s5089_s23 + $0x15a8] sm:$0xff] %v4231_v31  ;;  %4252 = vtanh.f32 %v511_v28  ;;  %v532_v28 = vld [vmem:[%s5068_s3 + $0xbc8] sm:$0xff] }
 0x30c   : > { %v4235_v35 = vpop.eup %4234  ;;  %2013 = vst [vmem:[%s5089_s23 + $0x1550] sm:$0xff] %v4233_v33  ;;  %2517 = vst [vmem:[%s5089_s23 + $0x15b0] sm:$0xff] %v4233_v33  ;;  %4254 = vtanh.f32 %v512_v30  ;;  %v533_v30 = vld [vmem:[%s5068_s3 + $0xbd0] sm:$0xff] }
 0x30d   : > { %v4237_v37 = vpop.eup %4236  ;;  %2014 = vst [vmem:[%s5089_s23 + $0x1558] sm:$0xff] %v4235_v35  ;;  %2518 = vst [vmem:[%s5089_s23 + $0x15b8] sm:$0xff] %v4235_v35  ;;  %4256 = vtanh.f32 %v513_v32  ;;  %v534_v32 = vld [vmem:[%s5068_s3 + $0xbd8] sm:$0xff] }
 0x30e   : > { %v4239_v39 = vpop.eup %4238  ;;  %2015 = vst [vmem:[%s5089_s23 + $0x15c0] sm:$0xff] %v4237_v37  ;;  %2519 = vst [vmem:[%s5089_s23 + $0x1620] sm:$0xff] %v4237_v37  ;;  %4258 = vtanh.f32 %v514_v34  ;;  %v535_v34 = vld [vmem:[%s5068_s3 + $0xbe0] sm:$0xff] }
 0x30f   : > { %v4241_v41 = vpop.eup %4240  ;;  %2016 = vst [vmem:[%s5089_s23 + $0x15c8] sm:$0xff] %v4239_v39  ;;  %2520 = vst [vmem:[%s5089_s23 + $0x1628] sm:$0xff] %v4239_v39  ;;  %4260 = vtanh.f32 %v515_v36  ;;  %v536_v36 = vld [vmem:[%s5068_s3 + $0xbe8] sm:$0xff] }
 0x310   : > { %v4243_v42 = vpop.eup %4242  ;;  %2017 = vst [vmem:[%s5089_s23 + $0x15d0] sm:$0xff] %v4241_v41  ;;  %2521 = vst [vmem:[%s5089_s23 + $0x1630] sm:$0xff] %v4241_v41  ;;  %4262 = vtanh.f32 %v516_v38  ;;  %v537_v38 = vld [vmem:[%s5068_s3 + $0xbf0] sm:$0xff] }
 0x311   : > { %v4245_v43 = vpop.eup %4244  ;;  %2018 = vst [vmem:[%s5089_s23 + $0x15d8] sm:$0xff] %v4243_v42  ;;  %2522 = vst [vmem:[%s5089_s23 + $0x1638] sm:$0xff] %v4243_v42  ;;  %4264 = vtanh.f32 %v517_v40  ;;  %v538_v40 = vld [vmem:[%s5068_s3 + $0xbf8] sm:$0xff]  ;;  %v539_v42 = vld [vmem:[%s5068_s3 + $0xc00] sm:$0xff] }
 0x312   : > { %v4247_v44 = vpop.eup %4246  ;;  %4266 = vtanh.f32 %v4245_v43 }
 0x313   : > { %v4249_v45 = vpop.eup %4248  ;;  %4268 = vtanh.f32 %v4247_v44 }
 0x314   : > { %v4251_v46 = vpop.eup %4250  ;;  %4270 = vtanh.f32 %v4249_v45 }
 0x315   : > { %v4253_v47 = vpop.eup %4252  ;;  %4272 = vtanh.f32 %v4251_v46 }
 0x316   : > { %v4255_v48 = vpop.eup %4254  ;;  %4274 = vtanh.f32 %v4253_v47 }
 0x317   : > { %v4257_v49 = vpop.eup %4256  ;;  %4276 = vtanh.f32 %v4255_v48 }
 0x318   : > { %v4259_v50 = vpop.eup %4258  ;;  %4278 = vtanh.f32 %v4257_v49 }
 0x319   : > { %v4261_v51 = vpop.eup %4260  ;;  %4280 = vtanh.f32 %v4259_v50 }
 0x31a   : > { %v4263_v52 = vpop.eup %4262  ;;  %4282 = vtanh.f32 %v4261_v51 }
 0x31b   : > { %v4265_v54 = vpop.eup %4264  ;;  %4284 = vtanh.f32 %v4263_v52 }
 0x31c   : > { %v4267_v56 = vpop.eup %4266  ;;  %4286 = vtanh.f32 %v4265_v54 }
 0x31d   : > { %v4269_v58 = vpop.eup %4268  ;;  %2019 = vst [vmem:[%s5089_s23 + $0x15e0] sm:$0xff] %v4267_v56  ;;  %2523 = vst [vmem:[%s5089_s23 + $0x1640] sm:$0xff] %v4267_v56  ;;  %4288 = vtanh.f32 %v518_v53 }
 0x31e   : > { %v4271_v60 = vpop.eup %4270  ;;  %2020 = vst [vmem:[%s5089_s23 + $0x15e8] sm:$0xff] %v4269_v58  ;;  %2524 = vst [vmem:[%s5089_s23 + $0x1648] sm:$0xff] %v4269_v58  ;;  %4290 = vtanh.f32 %v519_v55  ;;  %v540_v55 = vld [vmem:[%s5068_s3 + $0xc08] sm:$0xff] }
 0x31f   : > { %v4273_v62 = vpop.eup %4272  ;;  %2021 = vst [vmem:[%s5089_s23 + $0x15f0] sm:$0xff] %v4271_v60  ;;  %2525 = vst [vmem:[%s5089_s23 + $0x1650] sm:$0xff] %v4271_v60  ;;  %4292 = vtanh.f32 %v520_v57  ;;  %v541_v57 = vld [vmem:[%s5068_s3 + $0xc10] sm:$0xff] }
 0x320   : > { %v4275_v0 = vpop.eup %4274  ;;  %2022 = vst [vmem:[%s5089_s23 + $0x15f8] sm:$0xff] %v4273_v62  ;;  %2526 = vst [vmem:[%s5089_s23 + $0x1658] sm:$0xff] %v4273_v62  ;;  %4294 = vtanh.f32 %v521_v59  ;;  %v542_v59 = vld [vmem:[%s5068_s3 + $0xc18] sm:$0xff] }
 0x321   : > { %v4277_v2 = vpop.eup %4276  ;;  %2023 = vst [vmem:[%s5089_s23 + $0x1600] sm:$0xff] %v4275_v0  ;;  %2527 = vst [vmem:[%s5089_s23 + $0x1660] sm:$0xff] %v4275_v0  ;;  %4296 = vtanh.f32 %v522_v61  ;;  %v543_v61 = vld [vmem:[%s5068_s3 + $0xc20] sm:$0xff] }
 0x322   : > { %v4279_v4 = vpop.eup %4278  ;;  %2024 = vst [vmem:[%s5089_s23 + $0x1608] sm:$0xff] %v4277_v2  ;;  %2528 = vst [vmem:[%s5089_s23 + $0x1668] sm:$0xff] %v4277_v2  ;;  %4298 = vtanh.f32 %v523_v63  ;;  %v544_v63 = vld [vmem:[%s5068_s3 + $0xc28] sm:$0xff] }
 0x323   : > { %v4281_v6 = vpop.eup %4280  ;;  %2025 = vst [vmem:[%s5089_s23 + $0x1610] sm:$0xff] %v4279_v4  ;;  %2529 = vst [vmem:[%s5089_s23 + $0x1670] sm:$0xff] %v4279_v4  ;;  %4300 = vtanh.f32 %v524_v1  ;;  %v545_v1 = vld [vmem:[%s5068_s3 + $0xc30] sm:$0xff] }
 0x324   : > { %v4283_v8 = vpop.eup %4282  ;;  %2026 = vst [vmem:[%s5089_s23 + $0x1618] sm:$0xff] %v4281_v6  ;;  %2530 = vst [vmem:[%s5089_s23 + $0x1678] sm:$0xff] %v4281_v6  ;;  %4302 = vtanh.f32 %v525_v3  ;;  %v546_v3 = vld [vmem:[%s5068_s3 + $0xc38] sm:$0xff] }
 0x325   : > { %v4285_v10 = vpop.eup %4284  ;;  %2027 = vst [vmem:[%s5089_s23 + $0x1680] sm:$0xff] %v4283_v8  ;;  %2531 = vst [vmem:[%s5089_s23 + $0x16e0] sm:$0xff] %v4283_v8  ;;  %4304 = vtanh.f32 %v526_v5  ;;  %v547_v5 = vld [vmem:[%s5068_s3 + $0xc40] sm:$0xff] }
 0x326   : > { %v4287_v11 = vpop.eup %4286  ;;  %2028 = vst [vmem:[%s5089_s23 + $0x1688] sm:$0xff] %v4285_v10  ;;  %2532 = vst [vmem:[%s5089_s23 + $0x16e8] sm:$0xff] %v4285_v10  ;;  %4306 = vtanh.f32 %v527_v7  ;;  %v548_v7 = vld [vmem:[%s5068_s3 + $0xc48] sm:$0xff] }
 0x327   : > { %v4289_v12 = vpop.eup %4288  ;;  %2029 = vst [vmem:[%s5089_s23 + $0x1690] sm:$0xff] %v4287_v11  ;;  %2533 = vst [vmem:[%s5089_s23 + $0x16f0] sm:$0xff] %v4287_v11  ;;  %4308 = vtanh.f32 %v528_v9  ;;  %v549_v9 = vld [vmem:[%s5068_s3 + $0xc50] sm:$0xff]  ;;  %v550_v11 = vld [vmem:[%s5068_s3 + $0xc58] sm:$0xff] }
 0x328   : > { %v4291_v13 = vpop.eup %4290  ;;  %4310 = vtanh.f32 %v4289_v12 }
 0x329   : > { %v4293_v14 = vpop.eup %4292  ;;  %4312 = vtanh.f32 %v4291_v13 }
 0x32a   : > { %v4295_v15 = vpop.eup %4294  ;;  %4314 = vtanh.f32 %v4293_v14 }
 0x32b   : > { %v4297_v16 = vpop.eup %4296  ;;  %4316 = vtanh.f32 %v4295_v15 }
 0x32c   : > { %v4299_v17 = vpop.eup %4298  ;;  %4318 = vtanh.f32 %v4297_v16 }
 0x32d   : > { %v4301_v18 = vpop.eup %4300  ;;  %4320 = vtanh.f32 %v4299_v17 }
 0x32e   : > { %v4303_v19 = vpop.eup %4302  ;;  %4322 = vtanh.f32 %v4301_v18 }
 0x32f   : > { %v4305_v20 = vpop.eup %4304  ;;  %4324 = vtanh.f32 %v4303_v19 }
 0x330   : > { %v4307_v21 = vpop.eup %4306  ;;  %4326 = vtanh.f32 %v4305_v20 }
 0x331   : > { %v4309_v23 = vpop.eup %4308  ;;  %4328 = vtanh.f32 %v4307_v21 }
 0x332   : > { %v4311_v25 = vpop.eup %4310  ;;  %4330 = vtanh.f32 %v4309_v23 }
 0x333   : > { %v4313_v27 = vpop.eup %4312  ;;  %2030 = vst [vmem:[%s5089_s23 + $0x1698] sm:$0xff] %v4311_v25  ;;  %2534 = vst [vmem:[%s5089_s23 + $0x16f8] sm:$0xff] %v4311_v25  ;;  %4332 = vtanh.f32 %v529_v22 }
 0x334   : > { %v4315_v29 = vpop.eup %4314  ;;  %2031 = vst [vmem:[%s5089_s23 + $0x16a0] sm:$0xff] %v4313_v27  ;;  %2535 = vst [vmem:[%s5089_s23 + $0x1700] sm:$0xff] %v4313_v27  ;;  %4334 = vtanh.f32 %v530_v24  ;;  %v551_v24 = vld [vmem:[%s5068_s3 + $0xc60] sm:$0xff] }
 0x335   : > { %v4317_v31 = vpop.eup %4316  ;;  %2032 = vst [vmem:[%s5089_s23 + $0x16a8] sm:$0xff] %v4315_v29  ;;  %2536 = vst [vmem:[%s5089_s23 + $0x1708] sm:$0xff] %v4315_v29  ;;  %4336 = vtanh.f32 %v531_v26  ;;  %v552_v26 = vld [vmem:[%s5068_s3 + $0xc68] sm:$0xff] }
 0x336   : > { %v4319_v33 = vpop.eup %4318  ;;  %2033 = vst [vmem:[%s5089_s23 + $0x16b0] sm:$0xff] %v4317_v31  ;;  %2537 = vst [vmem:[%s5089_s23 + $0x1710] sm:$0xff] %v4317_v31  ;;  %4338 = vtanh.f32 %v532_v28  ;;  %v553_v28 = vld [vmem:[%s5068_s3 + $0xc70] sm:$0xff] }
 0x337   : > { %v4321_v35 = vpop.eup %4320  ;;  %2034 = vst [vmem:[%s5089_s23 + $0x16b8] sm:$0xff] %v4319_v33  ;;  %2538 = vst [vmem:[%s5089_s23 + $0x1718] sm:$0xff] %v4319_v33  ;;  %4340 = vtanh.f32 %v533_v30  ;;  %v554_v30 = vld [vmem:[%s5068_s3 + $0xc78] sm:$0xff] }
 0x338   : > { %v4323_v37 = vpop.eup %4322  ;;  %2035 = vst [vmem:[%s5089_s23 + $0x16c0] sm:$0xff] %v4321_v35  ;;  %2539 = vst [vmem:[%s5089_s23 + $0x1720] sm:$0xff] %v4321_v35  ;;  %4342 = vtanh.f32 %v534_v32  ;;  %v555_v32 = vld [vmem:[%s5068_s3 + $0xc80] sm:$0xff] }
 0x339   : > { %v4325_v39 = vpop.eup %4324  ;;  %2036 = vst [vmem:[%s5089_s23 + $0x16c8] sm:$0xff] %v4323_v37  ;;  %2540 = vst [vmem:[%s5089_s23 + $0x1728] sm:$0xff] %v4323_v37  ;;  %4344 = vtanh.f32 %v535_v34  ;;  %v556_v34 = vld [vmem:[%s5068_s3 + $0xc88] sm:$0xff] }
 0x33a   : > { %v4327_v41 = vpop.eup %4326  ;;  %2037 = vst [vmem:[%s5089_s23 + $0x16d0] sm:$0xff] %v4325_v39  ;;  %2541 = vst [vmem:[%s5089_s23 + $0x1730] sm:$0xff] %v4325_v39  ;;  %4346 = vtanh.f32 %v536_v36  ;;  %v557_v36 = vld [vmem:[%s5068_s3 + $0xc90] sm:$0xff] }
 0x33b   : > { %v4329_v43 = vpop.eup %4328  ;;  %2038 = vst [vmem:[%s5089_s23 + $0x16d8] sm:$0xff] %v4327_v41  ;;  %2542 = vst [vmem:[%s5089_s23 + $0x1738] sm:$0xff] %v4327_v41  ;;  %4348 = vtanh.f32 %v537_v38  ;;  %v558_v38 = vld [vmem:[%s5068_s3 + $0xc98] sm:$0xff] }
 0x33c   : > { %v4331_v44 = vpop.eup %4330  ;;  %2039 = vst [vmem:[%s5089_s23 + $0x1740] sm:$0xff] %v4329_v43  ;;  %2543 = vst [vmem:[%s5089_s23 + $0x17a0] sm:$0xff] %v4329_v43  ;;  %4350 = vtanh.f32 %v538_v40  ;;  %v559_v40 = vld [vmem:[%s5068_s3 + $0xca0] sm:$0xff] }
 0x33d   : > { %v4333_v45 = vpop.eup %4332  ;;  %2040 = vst [vmem:[%s5089_s23 + $0x1748] sm:$0xff] %v4331_v44  ;;  %2544 = vst [vmem:[%s5089_s23 + $0x17a8] sm:$0xff] %v4331_v44  ;;  %4352 = vtanh.f32 %v539_v42  ;;  %v560_v42 = vld [vmem:[%s5068_s3 + $0xca8] sm:$0xff]  ;;  %v561_v44 = vld [vmem:[%s5068_s3 + $0xcb0] sm:$0xff] }
 0x33e   : > { %v4335_v46 = vpop.eup %4334  ;;  %4354 = vtanh.f32 %v4333_v45 }
 0x33f   : > { %v4337_v47 = vpop.eup %4336  ;;  %4356 = vtanh.f32 %v4335_v46 }
 0x340   : > { %v4339_v48 = vpop.eup %4338  ;;  %4358 = vtanh.f32 %v4337_v47 }
 0x341   : > { %v4341_v49 = vpop.eup %4340  ;;  %4360 = vtanh.f32 %v4339_v48 }
 0x342   : > { %v4343_v50 = vpop.eup %4342  ;;  %4362 = vtanh.f32 %v4341_v49 }
 0x343   : > { %v4345_v51 = vpop.eup %4344  ;;  %4364 = vtanh.f32 %v4343_v50 }
 0x344   : > { %v4347_v52 = vpop.eup %4346  ;;  %4366 = vtanh.f32 %v4345_v51 }
 0x345   : > { %v4349_v53 = vpop.eup %4348  ;;  %4368 = vtanh.f32 %v4347_v52 }
 0x346   : > { %v4351_v54 = vpop.eup %4350  ;;  %4370 = vtanh.f32 %v4349_v53 }
 0x347   : > { %v4353_v56 = vpop.eup %4352  ;;  %4372 = vtanh.f32 %v4351_v54 }
 0x348   : > { %v4355_v58 = vpop.eup %4354  ;;  %4374 = vtanh.f32 %v4353_v56 }
 0x349   : > { %v4357_v60 = vpop.eup %4356  ;;  %2041 = vst [vmem:[%s5089_s23 + $0x1750] sm:$0xff] %v4355_v58  ;;  %2545 = vst [vmem:[%s5089_s23 + $0x17b0] sm:$0xff] %v4355_v58  ;;  %4376 = vtanh.f32 %v540_v55 }
 0x34a   : > { %v4359_v62 = vpop.eup %4358  ;;  %2042 = vst [vmem:[%s5089_s23 + $0x1758] sm:$0xff] %v4357_v60  ;;  %2546 = vst [vmem:[%s5089_s23 + $0x17b8] sm:$0xff] %v4357_v60  ;;  %4378 = vtanh.f32 %v541_v57  ;;  %v562_v57 = vld [vmem:[%s5068_s3 + $0xcb8] sm:$0xff] }
 0x34b   : > { %v4361_v0 = vpop.eup %4360  ;;  %2043 = vst [vmem:[%s5089_s23 + $0x1760] sm:$0xff] %v4359_v62  ;;  %2547 = vst [vmem:[%s5089_s23 + $0x17c0] sm:$0xff] %v4359_v62  ;;  %4380 = vtanh.f32 %v542_v59  ;;  %v563_v59 = vld [vmem:[%s5068_s3 + $0xcc0] sm:$0xff] }
 0x34c   : > { %v4363_v2 = vpop.eup %4362  ;;  %2044 = vst [vmem:[%s5089_s23 + $0x1768] sm:$0xff] %v4361_v0  ;;  %2548 = vst [vmem:[%s5089_s23 + $0x17c8] sm:$0xff] %v4361_v0  ;;  %4382 = vtanh.f32 %v543_v61  ;;  %v564_v61 = vld [vmem:[%s5068_s3 + $0xcc8] sm:$0xff] }
 0x34d   : > { %v4365_v4 = vpop.eup %4364  ;;  %2045 = vst [vmem:[%s5089_s23 + $0x1770] sm:$0xff] %v4363_v2  ;;  %2549 = vst [vmem:[%s5089_s23 + $0x17d0] sm:$0xff] %v4363_v2  ;;  %4384 = vtanh.f32 %v544_v63  ;;  %v565_v63 = vld [vmem:[%s5068_s3 + $0xcd0] sm:$0xff] }
 0x34e   : > { %v4367_v6 = vpop.eup %4366  ;;  %2046 = vst [vmem:[%s5089_s23 + $0x1778] sm:$0xff] %v4365_v4  ;;  %2550 = vst [vmem:[%s5089_s23 + $0x17d8] sm:$0xff] %v4365_v4  ;;  %4386 = vtanh.f32 %v545_v1  ;;  %v566_v1 = vld [vmem:[%s5068_s3 + $0xcd8] sm:$0xff] }
 0x34f   : > { %v4369_v8 = vpop.eup %4368  ;;  %2047 = vst [vmem:[%s5089_s23 + $0x1780] sm:$0xff] %v4367_v6  ;;  %2551 = vst [vmem:[%s5089_s23 + $0x17e0] sm:$0xff] %v4367_v6  ;;  %4388 = vtanh.f32 %v546_v3  ;;  %v567_v3 = vld [vmem:[%s5068_s3 + $0xce0] sm:$0xff] }
 0x350   : > { %v4371_v10 = vpop.eup %4370  ;;  %2048 = vst [vmem:[%s5089_s23 + $0x1788] sm:$0xff] %v4369_v8  ;;  %2552 = vst [vmem:[%s5089_s23 + $0x17e8] sm:$0xff] %v4369_v8  ;;  %4390 = vtanh.f32 %v547_v5  ;;  %v568_v5 = vld [vmem:[%s5068_s3 + $0xce8] sm:$0xff] }
 0x351   : > { %v4373_v12 = vpop.eup %4372  ;;  %2049 = vst [vmem:[%s5089_s23 + $0x1790] sm:$0xff] %v4371_v10  ;;  %2553 = vst [vmem:[%s5089_s23 + $0x17f0] sm:$0xff] %v4371_v10  ;;  %4392 = vtanh.f32 %v548_v7  ;;  %v569_v7 = vld [vmem:[%s5068_s3 + $0xcf0] sm:$0xff] }
 0x352   : > { %v4375_v13 = vpop.eup %4374  ;;  %2050 = vst [vmem:[%s5089_s23 + $0x1798] sm:$0xff] %v4373_v12  ;;  %2554 = vst [vmem:[%s5089_s23 + $0x17f8] sm:$0xff] %v4373_v12  ;;  %4394 = vtanh.f32 %v549_v9  ;;  %v570_v9 = vld [vmem:[%s5068_s3 + $0xcf8] sm:$0xff] }
 0x353   : > { %v4377_v14 = vpop.eup %4376  ;;  %2051 = vst [vmem:[%s5089_s23 + $0x1800] sm:$0xff] %v4375_v13  ;;  %2555 = vst [vmem:[%s5089_s23 + $0x1860] sm:$0xff] %v4375_v13  ;;  %4396 = vtanh.f32 %v550_v11  ;;  %v571_v11 = vld [vmem:[%s5068_s3 + $0xd00] sm:$0xff]  ;;  %v572_v13 = vld [vmem:[%s5068_s3 + $0xd08] sm:$0xff] }
 0x354   : > { %v4379_v15 = vpop.eup %4378  ;;  %4398 = vtanh.f32 %v4377_v14 }
 0x355   : > { %v4381_v16 = vpop.eup %4380  ;;  %4400 = vtanh.f32 %v4379_v15 }
 0x356   : > { %v4383_v17 = vpop.eup %4382  ;;  %4402 = vtanh.f32 %v4381_v16 }
 0x357   : > { %v4385_v18 = vpop.eup %4384  ;;  %4404 = vtanh.f32 %v4383_v17 }
 0x358   : > { %v4387_v19 = vpop.eup %4386  ;;  %4406 = vtanh.f32 %v4385_v18 }
 0x359   : > { %v4389_v20 = vpop.eup %4388  ;;  %4408 = vtanh.f32 %v4387_v19 }
 0x35a   : > { %v4391_v21 = vpop.eup %4390  ;;  %4410 = vtanh.f32 %v4389_v20 }
 0x35b   : > { %v4393_v22 = vpop.eup %4392  ;;  %4412 = vtanh.f32 %v4391_v21 }
 0x35c   : > { %v4395_v23 = vpop.eup %4394  ;;  %4414 = vtanh.f32 %v4393_v22 }
 0x35d   : > { %v4397_v25 = vpop.eup %4396  ;;  %4416 = vtanh.f32 %v4395_v23 }
 0x35e   : > { %v4399_v27 = vpop.eup %4398  ;;  %4418 = vtanh.f32 %v4397_v25 }
 0x35f   : > { %v4401_v29 = vpop.eup %4400  ;;  %2052 = vst [vmem:[%s5089_s23 + $0x1808] sm:$0xff] %v4399_v27  ;;  %2556 = vst [vmem:[%s5089_s23 + $0x1868] sm:$0xff] %v4399_v27  ;;  %4420 = vtanh.f32 %v551_v24 }
 0x360   : > { %v4403_v31 = vpop.eup %4402  ;;  %2053 = vst [vmem:[%s5089_s23 + $0x1810] sm:$0xff] %v4401_v29  ;;  %2557 = vst [vmem:[%s5089_s23 + $0x1870] sm:$0xff] %v4401_v29  ;;  %4422 = vtanh.f32 %v552_v26  ;;  %v573_v26 = vld [vmem:[%s5068_s3 + $0xd10] sm:$0xff] }
 0x361   : > { %v4405_v33 = vpop.eup %4404  ;;  %2054 = vst [vmem:[%s5089_s23 + $0x1818] sm:$0xff] %v4403_v31  ;;  %2558 = vst [vmem:[%s5089_s23 + $0x1878] sm:$0xff] %v4403_v31  ;;  %4424 = vtanh.f32 %v553_v28  ;;  %v574_v28 = vld [vmem:[%s5068_s3 + $0xd18] sm:$0xff] }
 0x362   : > { %v4407_v35 = vpop.eup %4406  ;;  %2055 = vst [vmem:[%s5089_s23 + $0x1820] sm:$0xff] %v4405_v33  ;;  %2559 = vst [vmem:[%s5089_s23 + $0x1880] sm:$0xff] %v4405_v33  ;;  %4426 = vtanh.f32 %v554_v30  ;;  %v575_v30 = vld [vmem:[%s5068_s3 + $0xd20] sm:$0xff] }
 0x363   : > { %v4409_v37 = vpop.eup %4408  ;;  %2056 = vst [vmem:[%s5089_s23 + $0x1828] sm:$0xff] %v4407_v35  ;;  %2560 = vst [vmem:[%s5089_s23 + $0x1888] sm:$0xff] %v4407_v35  ;;  %4428 = vtanh.f32 %v555_v32  ;;  %v576_v32 = vld [vmem:[%s5068_s3 + $0xd28] sm:$0xff] }
 0x364   : > { %v4411_v39 = vpop.eup %4410  ;;  %2057 = vst [vmem:[%s5089_s23 + $0x1830] sm:$0xff] %v4409_v37  ;;  %2561 = vst [vmem:[%s5089_s23 + $0x1890] sm:$0xff] %v4409_v37  ;;  %4430 = vtanh.f32 %v556_v34  ;;  %v577_v34 = vld [vmem:[%s5068_s3 + $0xd30] sm:$0xff] }
 0x365   : > { %v4413_v41 = vpop.eup %4412  ;;  %2058 = vst [vmem:[%s5089_s23 + $0x1838] sm:$0xff] %v4411_v39  ;;  %2562 = vst [vmem:[%s5089_s23 + $0x1898] sm:$0xff] %v4411_v39  ;;  %4432 = vtanh.f32 %v557_v36  ;;  %v578_v36 = vld [vmem:[%s5068_s3 + $0xd38] sm:$0xff] }
 0x366   : > { %v4415_v43 = vpop.eup %4414  ;;  %2059 = vst [vmem:[%s5089_s23 + $0x1840] sm:$0xff] %v4413_v41  ;;  %2563 = vst [vmem:[%s5089_s23 + $0x18a0] sm:$0xff] %v4413_v41  ;;  %4434 = vtanh.f32 %v558_v38  ;;  %v579_v38 = vld [vmem:[%s5068_s3 + $0xd40] sm:$0xff] }
 0x367   : > { %v4417_v45 = vpop.eup %4416  ;;  %2060 = vst [vmem:[%s5089_s23 + $0x1848] sm:$0xff] %v4415_v43  ;;  %2564 = vst [vmem:[%s5089_s23 + $0x18a8] sm:$0xff] %v4415_v43  ;;  %4436 = vtanh.f32 %v559_v40  ;;  %v580_v40 = vld [vmem:[%s5068_s3 + $0xd48] sm:$0xff] }
 0x368   : > { %v4419_v46 = vpop.eup %4418  ;;  %2061 = vst [vmem:[%s5089_s23 + $0x1850] sm:$0xff] %v4417_v45  ;;  %2565 = vst [vmem:[%s5089_s23 + $0x18b0] sm:$0xff] %v4417_v45  ;;  %4438 = vtanh.f32 %v560_v42  ;;  %v581_v42 = vld [vmem:[%s5068_s3 + $0xd50] sm:$0xff] }
 0x369   : > { %v4421_v47 = vpop.eup %4420  ;;  %2062 = vst [vmem:[%s5089_s23 + $0x1858] sm:$0xff] %v4419_v46  ;;  %2566 = vst [vmem:[%s5089_s23 + $0x18b8] sm:$0xff] %v4419_v46  ;;  %4440 = vtanh.f32 %v561_v44  ;;  %v582_v44 = vld [vmem:[%s5068_s3 + $0xd58] sm:$0xff]  ;;  %v583_v46 = vld [vmem:[%s5068_s3 + $0xd60] sm:$0xff] }
 0x36a   : > { %v4423_v48 = vpop.eup %4422  ;;  %4442 = vtanh.f32 %v4421_v47 }
 0x36b   : > { %v4425_v49 = vpop.eup %4424  ;;  %4444 = vtanh.f32 %v4423_v48 }
 0x36c   : > { %v4427_v50 = vpop.eup %4426  ;;  %4446 = vtanh.f32 %v4425_v49 }
 0x36d   : > { %v4429_v51 = vpop.eup %4428  ;;  %4448 = vtanh.f32 %v4427_v50 }
 0x36e   : > { %v4431_v52 = vpop.eup %4430  ;;  %4450 = vtanh.f32 %v4429_v51 }
 0x36f   : > { %v4433_v53 = vpop.eup %4432  ;;  %4452 = vtanh.f32 %v4431_v52 }
 0x370   : > { %v4435_v54 = vpop.eup %4434  ;;  %4454 = vtanh.f32 %v4433_v53 }
 0x371   : > { %v4437_v55 = vpop.eup %4436  ;;  %4456 = vtanh.f32 %v4435_v54 }
 0x372   : > { %v4439_v56 = vpop.eup %4438  ;;  %4458 = vtanh.f32 %v4437_v55 }
 0x373   : > { %v4441_v58 = vpop.eup %4440  ;;  %4460 = vtanh.f32 %v4439_v56 }
 0x374   : > { %v4443_v60 = vpop.eup %4442  ;;  %4462 = vtanh.f32 %v4441_v58 }
 0x375   : > { %v4445_v62 = vpop.eup %4444  ;;  %2063 = vst [vmem:[%s5089_s23 + $0x18c0] sm:$0xff] %v4443_v60  ;;  %2567 = vst [vmem:[%s5089_s23 + $0x1920] sm:$0xff] %v4443_v60  ;;  %4464 = vtanh.f32 %v562_v57 }
 0x376   : > { %v4447_v0 = vpop.eup %4446  ;;  %2064 = vst [vmem:[%s5089_s23 + $0x18c8] sm:$0xff] %v4445_v62  ;;  %2568 = vst [vmem:[%s5089_s23 + $0x1928] sm:$0xff] %v4445_v62  ;;  %4466 = vtanh.f32 %v563_v59  ;;  %v584_v59 = vld [vmem:[%s5068_s3 + $0xd68] sm:$0xff] }
 0x377   : > { %v4449_v2 = vpop.eup %4448  ;;  %2065 = vst [vmem:[%s5089_s23 + $0x18d0] sm:$0xff] %v4447_v0  ;;  %2569 = vst [vmem:[%s5089_s23 + $0x1930] sm:$0xff] %v4447_v0  ;;  %4468 = vtanh.f32 %v564_v61  ;;  %v585_v61 = vld [vmem:[%s5068_s3 + $0xd70] sm:$0xff] }
 0x378   : > { %v4451_v4 = vpop.eup %4450  ;;  %2066 = vst [vmem:[%s5089_s23 + $0x18d8] sm:$0xff] %v4449_v2  ;;  %2570 = vst [vmem:[%s5089_s23 + $0x1938] sm:$0xff] %v4449_v2  ;;  %4470 = vtanh.f32 %v565_v63  ;;  %v586_v63 = vld [vmem:[%s5068_s3 + $0xd78] sm:$0xff] }
 0x379   : > { %v4453_v6 = vpop.eup %4452  ;;  %2067 = vst [vmem:[%s5089_s23 + $0x18e0] sm:$0xff] %v4451_v4  ;;  %2571 = vst [vmem:[%s5089_s23 + $0x1940] sm:$0xff] %v4451_v4  ;;  %4472 = vtanh.f32 %v566_v1  ;;  %v587_v1 = vld [vmem:[%s5068_s3 + $0xd80] sm:$0xff] }
 0x37a   : > { %v4455_v8 = vpop.eup %4454  ;;  %2068 = vst [vmem:[%s5089_s23 + $0x18e8] sm:$0xff] %v4453_v6  ;;  %2572 = vst [vmem:[%s5089_s23 + $0x1948] sm:$0xff] %v4453_v6  ;;  %4474 = vtanh.f32 %v567_v3  ;;  %v588_v3 = vld [vmem:[%s5068_s3 + $0xd88] sm:$0xff] }
 0x37b   : > { %v4457_v10 = vpop.eup %4456  ;;  %2069 = vst [vmem:[%s5089_s23 + $0x18f0] sm:$0xff] %v4455_v8  ;;  %2573 = vst [vmem:[%s5089_s23 + $0x1950] sm:$0xff] %v4455_v8  ;;  %4476 = vtanh.f32 %v568_v5  ;;  %v589_v5 = vld [vmem:[%s5068_s3 + $0xd90] sm:$0xff] }
 0x37c   : > { %v4459_v12 = vpop.eup %4458  ;;  %2070 = vst [vmem:[%s5089_s23 + $0x18f8] sm:$0xff] %v4457_v10  ;;  %2574 = vst [vmem:[%s5089_s23 + $0x1958] sm:$0xff] %v4457_v10  ;;  %4478 = vtanh.f32 %v569_v7  ;;  %v590_v7 = vld [vmem:[%s5068_s3 + $0xd98] sm:$0xff] }
 0x37d   : > { %v4461_v14 = vpop.eup %4460  ;;  %2071 = vst [vmem:[%s5089_s23 + $0x1900] sm:$0xff] %v4459_v12  ;;  %2575 = vst [vmem:[%s5089_s23 + $0x1960] sm:$0xff] %v4459_v12  ;;  %4480 = vtanh.f32 %v570_v9  ;;  %v591_v9 = vld [vmem:[%s5068_s3 + $0xda0] sm:$0xff] }
 0x37e   : > { %v4463_v15 = vpop.eup %4462  ;;  %2072 = vst [vmem:[%s5089_s23 + $0x1908] sm:$0xff] %v4461_v14  ;;  %2576 = vst [vmem:[%s5089_s23 + $0x1968] sm:$0xff] %v4461_v14  ;;  %4482 = vtanh.f32 %v571_v11  ;;  %v592_v11 = vld [vmem:[%s5068_s3 + $0xda8] sm:$0xff] }
 0x37f   : > { %v4465_v16 = vpop.eup %4464  ;;  %2073 = vst [vmem:[%s5089_s23 + $0x1910] sm:$0xff] %v4463_v15  ;;  %2577 = vst [vmem:[%s5089_s23 + $0x1970] sm:$0xff] %v4463_v15  ;;  %4484 = vtanh.f32 %v572_v13  ;;  %v593_v13 = vld [vmem:[%s5068_s3 + $0xdb0] sm:$0xff]  ;;  %v594_v15 = vld [vmem:[%s5068_s3 + $0xdb8] sm:$0xff] }
 0x380   : > { %v4467_v17 = vpop.eup %4466  ;;  %4486 = vtanh.f32 %v4465_v16 }
 0x381   : > { %v4469_v18 = vpop.eup %4468  ;;  %4488 = vtanh.f32 %v4467_v17 }
 0x382   : > { %v4471_v19 = vpop.eup %4470  ;;  %4490 = vtanh.f32 %v4469_v18 }
 0x383   : > { %v4473_v20 = vpop.eup %4472  ;;  %4492 = vtanh.f32 %v4471_v19 }
 0x384   : > { %v4475_v21 = vpop.eup %4474  ;;  %4494 = vtanh.f32 %v4473_v20 }
 0x385   : > { %v4477_v22 = vpop.eup %4476  ;;  %4496 = vtanh.f32 %v4475_v21 }
 0x386   : > { %v4479_v23 = vpop.eup %4478  ;;  %4498 = vtanh.f32 %v4477_v22 }
 0x387   : > { %v4481_v24 = vpop.eup %4480  ;;  %4500 = vtanh.f32 %v4479_v23 }
 0x388   : > { %v4483_v25 = vpop.eup %4482  ;;  %4502 = vtanh.f32 %v4481_v24 }
 0x389   : > { %v4485_v27 = vpop.eup %4484  ;;  %4504 = vtanh.f32 %v4483_v25 }
 0x38a   : > { %v4487_v29 = vpop.eup %4486  ;;  %4506 = vtanh.f32 %v4485_v27 }
 0x38b   : > { %v4489_v31 = vpop.eup %4488  ;;  %2074 = vst [vmem:[%s5089_s23 + $0x1918] sm:$0xff] %v4487_v29  ;;  %2578 = vst [vmem:[%s5089_s23 + $0x1978] sm:$0xff] %v4487_v29  ;;  %4508 = vtanh.f32 %v573_v26 }
 0x38c   : > { %v4491_v33 = vpop.eup %4490  ;;  %2075 = vst [vmem:[%s5089_s23 + $0x1980] sm:$0xff] %v4489_v31  ;;  %2579 = vst [vmem:[%s5089_s23 + $0x19e0] sm:$0xff] %v4489_v31  ;;  %4510 = vtanh.f32 %v574_v28  ;;  %v595_v28 = vld [vmem:[%s5068_s3 + $0xdc0] sm:$0xff] }
 0x38d   : > { %v4493_v35 = vpop.eup %4492  ;;  %2076 = vst [vmem:[%s5089_s23 + $0x1988] sm:$0xff] %v4491_v33  ;;  %2580 = vst [vmem:[%s5089_s23 + $0x19e8] sm:$0xff] %v4491_v33  ;;  %4512 = vtanh.f32 %v575_v30  ;;  %v596_v30 = vld [vmem:[%s5068_s3 + $0xdc8] sm:$0xff] }
 0x38e   : > { %v4495_v37 = vpop.eup %4494  ;;  %2077 = vst [vmem:[%s5089_s23 + $0x1990] sm:$0xff] %v4493_v35  ;;  %2581 = vst [vmem:[%s5089_s23 + $0x19f0] sm:$0xff] %v4493_v35  ;;  %4514 = vtanh.f32 %v576_v32  ;;  %v597_v32 = vld [vmem:[%s5068_s3 + $0xdd0] sm:$0xff] }
 0x38f   : > { %v4497_v39 = vpop.eup %4496  ;;  %2078 = vst [vmem:[%s5089_s23 + $0x1998] sm:$0xff] %v4495_v37  ;;  %2582 = vst [vmem:[%s5089_s23 + $0x19f8] sm:$0xff] %v4495_v37  ;;  %4516 = vtanh.f32 %v577_v34  ;;  %v598_v34 = vld [vmem:[%s5068_s3 + $0xdd8] sm:$0xff] }
 0x390   : > { %v4499_v41 = vpop.eup %4498  ;;  %2079 = vst [vmem:[%s5089_s23 + $0x19a0] sm:$0xff] %v4497_v39  ;;  %2583 = vst [vmem:[%s5089_s23 + $0x1a00] sm:$0xff] %v4497_v39  ;;  %4518 = vtanh.f32 %v578_v36  ;;  %v599_v36 = vld [vmem:[%s5068_s3 + $0xde0] sm:$0xff] }
 0x391   : > { %v4501_v43 = vpop.eup %4500  ;;  %2080 = vst [vmem:[%s5089_s23 + $0x19a8] sm:$0xff] %v4499_v41  ;;  %2584 = vst [vmem:[%s5089_s23 + $0x1a08] sm:$0xff] %v4499_v41  ;;  %4520 = vtanh.f32 %v579_v38  ;;  %v600_v38 = vld [vmem:[%s5068_s3 + $0xde8] sm:$0xff] }
 0x392   : > { %v4503_v45 = vpop.eup %4502  ;;  %2081 = vst [vmem:[%s5089_s23 + $0x19b0] sm:$0xff] %v4501_v43  ;;  %2585 = vst [vmem:[%s5089_s23 + $0x1a10] sm:$0xff] %v4501_v43  ;;  %4522 = vtanh.f32 %v580_v40  ;;  %v601_v40 = vld [vmem:[%s5068_s3 + $0xdf0] sm:$0xff] }
 0x393   : > { %v4505_v47 = vpop.eup %4504  ;;  %2082 = vst [vmem:[%s5089_s23 + $0x19b8] sm:$0xff] %v4503_v45  ;;  %2586 = vst [vmem:[%s5089_s23 + $0x1a18] sm:$0xff] %v4503_v45  ;;  %4524 = vtanh.f32 %v581_v42  ;;  %v602_v42 = vld [vmem:[%s5068_s3 + $0xdf8] sm:$0xff] }
 0x394   : > { %v4507_v48 = vpop.eup %4506  ;;  %2083 = vst [vmem:[%s5089_s23 + $0x19c0] sm:$0xff] %v4505_v47  ;;  %2587 = vst [vmem:[%s5089_s23 + $0x1a20] sm:$0xff] %v4505_v47  ;;  %4526 = vtanh.f32 %v582_v44  ;;  %v603_v44 = vld [vmem:[%s5068_s3 + $0xe00] sm:$0xff] }
 0x395   : > { %v4509_v49 = vpop.eup %4508  ;;  %2084 = vst [vmem:[%s5089_s23 + $0x19c8] sm:$0xff] %v4507_v48  ;;  %2588 = vst [vmem:[%s5089_s23 + $0x1a28] sm:$0xff] %v4507_v48  ;;  %4528 = vtanh.f32 %v583_v46  ;;  %v604_v46 = vld [vmem:[%s5068_s3 + $0xe08] sm:$0xff]  ;;  %v605_v48 = vld [vmem:[%s5068_s3 + $0xe10] sm:$0xff] }
 0x396   : > { %v4511_v50 = vpop.eup %4510  ;;  %4530 = vtanh.f32 %v4509_v49 }
 0x397   : > { %v4513_v51 = vpop.eup %4512  ;;  %4532 = vtanh.f32 %v4511_v50 }
 0x398   : > { %v4515_v52 = vpop.eup %4514  ;;  %4534 = vtanh.f32 %v4513_v51 }
 0x399   : > { %v4517_v53 = vpop.eup %4516  ;;  %4536 = vtanh.f32 %v4515_v52 }
 0x39a   : > { %v4519_v54 = vpop.eup %4518  ;;  %4538 = vtanh.f32 %v4517_v53 }
 0x39b   : > { %v4521_v55 = vpop.eup %4520  ;;  %4540 = vtanh.f32 %v4519_v54 }
 0x39c   : > { %v4523_v56 = vpop.eup %4522  ;;  %4542 = vtanh.f32 %v4521_v55 }
 0x39d   : > { %v4525_v57 = vpop.eup %4524  ;;  %4544 = vtanh.f32 %v4523_v56 }
 0x39e   : > { %v4527_v58 = vpop.eup %4526  ;;  %4546 = vtanh.f32 %v4525_v57 }
 0x39f   : > { %v4529_v60 = vpop.eup %4528  ;;  %4548 = vtanh.f32 %v4527_v58 }
 0x3a0   : > { %v4531_v62 = vpop.eup %4530  ;;  %4550 = vtanh.f32 %v4529_v60 }
 0x3a1   : > { %v4533_v0 = vpop.eup %4532  ;;  %2085 = vst [vmem:[%s5089_s23 + $0x19d0] sm:$0xff] %v4531_v62  ;;  %2589 = vst [vmem:[%s5089_s23 + $0x1a30] sm:$0xff] %v4531_v62  ;;  %4552 = vtanh.f32 %v584_v59 }
 0x3a2   : > { %v4535_v2 = vpop.eup %4534  ;;  %2086 = vst [vmem:[%s5089_s23 + $0x19d8] sm:$0xff] %v4533_v0  ;;  %2590 = vst [vmem:[%s5089_s23 + $0x1a38] sm:$0xff] %v4533_v0  ;;  %4554 = vtanh.f32 %v585_v61  ;;  %v606_v61 = vld [vmem:[%s5068_s3 + $0xe18] sm:$0xff] }
 0x3a3   : > { %v4537_v4 = vpop.eup %4536  ;;  %2087 = vst [vmem:[%s5089_s23 + $0x1a40] sm:$0xff] %v4535_v2  ;;  %2591 = vst [vmem:[%s5089_s23 + $0x1aa0] sm:$0xff] %v4535_v2  ;;  %4556 = vtanh.f32 %v586_v63  ;;  %v607_v63 = vld [vmem:[%s5068_s3 + $0xe20] sm:$0xff] }
 0x3a4   : > { %v4539_v6 = vpop.eup %4538  ;;  %2088 = vst [vmem:[%s5089_s23 + $0x1a48] sm:$0xff] %v4537_v4  ;;  %2592 = vst [vmem:[%s5089_s23 + $0x1aa8] sm:$0xff] %v4537_v4  ;;  %4558 = vtanh.f32 %v587_v1  ;;  %v608_v1 = vld [vmem:[%s5068_s3 + $0xe28] sm:$0xff] }
 0x3a5   : > { %v4541_v8 = vpop.eup %4540  ;;  %2089 = vst [vmem:[%s5089_s23 + $0x1a50] sm:$0xff] %v4539_v6  ;;  %2593 = vst [vmem:[%s5089_s23 + $0x1ab0] sm:$0xff] %v4539_v6  ;;  %4560 = vtanh.f32 %v588_v3  ;;  %v609_v3 = vld [vmem:[%s5068_s3 + $0xe30] sm:$0xff] }
 0x3a6   : > { %v4543_v10 = vpop.eup %4542  ;;  %2090 = vst [vmem:[%s5089_s23 + $0x1a58] sm:$0xff] %v4541_v8  ;;  %2594 = vst [vmem:[%s5089_s23 + $0x1ab8] sm:$0xff] %v4541_v8  ;;  %4562 = vtanh.f32 %v589_v5  ;;  %v610_v5 = vld [vmem:[%s5068_s3 + $0xe38] sm:$0xff] }
 0x3a7   : > { %v4545_v12 = vpop.eup %4544  ;;  %2091 = vst [vmem:[%s5089_s23 + $0x1a60] sm:$0xff] %v4543_v10  ;;  %2595 = vst [vmem:[%s5089_s23 + $0x1ac0] sm:$0xff] %v4543_v10  ;;  %4564 = vtanh.f32 %v590_v7  ;;  %v611_v7 = vld [vmem:[%s5068_s3 + $0xe40] sm:$0xff] }
 0x3a8   : > { %v4547_v14 = vpop.eup %4546  ;;  %2092 = vst [vmem:[%s5089_s23 + $0x1a68] sm:$0xff] %v4545_v12  ;;  %2596 = vst [vmem:[%s5089_s23 + $0x1ac8] sm:$0xff] %v4545_v12  ;;  %4566 = vtanh.f32 %v591_v9  ;;  %v612_v9 = vld [vmem:[%s5068_s3 + $0xe48] sm:$0xff] }
 0x3a9   : > { %v4549_v16 = vpop.eup %4548  ;;  %2093 = vst [vmem:[%s5089_s23 + $0x1a70] sm:$0xff] %v4547_v14  ;;  %2597 = vst [vmem:[%s5089_s23 + $0x1ad0] sm:$0xff] %v4547_v14  ;;  %4568 = vtanh.f32 %v592_v11  ;;  %v613_v11 = vld [vmem:[%s5068_s3 + $0xe50] sm:$0xff] }
 0x3aa   : > { %v4551_v17 = vpop.eup %4550  ;;  %2094 = vst [vmem:[%s5089_s23 + $0x1a78] sm:$0xff] %v4549_v16  ;;  %2598 = vst [vmem:[%s5089_s23 + $0x1ad8] sm:$0xff] %v4549_v16  ;;  %4570 = vtanh.f32 %v593_v13  ;;  %v614_v13 = vld [vmem:[%s5068_s3 + $0xe58] sm:$0xff] }
 0x3ab   : > { %v4553_v18 = vpop.eup %4552  ;;  %2095 = vst [vmem:[%s5089_s23 + $0x1a80] sm:$0xff] %v4551_v17  ;;  %2599 = vst [vmem:[%s5089_s23 + $0x1ae0] sm:$0xff] %v4551_v17  ;;  %4572 = vtanh.f32 %v594_v15  ;;  %v615_v15 = vld [vmem:[%s5068_s3 + $0xe60] sm:$0xff]  ;;  %v616_v17 = vld [vmem:[%s5068_s3 + $0xe68] sm:$0xff] }
 0x3ac   : > { %v4555_v19 = vpop.eup %4554  ;;  %4574 = vtanh.f32 %v4553_v18 }
 0x3ad   : > { %v4557_v20 = vpop.eup %4556  ;;  %4576 = vtanh.f32 %v4555_v19 }
 0x3ae   : > { %v4559_v21 = vpop.eup %4558  ;;  %4578 = vtanh.f32 %v4557_v20 }
 0x3af   : > { %v4561_v22 = vpop.eup %4560  ;;  %4580 = vtanh.f32 %v4559_v21 }
 0x3b0   : > { %v4563_v23 = vpop.eup %4562  ;;  %4582 = vtanh.f32 %v4561_v22 }
 0x3b1   : > { %v4565_v24 = vpop.eup %4564  ;;  %4584 = vtanh.f32 %v4563_v23 }
 0x3b2   : > { %v4567_v25 = vpop.eup %4566  ;;  %4586 = vtanh.f32 %v4565_v24 }
 0x3b3   : > { %v4569_v26 = vpop.eup %4568  ;;  %4588 = vtanh.f32 %v4567_v25 }
 0x3b4   : > { %v4571_v27 = vpop.eup %4570  ;;  %4590 = vtanh.f32 %v4569_v26 }
 0x3b5   : > { %v4573_v29 = vpop.eup %4572  ;;  %4592 = vtanh.f32 %v4571_v27 }
 0x3b6   : > { %v4575_v31 = vpop.eup %4574  ;;  %4594 = vtanh.f32 %v4573_v29 }
 0x3b7   : > { %v4577_v33 = vpop.eup %4576  ;;  %2096 = vst [vmem:[%s5089_s23 + $0x1a88] sm:$0xff] %v4575_v31  ;;  %2600 = vst [vmem:[%s5089_s23 + $0x1ae8] sm:$0xff] %v4575_v31  ;;  %4596 = vtanh.f32 %v595_v28 }
 0x3b8   : > { %v4579_v35 = vpop.eup %4578  ;;  %2097 = vst [vmem:[%s5089_s23 + $0x1a90] sm:$0xff] %v4577_v33  ;;  %2601 = vst [vmem:[%s5089_s23 + $0x1af0] sm:$0xff] %v4577_v33  ;;  %4598 = vtanh.f32 %v596_v30  ;;  %v617_v30 = vld [vmem:[%s5068_s3 + $0xe70] sm:$0xff] }
 0x3b9   : > { %v4581_v37 = vpop.eup %4580  ;;  %2098 = vst [vmem:[%s5089_s23 + $0x1a98] sm:$0xff] %v4579_v35  ;;  %2602 = vst [vmem:[%s5089_s23 + $0x1af8] sm:$0xff] %v4579_v35  ;;  %4600 = vtanh.f32 %v597_v32  ;;  %v618_v32 = vld [vmem:[%s5068_s3 + $0xe78] sm:$0xff] }
 0x3ba   : > { %v4583_v39 = vpop.eup %4582  ;;  %2099 = vst [vmem:[%s5089_s23 + $0x1b00] sm:$0xff] %v4581_v37  ;;  %2603 = vst [vmem:[%s5089_s23 + $0x1b60] sm:$0xff] %v4581_v37  ;;  %4602 = vtanh.f32 %v598_v34  ;;  %v619_v34 = vld [vmem:[%s5068_s3 + $0xe80] sm:$0xff] }
 0x3bb   : > { %v4585_v41 = vpop.eup %4584  ;;  %2100 = vst [vmem:[%s5089_s23 + $0x1b08] sm:$0xff] %v4583_v39  ;;  %2604 = vst [vmem:[%s5089_s23 + $0x1b68] sm:$0xff] %v4583_v39  ;;  %4604 = vtanh.f32 %v599_v36  ;;  %v620_v36 = vld [vmem:[%s5068_s3 + $0xe88] sm:$0xff] }
 0x3bc   : > { %v4587_v43 = vpop.eup %4586  ;;  %2101 = vst [vmem:[%s5089_s23 + $0x1b10] sm:$0xff] %v4585_v41  ;;  %2605 = vst [vmem:[%s5089_s23 + $0x1b70] sm:$0xff] %v4585_v41  ;;  %4606 = vtanh.f32 %v600_v38  ;;  %v621_v38 = vld [vmem:[%s5068_s3 + $0xe90] sm:$0xff] }
 0x3bd   : > { %v4589_v45 = vpop.eup %4588  ;;  %2102 = vst [vmem:[%s5089_s23 + $0x1b18] sm:$0xff] %v4587_v43  ;;  %2606 = vst [vmem:[%s5089_s23 + $0x1b78] sm:$0xff] %v4587_v43  ;;  %4608 = vtanh.f32 %v601_v40  ;;  %v622_v40 = vld [vmem:[%s5068_s3 + $0xe98] sm:$0xff] }
 0x3be   : > { %v4591_v47 = vpop.eup %4590  ;;  %2103 = vst [vmem:[%s5089_s23 + $0x1b20] sm:$0xff] %v4589_v45  ;;  %2607 = vst [vmem:[%s5089_s23 + $0x1b80] sm:$0xff] %v4589_v45  ;;  %4610 = vtanh.f32 %v602_v42  ;;  %v623_v42 = vld [vmem:[%s5068_s3 + $0xea0] sm:$0xff] }
 0x3bf   : > { %v4593_v49 = vpop.eup %4592  ;;  %2104 = vst [vmem:[%s5089_s23 + $0x1b28] sm:$0xff] %v4591_v47  ;;  %2608 = vst [vmem:[%s5089_s23 + $0x1b88] sm:$0xff] %v4591_v47  ;;  %4612 = vtanh.f32 %v603_v44  ;;  %v624_v44 = vld [vmem:[%s5068_s3 + $0xea8] sm:$0xff] }
 0x3c0   : > { %v4595_v50 = vpop.eup %4594  ;;  %2105 = vst [vmem:[%s5089_s23 + $0x1b30] sm:$0xff] %v4593_v49  ;;  %2609 = vst [vmem:[%s5089_s23 + $0x1b90] sm:$0xff] %v4593_v49  ;;  %4614 = vtanh.f32 %v604_v46  ;;  %v625_v46 = vld [vmem:[%s5068_s3 + $0xeb0] sm:$0xff] }
 0x3c1   : > { %v4597_v51 = vpop.eup %4596  ;;  %2106 = vst [vmem:[%s5089_s23 + $0x1b38] sm:$0xff] %v4595_v50  ;;  %2610 = vst [vmem:[%s5089_s23 + $0x1b98] sm:$0xff] %v4595_v50  ;;  %4616 = vtanh.f32 %v605_v48  ;;  %v626_v48 = vld [vmem:[%s5068_s3 + $0xeb8] sm:$0xff]  ;;  %v627_v50 = vld [vmem:[%s5068_s3 + $0xec0] sm:$0xff] }
 0x3c2   : > { %v4599_v52 = vpop.eup %4598  ;;  %4618 = vtanh.f32 %v4597_v51 }
 0x3c3   : > { %v4601_v53 = vpop.eup %4600  ;;  %4620 = vtanh.f32 %v4599_v52 }
 0x3c4   : > { %v4603_v54 = vpop.eup %4602  ;;  %4622 = vtanh.f32 %v4601_v53 }
 0x3c5   : > { %v4605_v55 = vpop.eup %4604  ;;  %4624 = vtanh.f32 %v4603_v54 }
 0x3c6   : > { %v4607_v56 = vpop.eup %4606  ;;  %4626 = vtanh.f32 %v4605_v55 }
 0x3c7   : > { %v4609_v57 = vpop.eup %4608  ;;  %4628 = vtanh.f32 %v4607_v56 }
 0x3c8   : > { %v4611_v58 = vpop.eup %4610  ;;  %4630 = vtanh.f32 %v4609_v57 }
 0x3c9   : > { %v4613_v59 = vpop.eup %4612  ;;  %4632 = vtanh.f32 %v4611_v58 }
 0x3ca   : > { %v4615_v60 = vpop.eup %4614  ;;  %4634 = vtanh.f32 %v4613_v59 }
 0x3cb   : > { %v4617_v62 = vpop.eup %4616  ;;  %4636 = vtanh.f32 %v4615_v60 }
 0x3cc   : > { %v4619_v0 = vpop.eup %4618  ;;  %4638 = vtanh.f32 %v4617_v62 }
 0x3cd   : > { %v4621_v2 = vpop.eup %4620  ;;  %2107 = vst [vmem:[%s5089_s23 + $0x1b40] sm:$0xff] %v4619_v0  ;;  %2611 = vst [vmem:[%s5089_s23 + $0x1ba0] sm:$0xff] %v4619_v0  ;;  %4640 = vtanh.f32 %v606_v61 }
 0x3ce   : > { %v4623_v4 = vpop.eup %4622  ;;  %2108 = vst [vmem:[%s5089_s23 + $0x1b48] sm:$0xff] %v4621_v2  ;;  %2612 = vst [vmem:[%s5089_s23 + $0x1ba8] sm:$0xff] %v4621_v2  ;;  %4642 = vtanh.f32 %v607_v63  ;;  %v628_v63 = vld [vmem:[%s5068_s3 + $0xec8] sm:$0xff] }
 0x3cf   : > { %v4625_v6 = vpop.eup %4624  ;;  %2109 = vst [vmem:[%s5089_s23 + $0x1b50] sm:$0xff] %v4623_v4  ;;  %2613 = vst [vmem:[%s5089_s23 + $0x1bb0] sm:$0xff] %v4623_v4  ;;  %4644 = vtanh.f32 %v608_v1  ;;  %v629_v1 = vld [vmem:[%s5068_s3 + $0xed0] sm:$0xff] }
 0x3d0   : > { %v4627_v8 = vpop.eup %4626  ;;  %2110 = vst [vmem:[%s5089_s23 + $0x1b58] sm:$0xff] %v4625_v6  ;;  %2614 = vst [vmem:[%s5089_s23 + $0x1bb8] sm:$0xff] %v4625_v6  ;;  %4646 = vtanh.f32 %v609_v3  ;;  %v630_v3 = vld [vmem:[%s5068_s3 + $0xed8] sm:$0xff] }
 0x3d1   : > { %v4629_v10 = vpop.eup %4628  ;;  %2111 = vst [vmem:[%s5089_s23 + $0x1bc0] sm:$0xff] %v4627_v8  ;;  %2615 = vst [vmem:[%s5089_s23 + $0x1c20] sm:$0xff] %v4627_v8  ;;  %4648 = vtanh.f32 %v610_v5  ;;  %v631_v5 = vld [vmem:[%s5068_s3 + $0xee0] sm:$0xff] }
 0x3d2   : > { %v4631_v12 = vpop.eup %4630  ;;  %2112 = vst [vmem:[%s5089_s23 + $0x1bc8] sm:$0xff] %v4629_v10  ;;  %2616 = vst [vmem:[%s5089_s23 + $0x1c28] sm:$0xff] %v4629_v10  ;;  %4650 = vtanh.f32 %v611_v7  ;;  %v632_v7 = vld [vmem:[%s5068_s3 + $0xee8] sm:$0xff] }
 0x3d3   : > { %v4633_v14 = vpop.eup %4632  ;;  %2113 = vst [vmem:[%s5089_s23 + $0x1bd0] sm:$0xff] %v4631_v12  ;;  %2617 = vst [vmem:[%s5089_s23 + $0x1c30] sm:$0xff] %v4631_v12  ;;  %4652 = vtanh.f32 %v612_v9  ;;  %v633_v9 = vld [vmem:[%s5068_s3 + $0xef0] sm:$0xff] }
 0x3d4   : > { %v4635_v16 = vpop.eup %4634  ;;  %2114 = vst [vmem:[%s5089_s23 + $0x1bd8] sm:$0xff] %v4633_v14  ;;  %2618 = vst [vmem:[%s5089_s23 + $0x1c38] sm:$0xff] %v4633_v14  ;;  %4654 = vtanh.f32 %v613_v11  ;;  %v634_v11 = vld [vmem:[%s5068_s3 + $0xef8] sm:$0xff] }
 0x3d5   : > { %v4637_v18 = vpop.eup %4636  ;;  %2115 = vst [vmem:[%s5089_s23 + $0x1be0] sm:$0xff] %v4635_v16  ;;  %2619 = vst [vmem:[%s5089_s23 + $0x1c40] sm:$0xff] %v4635_v16  ;;  %4656 = vtanh.f32 %v614_v13  ;;  %v635_v13 = vld [vmem:[%s5068_s3 + $0xf00] sm:$0xff] }
 0x3d6   : > { %v4639_v19 = vpop.eup %4638  ;;  %2116 = vst [vmem:[%s5089_s23 + $0x1be8] sm:$0xff] %v4637_v18  ;;  %2620 = vst [vmem:[%s5089_s23 + $0x1c48] sm:$0xff] %v4637_v18  ;;  %4658 = vtanh.f32 %v615_v15  ;;  %v636_v15 = vld [vmem:[%s5068_s3 + $0xf08] sm:$0xff] }
 0x3d7   : > { %v4641_v20 = vpop.eup %4640  ;;  %2117 = vst [vmem:[%s5089_s23 + $0x1bf0] sm:$0xff] %v4639_v19  ;;  %2621 = vst [vmem:[%s5089_s23 + $0x1c50] sm:$0xff] %v4639_v19  ;;  %4660 = vtanh.f32 %v616_v17  ;;  %v637_v17 = vld [vmem:[%s5068_s3 + $0xf10] sm:$0xff]  ;;  %v638_v19 = vld [vmem:[%s5068_s3 + $0xf18] sm:$0xff] }
 0x3d8   : > { %v4643_v21 = vpop.eup %4642  ;;  %4662 = vtanh.f32 %v4641_v20 }
 0x3d9   : > { %v4645_v22 = vpop.eup %4644  ;;  %4664 = vtanh.f32 %v4643_v21 }
 0x3da   : > { %v4647_v23 = vpop.eup %4646  ;;  %4666 = vtanh.f32 %v4645_v22 }
 0x3db   : > { %v4649_v24 = vpop.eup %4648  ;;  %4668 = vtanh.f32 %v4647_v23 }
 0x3dc   : > { %v4651_v25 = vpop.eup %4650  ;;  %4670 = vtanh.f32 %v4649_v24 }
 0x3dd   : > { %v4653_v26 = vpop.eup %4652  ;;  %4672 = vtanh.f32 %v4651_v25 }
 0x3de   : > { %v4655_v27 = vpop.eup %4654  ;;  %4674 = vtanh.f32 %v4653_v26 }
 0x3df   : > { %v4657_v28 = vpop.eup %4656  ;;  %4676 = vtanh.f32 %v4655_v27 }
 0x3e0   : > { %v4659_v29 = vpop.eup %4658  ;;  %4678 = vtanh.f32 %v4657_v28 }
 0x3e1   : > { %v4661_v31 = vpop.eup %4660  ;;  %4680 = vtanh.f32 %v4659_v29 }
 0x3e2   : > { %v4663_v33 = vpop.eup %4662  ;;  %4682 = vtanh.f32 %v4661_v31 }
 0x3e3   : > { %v4665_v35 = vpop.eup %4664  ;;  %2118 = vst [vmem:[%s5089_s23 + $0x1bf8] sm:$0xff] %v4663_v33  ;;  %2622 = vst [vmem:[%s5089_s23 + $0x1c58] sm:$0xff] %v4663_v33  ;;  %4684 = vtanh.f32 %v617_v30 }
 0x3e4   : > { %v4667_v37 = vpop.eup %4666  ;;  %2119 = vst [vmem:[%s5089_s23 + $0x1c00] sm:$0xff] %v4665_v35  ;;  %2623 = vst [vmem:[%s5089_s23 + $0x1c60] sm:$0xff] %v4665_v35  ;;  %4686 = vtanh.f32 %v618_v32  ;;  %v639_v32 = vld [vmem:[%s5068_s3 + $0xf20] sm:$0xff] }
 0x3e5   : > { %v4669_v39 = vpop.eup %4668  ;;  %2120 = vst [vmem:[%s5089_s23 + $0x1c08] sm:$0xff] %v4667_v37  ;;  %2624 = vst [vmem:[%s5089_s23 + $0x1c68] sm:$0xff] %v4667_v37  ;;  %4688 = vtanh.f32 %v619_v34  ;;  %v640_v34 = vld [vmem:[%s5068_s3 + $0xf28] sm:$0xff] }
 0x3e6   : > { %v4671_v41 = vpop.eup %4670  ;;  %2121 = vst [vmem:[%s5089_s23 + $0x1c10] sm:$0xff] %v4669_v39  ;;  %2625 = vst [vmem:[%s5089_s23 + $0x1c70] sm:$0xff] %v4669_v39  ;;  %4690 = vtanh.f32 %v620_v36  ;;  %v641_v36 = vld [vmem:[%s5068_s3 + $0xf30] sm:$0xff] }
 0x3e7   : > { %v4673_v43 = vpop.eup %4672  ;;  %2122 = vst [vmem:[%s5089_s23 + $0x1c18] sm:$0xff] %v4671_v41  ;;  %2626 = vst [vmem:[%s5089_s23 + $0x1c78] sm:$0xff] %v4671_v41  ;;  %4692 = vtanh.f32 %v621_v38  ;;  %v642_v38 = vld [vmem:[%s5068_s3 + $0xf38] sm:$0xff] }
 0x3e8   : > { %v4675_v45 = vpop.eup %4674  ;;  %2123 = vst [vmem:[%s5089_s23 + $0x1c80] sm:$0xff] %v4673_v43  ;;  %2627 = vst [vmem:[%s5089_s23 + $0x1ce0] sm:$0xff] %v4673_v43  ;;  %4694 = vtanh.f32 %v622_v40  ;;  %v643_v40 = vld [vmem:[%s5068_s3 + $0xf40] sm:$0xff] }
 0x3e9   : > { %v4677_v47 = vpop.eup %4676  ;;  %2124 = vst [vmem:[%s5089_s23 + $0x1c88] sm:$0xff] %v4675_v45  ;;  %2628 = vst [vmem:[%s5089_s23 + $0x1ce8] sm:$0xff] %v4675_v45  ;;  %4696 = vtanh.f32 %v623_v42  ;;  %v644_v42 = vld [vmem:[%s5068_s3 + $0xf48] sm:$0xff] }
 0x3ea   : > { %v4679_v49 = vpop.eup %4678  ;;  %2125 = vst [vmem:[%s5089_s23 + $0x1c90] sm:$0xff] %v4677_v47  ;;  %2629 = vst [vmem:[%s5089_s23 + $0x1cf0] sm:$0xff] %v4677_v47  ;;  %4698 = vtanh.f32 %v624_v44  ;;  %v645_v44 = vld [vmem:[%s5068_s3 + $0xf50] sm:$0xff] }
 0x3eb   : > { %v4681_v51 = vpop.eup %4680  ;;  %2126 = vst [vmem:[%s5089_s23 + $0x1c98] sm:$0xff] %v4679_v49  ;;  %2630 = vst [vmem:[%s5089_s23 + $0x1cf8] sm:$0xff] %v4679_v49  ;;  %4700 = vtanh.f32 %v625_v46  ;;  %v646_v46 = vld [vmem:[%s5068_s3 + $0xf58] sm:$0xff] }
 0x3ec   : > { %v4683_v52 = vpop.eup %4682  ;;  %2127 = vst [vmem:[%s5089_s23 + $0x1ca0] sm:$0xff] %v4681_v51  ;;  %2631 = vst [vmem:[%s5089_s23 + $0x1d00] sm:$0xff] %v4681_v51  ;;  %4702 = vtanh.f32 %v626_v48  ;;  %v647_v48 = vld [vmem:[%s5068_s3 + $0xf60] sm:$0xff] }
 0x3ed   : > { %v4685_v53 = vpop.eup %4684  ;;  %2128 = vst [vmem:[%s5089_s23 + $0x1ca8] sm:$0xff] %v4683_v52  ;;  %2632 = vst [vmem:[%s5089_s23 + $0x1d08] sm:$0xff] %v4683_v52  ;;  %4704 = vtanh.f32 %v627_v50  ;;  %v648_v50 = vld [vmem:[%s5068_s3 + $0xf68] sm:$0xff]  ;;  %v649_v52 = vld [vmem:[%s5068_s3 + $0xf70] sm:$0xff] }
 0x3ee   : > { %v4687_v54 = vpop.eup %4686  ;;  %4706 = vtanh.f32 %v4685_v53 }
 0x3ef   : > { %v4689_v55 = vpop.eup %4688  ;;  %4708 = vtanh.f32 %v4687_v54 }
 0x3f0   : > { %v4691_v56 = vpop.eup %4690  ;;  %4710 = vtanh.f32 %v4689_v55 }
 0x3f1   : > { %v4693_v57 = vpop.eup %4692  ;;  %4712 = vtanh.f32 %v4691_v56 }
 0x3f2   : > { %v4695_v58 = vpop.eup %4694  ;;  %4714 = vtanh.f32 %v4693_v57 }
 0x3f3   : > { %v4697_v59 = vpop.eup %4696  ;;  %4716 = vtanh.f32 %v4695_v58 }
 0x3f4   : > { %v4699_v60 = vpop.eup %4698  ;;  %4718 = vtanh.f32 %v4697_v59 }
 0x3f5   : > { %v4701_v61 = vpop.eup %4700  ;;  %4720 = vtanh.f32 %v4699_v60 }
 0x3f6   : > { %v4703_v62 = vpop.eup %4702  ;;  %4722 = vtanh.f32 %v4701_v61 }
 0x3f7   : > { %v4705_v0 = vpop.eup %4704  ;;  %4724 = vtanh.f32 %v4703_v62 }
 0x3f8   : > { %v4707_v2 = vpop.eup %4706  ;;  %4726 = vtanh.f32 %v4705_v0 }
 0x3f9   : > { %v4709_v4 = vpop.eup %4708  ;;  %2129 = vst [vmem:[%s5089_s23 + $0x1cb0] sm:$0xff] %v4707_v2  ;;  %2633 = vst [vmem:[%s5089_s23 + $0x1d10] sm:$0xff] %v4707_v2  ;;  %4728 = vtanh.f32 %v628_v63 }
 0x3fa   : > { %v4711_v6 = vpop.eup %4710  ;;  %2130 = vst [vmem:[%s5089_s23 + $0x1cb8] sm:$0xff] %v4709_v4  ;;  %2634 = vst [vmem:[%s5089_s23 + $0x1d18] sm:$0xff] %v4709_v4  ;;  %4730 = vtanh.f32 %v629_v1  ;;  %v650_v1 = vld [vmem:[%s5068_s3 + $0xf78] sm:$0xff] }
 0x3fb   : > { %v4713_v8 = vpop.eup %4712  ;;  %2131 = vst [vmem:[%s5089_s23 + $0x1cc0] sm:$0xff] %v4711_v6  ;;  %2635 = vst [vmem:[%s5089_s23 + $0x1d20] sm:$0xff] %v4711_v6  ;;  %4732 = vtanh.f32 %v630_v3  ;;  %v651_v3 = vld [vmem:[%s5068_s3 + $0xf80] sm:$0xff] }
 0x3fc   : > { %v4715_v10 = vpop.eup %4714  ;;  %2132 = vst [vmem:[%s5089_s23 + $0x1cc8] sm:$0xff] %v4713_v8  ;;  %2636 = vst [vmem:[%s5089_s23 + $0x1d28] sm:$0xff] %v4713_v8  ;;  %4734 = vtanh.f32 %v631_v5  ;;  %v652_v5 = vld [vmem:[%s5068_s3 + $0xf88] sm:$0xff] }
 0x3fd   : > { %v4717_v12 = vpop.eup %4716  ;;  %2133 = vst [vmem:[%s5089_s23 + $0x1cd0] sm:$0xff] %v4715_v10  ;;  %2637 = vst [vmem:[%s5089_s23 + $0x1d30] sm:$0xff] %v4715_v10  ;;  %4736 = vtanh.f32 %v632_v7  ;;  %v653_v7 = vld [vmem:[%s5068_s3 + $0xf90] sm:$0xff] }
 0x3fe   : > { %v4719_v14 = vpop.eup %4718  ;;  %2134 = vst [vmem:[%s5089_s23 + $0x1cd8] sm:$0xff] %v4717_v12  ;;  %2638 = vst [vmem:[%s5089_s23 + $0x1d38] sm:$0xff] %v4717_v12  ;;  %4738 = vtanh.f32 %v633_v9  ;;  %v654_v9 = vld [vmem:[%s5068_s3 + $0xf98] sm:$0xff] }
 0x3ff   : > { %v4721_v16 = vpop.eup %4720  ;;  %2135 = vst [vmem:[%s5089_s23 + $0x1d40] sm:$0xff] %v4719_v14  ;;  %2639 = vst [vmem:[%s5089_s23 + $0x1da0] sm:$0xff] %v4719_v14  ;;  %4740 = vtanh.f32 %v634_v11  ;;  %v655_v11 = vld [vmem:[%s5068_s3 + $0xfa0] sm:$0xff] }
 0x400   : > { %v4723_v18 = vpop.eup %4722  ;;  %2136 = vst [vmem:[%s5089_s23 + $0x1d48] sm:$0xff] %v4721_v16  ;;  %2640 = vst [vmem:[%s5089_s23 + $0x1da8] sm:$0xff] %v4721_v16  ;;  %4742 = vtanh.f32 %v635_v13  ;;  %v656_v13 = vld [vmem:[%s5068_s3 + $0xfa8] sm:$0xff] }
 0x401   : > { %v4725_v20 = vpop.eup %4724  ;;  %2137 = vst [vmem:[%s5089_s23 + $0x1d50] sm:$0xff] %v4723_v18  ;;  %2641 = vst [vmem:[%s5089_s23 + $0x1db0] sm:$0xff] %v4723_v18  ;;  %4744 = vtanh.f32 %v636_v15  ;;  %v657_v15 = vld [vmem:[%s5068_s3 + $0xfb0] sm:$0xff] }
 0x402   : > { %v4727_v21 = vpop.eup %4726  ;;  %2138 = vst [vmem:[%s5089_s23 + $0x1d58] sm:$0xff] %v4725_v20  ;;  %2642 = vst [vmem:[%s5089_s23 + $0x1db8] sm:$0xff] %v4725_v20  ;;  %4746 = vtanh.f32 %v637_v17  ;;  %v658_v17 = vld [vmem:[%s5068_s3 + $0xfb8] sm:$0xff] }
 0x403   : > { %v4729_v22 = vpop.eup %4728  ;;  %2139 = vst [vmem:[%s5089_s23 + $0x1d60] sm:$0xff] %v4727_v21  ;;  %2643 = vst [vmem:[%s5089_s23 + $0x1dc0] sm:$0xff] %v4727_v21  ;;  %4748 = vtanh.f32 %v638_v19 }
 0x404   : > { %v4731_v23 = vpop.eup %4730  ;;  %4750 = vtanh.f32 %v4729_v22 }
 0x405   : > { %v4733_v24 = vpop.eup %4732  ;;  %4752 = vtanh.f32 %v4731_v23 }
 0x406   : > { %v4735_v25 = vpop.eup %4734  ;;  %4754 = vtanh.f32 %v4733_v24 }
 0x407   : > { %v4737_v26 = vpop.eup %4736  ;;  %4756 = vtanh.f32 %v4735_v25 }
 0x408   : > { %v4739_v27 = vpop.eup %4738  ;;  %4758 = vtanh.f32 %v4737_v26 }
 0x409   : > { %v4741_v28 = vpop.eup %4740  ;;  %4760 = vtanh.f32 %v4739_v27 }
 0x40a   : > { %v4743_v29 = vpop.eup %4742  ;;  %4762 = vtanh.f32 %v4741_v28 }
 0x40b   : > { %v4745_v30 = vpop.eup %4744  ;;  %4764 = vtanh.f32 %v4743_v29 }
 0x40c   : > { %v4747_v31 = vpop.eup %4746  ;;  %4766 = vtanh.f32 %v4745_v30 }
 0x40d   : > { %v4749_v33 = vpop.eup %4748  ;;  %4768 = vtanh.f32 %v4747_v31 }
 0x40e   : > { %v4751_v35 = vpop.eup %4750  ;;  %4770 = vtanh.f32 %v4749_v33 }
 0x40f   : > { %v4753_v37 = vpop.eup %4752  ;;  %2140 = vst [vmem:[%s5089_s23 + $0x1d68] sm:$0xff] %v4751_v35  ;;  %2644 = vst [vmem:[%s5089_s23 + $0x1dc8] sm:$0xff] %v4751_v35  ;;  %4772 = vtanh.f32 %v639_v32 }
 0x410   : > { %v4755_v39 = vpop.eup %4754  ;;  %2141 = vst [vmem:[%s5089_s23 + $0x1d70] sm:$0xff] %v4753_v37  ;;  %2645 = vst [vmem:[%s5089_s23 + $0x1dd0] sm:$0xff] %v4753_v37  ;;  %4774 = vtanh.f32 %v640_v34 }
 0x411   : > { %v4757_v41 = vpop.eup %4756  ;;  %2142 = vst [vmem:[%s5089_s23 + $0x1d78] sm:$0xff] %v4755_v39  ;;  %2646 = vst [vmem:[%s5089_s23 + $0x1dd8] sm:$0xff] %v4755_v39  ;;  %4776 = vtanh.f32 %v641_v36 }
 0x412   : > { %v4759_v43 = vpop.eup %4758  ;;  %2143 = vst [vmem:[%s5089_s23 + $0x1d80] sm:$0xff] %v4757_v41  ;;  %2647 = vst [vmem:[%s5089_s23 + $0x1de0] sm:$0xff] %v4757_v41  ;;  %4778 = vtanh.f32 %v642_v38 }
 0x413   : > { %v4761_v45 = vpop.eup %4760  ;;  %2144 = vst [vmem:[%s5089_s23 + $0x1d88] sm:$0xff] %v4759_v43  ;;  %2648 = vst [vmem:[%s5089_s23 + $0x1de8] sm:$0xff] %v4759_v43  ;;  %4780 = vtanh.f32 %v643_v40 }
 0x414   : > { %v4763_v47 = vpop.eup %4762  ;;  %2145 = vst [vmem:[%s5089_s23 + $0x1d90] sm:$0xff] %v4761_v45  ;;  %2649 = vst [vmem:[%s5089_s23 + $0x1df0] sm:$0xff] %v4761_v45  ;;  %4782 = vtanh.f32 %v644_v42 }
 0x415   : > { %v4765_v49 = vpop.eup %4764  ;;  %2146 = vst [vmem:[%s5089_s23 + $0x1d98] sm:$0xff] %v4763_v47  ;;  %2650 = vst [vmem:[%s5089_s23 + $0x1df8] sm:$0xff] %v4763_v47  ;;  %4784 = vtanh.f32 %v645_v44 }
 0x416   : > { %v4767_v51 = vpop.eup %4766  ;;  %2147 = vst [vmem:[%s5089_s23 + $0x1e00] sm:$0xff] %v4765_v49  ;;  %2651 = vst [vmem:[%s5089_s23 + $0x1e60] sm:$0xff] %v4765_v49  ;;  %4786 = vtanh.f32 %v646_v46 }
 0x417   : > { %v4769_v53 = vpop.eup %4768  ;;  %2148 = vst [vmem:[%s5089_s23 + $0x1e08] sm:$0xff] %v4767_v51  ;;  %2652 = vst [vmem:[%s5089_s23 + $0x1e68] sm:$0xff] %v4767_v51  ;;  %4788 = vtanh.f32 %v647_v48 }
 0x418   : > { %v4771_v54 = vpop.eup %4770  ;;  %2149 = vst [vmem:[%s5089_s23 + $0x1e10] sm:$0xff] %v4769_v53  ;;  %2653 = vst [vmem:[%s5089_s23 + $0x1e70] sm:$0xff] %v4769_v53  ;;  %4790 = vtanh.f32 %v648_v50 }
 0x419   : > { %v4773_v55 = vpop.eup %4772  ;;  %2150 = vst [vmem:[%s5089_s23 + $0x1e18] sm:$0xff] %v4771_v54  ;;  %2654 = vst [vmem:[%s5089_s23 + $0x1e78] sm:$0xff] %v4771_v54  ;;  %4792 = vtanh.f32 %v649_v52 }
 0x41a   : > { %v4775_v56 = vpop.eup %4774  ;;  %4794 = vtanh.f32 %v4773_v55 }
 0x41b   : > { %v4777_v57 = vpop.eup %4776  ;;  %4796 = vtanh.f32 %v4775_v56 }
 0x41c   : > { %v4779_v58 = vpop.eup %4778  ;;  %4798 = vtanh.f32 %v4777_v57 }
 0x41d   : > { %v4781_v59 = vpop.eup %4780  ;;  %4800 = vtanh.f32 %v4779_v58 }
 0x41e   : > { %v4783_v60 = vpop.eup %4782  ;;  %4802 = vtanh.f32 %v4781_v59 }
 0x41f   : > { %v4785_v61 = vpop.eup %4784  ;;  %4804 = vtanh.f32 %v4783_v60 }
 0x420   : > { %v4787_v62 = vpop.eup %4786  ;;  %4806 = vtanh.f32 %v4785_v61 }
 0x421   : > { %v4789_v63 = vpop.eup %4788  ;;  %4808 = vtanh.f32 %v4787_v62 }
 0x422   : > { %v4791_v0 = vpop.eup %4790  ;;  %4810 = vtanh.f32 %v4789_v63 }
 0x423   : > { %v4793_v2 = vpop.eup %4792  ;;  %4812 = vtanh.f32 %v4791_v0 }
 0x424   : > { %v4795_v4 = vpop.eup %4794  ;;  %4814 = vtanh.f32 %v4793_v2 }
 0x425   : > { %v4797_v6 = vpop.eup %4796  ;;  %2151 = vst [vmem:[%s5089_s23 + $0x1e20] sm:$0xff] %v4795_v4  ;;  %2655 = vst [vmem:[%s5089_s23 + $0x1e80] sm:$0xff] %v4795_v4  ;;  %4816 = vtanh.f32 %v650_v1 }
 0x426   : > { %v4799_v8 = vpop.eup %4798  ;;  %2152 = vst [vmem:[%s5089_s23 + $0x1e28] sm:$0xff] %v4797_v6  ;;  %2656 = vst [vmem:[%s5089_s23 + $0x1e88] sm:$0xff] %v4797_v6  ;;  %4818 = vtanh.f32 %v651_v3 }
 0x427   : > { %v4801_v10 = vpop.eup %4800  ;;  %2153 = vst [vmem:[%s5089_s23 + $0x1e30] sm:$0xff] %v4799_v8  ;;  %2657 = vst [vmem:[%s5089_s23 + $0x1e90] sm:$0xff] %v4799_v8  ;;  %4820 = vtanh.f32 %v652_v5 }
 0x428   : > { %v4803_v12 = vpop.eup %4802  ;;  %2154 = vst [vmem:[%s5089_s23 + $0x1e38] sm:$0xff] %v4801_v10  ;;  %2658 = vst [vmem:[%s5089_s23 + $0x1e98] sm:$0xff] %v4801_v10  ;;  %4822 = vtanh.f32 %v653_v7 }
 0x429   : > { %v4805_v14 = vpop.eup %4804  ;;  %2155 = vst [vmem:[%s5089_s23 + $0x1e40] sm:$0xff] %v4803_v12  ;;  %2659 = vst [vmem:[%s5089_s23 + $0x1ea0] sm:$0xff] %v4803_v12  ;;  %4824 = vtanh.f32 %v654_v9 }
 0x42a   : > { %v4807_v16 = vpop.eup %4806  ;;  %2156 = vst [vmem:[%s5089_s23 + $0x1e48] sm:$0xff] %v4805_v14  ;;  %2660 = vst [vmem:[%s5089_s23 + $0x1ea8] sm:$0xff] %v4805_v14  ;;  %4826 = vtanh.f32 %v655_v11 }
 0x42b   : > { %v4809_v18 = vpop.eup %4808  ;;  %2157 = vst [vmem:[%s5089_s23 + $0x1e50] sm:$0xff] %v4807_v16  ;;  %2661 = vst [vmem:[%s5089_s23 + $0x1eb0] sm:$0xff] %v4807_v16  ;;  %4828 = vtanh.f32 %v656_v13 }
 0x42c   : > { %v4811_v19 = vpop.eup %4810  ;;  %2158 = vst [vmem:[%s5089_s23 + $0x1e58] sm:$0xff] %v4809_v18  ;;  %2662 = vst [vmem:[%s5089_s23 + $0x1eb8] sm:$0xff] %v4809_v18  ;;  %4830 = vtanh.f32 %v657_v15 }
 0x42d   : > { %v4813_v20 = vpop.eup %4812  ;;  %2159 = vst [vmem:[%s5089_s23 + $0x1ec0] sm:$0xff] %v4811_v19  ;;  %2663 = vst [vmem:[%s5089_s23 + $0x1f20] sm:$0xff] %v4811_v19  ;;  %4832 = vtanh.f32 %v658_v17 }
 0x42e   : > { %v4815_v21 = vpop.eup %4814  ;;  %2160 = vst [vmem:[%s5089_s23 + $0x1ec8] sm:$0xff] %v4813_v20  ;;  %2664 = vst [vmem:[%s5089_s23 + $0x1f28] sm:$0xff] %v4813_v20 }
 0x42f   : > { %v4817_v22 = vpop.eup %4816  ;;  %2161 = vst [vmem:[%s5089_s23 + $0x1ed0] sm:$0xff] %v4815_v21  ;;  %2665 = vst [vmem:[%s5089_s23 + $0x1f30] sm:$0xff] %v4815_v21 }
 0x430   : > { %v4819_v23 = vpop.eup %4818  ;;  %4834 = vtanh.f32 %v4817_v22 }
 0x431   : > { %v4821_v24 = vpop.eup %4820  ;;  %4836 = vtanh.f32 %v4819_v23 }
 0x432   : > { %v4823_v25 = vpop.eup %4822  ;;  %4838 = vtanh.f32 %v4821_v24 }
 0x433   : > { %v4825_v26 = vpop.eup %4824  ;;  %4840 = vtanh.f32 %v4823_v25 }
 0x434   : > { %v4827_v27 = vpop.eup %4826  ;;  %4842 = vtanh.f32 %v4825_v26 }
 0x435   : > { %v4829_v28 = vpop.eup %4828  ;;  %4844 = vtanh.f32 %v4827_v27 }
 0x436   : > { %v4831_v29 = vpop.eup %4830  ;;  %4846 = vtanh.f32 %v4829_v28 }
 0x437   : > { %v4833_v30 = vpop.eup %4832  ;;  %4848 = vtanh.f32 %v4831_v29 }
 0x438   : > { %4850 = vtanh.f32 %v4833_v30 }
 0x43a   : > { %v4835_v31 = vpop.eup %4834 }
 0x43b   : > { %v4837_v32 = vpop.eup %4836  ;;  %2162 = vst [vmem:[%s5089_s23 + $0x1ed8] sm:$0xff] %v4835_v31  ;;  %2666 = vst [vmem:[%s5089_s23 + $0x1f38] sm:$0xff] %v4835_v31 }
 0x43c   : > { %v4839_v33 = vpop.eup %4838  ;;  %2163 = vst [vmem:[%s5089_s23 + $0x1ee0] sm:$0xff] %v4837_v32  ;;  %2667 = vst [vmem:[%s5089_s23 + $0x1f40] sm:$0xff] %v4837_v32 }
 0x43d   : > { %v4841_v34 = vpop.eup %4840  ;;  %2164 = vst [vmem:[%s5089_s23 + $0x1ee8] sm:$0xff] %v4839_v33  ;;  %2668 = vst [vmem:[%s5089_s23 + $0x1f48] sm:$0xff] %v4839_v33  ;;  %2682 = sbr.rel (!%p5008_p9) target bundleno = 1121 (0x461), region = 32 }
 0x43e   : > { %v4843_v35 = vpop.eup %4842  ;;  %2165 = vst [vmem:[%s5089_s23 + $0x1ef0] sm:$0xff] %v4841_v34  ;;  %2669 = vst [vmem:[%s5089_s23 + $0x1f50] sm:$0xff] %v4841_v34 }
 0x43f   : > { %v4845_v36 = vpop.eup %4844  ;;  %2166 = vst [vmem:[%s5089_s23 + $0x1ef8] sm:$0xff] %v4843_v35  ;;  %2670 = vst [vmem:[%s5089_s23 + $0x1f58] sm:$0xff] %v4843_v35 }
 0x440   : > { %v4847_v37 = vpop.eup %4846  ;;  %2167 = vst [vmem:[%s5089_s23 + $0x1f00] sm:$0xff] %v4845_v36  ;;  %2671 = vst [vmem:[%s5089_s23 + $0x1f60] sm:$0xff] %v4845_v36 }
 0x441   : > { %v4849_v38 = vpop.eup %4848  ;;  %2168 = vst [vmem:[%s5089_s23 + $0x1f08] sm:$0xff] %v4847_v37  ;;  %2672 = vst [vmem:[%s5089_s23 + $0x1f68] sm:$0xff] %v4847_v37 }
 0x442   : > { %v4851_v39 = vpop.eup %4850  ;;  %2169 = vst [vmem:[%s5089_s23 + $0x1f10] sm:$0xff] %v4849_v38  ;;  %2673 = vst [vmem:[%s5089_s23 + $0x1f70] sm:$0xff] %v4849_v38 }
 0x443   : > { %2170 = vst [vmem:[%s5089_s23 + $0x1f18] sm:$0xff] %v4851_v39  ;;  %2674 = vst [vmem:[%s5089_s23 + $0x1f78] sm:$0xff] %v4851_v39 }
 0x444   : > { %s6667_s2 = smov (!%p2685_p6, %s2684_s2), 42 }
 0x445   : > { %s6593_s4 = smul.u32 3072, %s6667_s2 }
 0x447   : > { %s2690_s5 = ssub.s32 129024, %s6593_s4 }
 0x448   : > { %2691 = vsyncadd %s2676_s25, %s2690_s5  ;;  %p2781_p10 = scmp.ne.s32.totalorder %s6593_s4, 0  ;;  %s2798_s17 = smul.u32 129024, %s4985_s10 }
 0x449   : > { %s2697_s11 = sshll.u32 %s5089_s23, 4  ;;  %s4951_s21 = smov [#allocation5]   ;;  %s6606_s11 = int_to_ptr.vmem [resolvable:$true] %s2697_s11 }
 0x44a   : > { %s6604_s19 = scalar_lea.hbm %s6653_s1, %s2798_s17  ;;  %s4880_s20 = scalar_lea.vmem %s6606_s11, %s6593_s4 }
 0x44b   : > { %p4881_p9 = scmp.ne.s32.totalorder %s6606_s11, %s4880_s20  ;;  %s4884_s22 = sshll.u32 %s4951_s21, 4  ;;  %s4885_s22 = int_to_ptr.vmem [resolvable:$false] %s4884_s22 }
 0x44c   : > { %s4886_s10 = scalar_lea.vmem %s4885_s22, 258048  ;;  %p4887_p12 = scmp.lt.s32.totalorder %s6606_s11, %s4885_s22 }
 0x44d   : > { %p4882_p11 = pnand %p4881_p9, %p2781_p10  ;;  %p4888_p0 = scmp.lt.s32.totalorder %s4886_s10, %s4880_s20 }
 0x44f   : > { %p4883_p13 = pneg %p4882_p11  ;;  %p4889_p1 = por %p4888_p0, %p4887_p12 }
 0x451   : > { %p4890_p3 = pnand %p4889_p1, %p4883_p13 }
 0x453   : > { %4893 = shalt.err (!%p4890_p3)
}
 0x454   : > { %s4894_s24 = scalar_lea.hbm %s6604_s19, %s6593_s4  ;;  %s4898_s30 = scalar_lea.hbm %s6653_s1, 196608 }
 0x455   : > { %p4895_p4 = scmp.ne.s32.totalorder %s6604_s19, %s4894_s24  ;;  %p4899_p7 = scmp.lt.u32.totalorder %s6604_s19, %s6653_s1 }
 0x456   : > { %p4900_p8 = scmp.lt.u32.totalorder %s4898_s30, %s4894_s24  ;;  %p4902_p9 = scmp.lt.u32.totalorder %s4894_s24, %s6604_s19 }
 0x457   : > { %p4896_p5 = pnand %p4895_p4, %p2781_p10 }
 0x458   : > { %p4901_p6 = por %p4900_p8, %p4899_p7 }
 0x459   : > { %p4897_p2 = pneg %p4896_p5 }
 0x45a   : > { %p4903_p11 = por %p4902_p9, %p4901_p6 }
 0x45c   : > { %p4904_p13 = pnand %p4903_p11, %p4897_p2 }
 0x45e   : > { %4907 = shalt.err (!%p4904_p13)
}
 0x45f   : > { %s4952_s23 = smov 3072   ;;  %s4953_s28 = smov 192  }
 0x460   : > { %2703 = dma.vmem_to_hbm [thread:$0]  (%p2781_p10), %s6606_s11, %s6593_s4, %s6604_s19, %s2676_s25, %s4952_s23, %s4952_s23, %s4953_s28  }
 0x461 PF: > { %s2712_s2 = sand.u32 1, %s4934_s6   ;;  %p6658_p12 = scmp.ne.s32.totalorder %s6657_s18, 0 }
 0x462   : > { %p6659_p0 = scmp.ge.s32.totalorder %s4946_s9, 2  ;;  %s2713_s5 = scalar_lea.sflag [#allocation4], %s2712_s2 }
 0x464   : > { %p2794_p1 = pnand %p6659_p0, %p6658_p12 }
 0x466   : > { %4929 = dma.done.wait (!%p2794_p1), %s2713_s5, 129024  }
 0x467   : > { %4931 = vsyncadd (!%p2794_p1), %s2713_s5, 4294838272  ;;  %p14_p3 = scmp.ge.s32.totalorder %s4989_s12, 4   ;;  %s6660_s6 = smov %s4938_s7 }
 0x468   : > { %s6661_s7 = smov %s4942_s8  ;;  %s6662_s8 = smov %s5001_s15 }
 0x469   : > { %s6663_s9 = smov %s4989_s12  ;;  %16 = sbr.rel (!%p14_p3) target bundleno = 5 (0x5), region = 69 }
 0x470   :  { %2718 = vsyncpa [#allocation3], 1 }
 0x471   :  { %2720 = vsyncpa [#allocation3 + $0x1], 1 }
 0x472   :  { %2721 = vsyncpa [#allocation4], 1 }
 0x473   :  { %2723 = vsyncpa [#allocation4 + $0x1], 1 }

</bundles_post_ra>
